<compile_context>
chip_gen: v5e
topology: v5e:2x2
jax: 0.10.0
libtpu: 0.0.40
codegen_flags: <defaults>
</compile_context>

<pallas_src>
import math

import numpy as np
import jax
import jax.numpy as jnp
from jax import lax
from jax.experimental import pallas as pl
from jax.experimental.pallas import tpu as pltpu

LANE = 128
SUBLANE = 8


def _round_up(x, m):
    return ((x + m - 1) // m) * m


# ------------------------------ forward builder ------------------------------

def make_forward_fn(params, *, batch, in_channels, length):
    """Precompute folded/packed weights; return a jitted forward(x)."""
    N = int(batch)
    Cin = int(in_channels)
    Lraw = int(length)
    Cin_pad = _round_up(Cin, SUBLANE)
    L_pad0 = _round_up(Lraw, LANE)

    flat = []                     # kernel constants; kernel sees refs[i] == flat[i]

    def add(arr, dtype=jnp.float32):
        flat.append(jnp.asarray(arr, dtype=dtype))
        return len(flat) - 1

    macs = [0]
    sel_cache = {}

    def fold_bn(bn, eps=1e-5):
        s = bn["gamma"] / jnp.sqrt(bn["var"] + eps)
        t = bn["beta"] - bn["mean"] * s
        return s, t

    def add_bn(bn, C):
        s, t = fold_bn(bn)
        return add(jnp.reshape(s, (C, 1))), add(jnp.reshape(t, (C, 1)))

    def subsample_sel(L_valid_in, L_pad_in, stride):
        # 0/1 selection: out[:, l] = z[:, l*stride] for l < ceil(L_valid_in/stride).
        L_out_valid = -(-L_valid_in // stride)
        L_pad_out = _round_up(L_out_valid, LANE)
        key = (L_pad_in, stride, L_out_valid)
        if key not in sel_cache:
            S = np.zeros((L_pad_in, L_pad_out), np.float32)
            cols = np.arange(L_out_valid)
            S[cols * stride, cols] = 1.0
            sel_cache[key] = add(S, jnp.bfloat16)          # 0/1 exact in bf16
        return sel_cache[key], L_out_valid, L_pad_out

    def add_conv(w, b, bn_after, stride, L_valid, L_pad, cin_pad=None):
        w = jnp.asarray(w, jnp.float32)
        b = jnp.asarray(b, jnp.float32)
        cout, cin, K = (int(d) for d in w.shape)
        if bn_after is not None:                           # inference BN fold: conv -> bn
            s, t = fold_bn(bn_after)
            w = w * s[:, None, None]
            b = b * s + t
        if cin_pad is not None and cin_pad > cin:          # zero cols for padded channels
            w = jnp.pad(w, ((0, 0), (0, cin_pad - cin), (0, 0)))
            cin = cin_pad
        # (cout, K*cin), k-major: matches concat([shift_0..shift_{K-1}], axis=0) of h.
        w_stk = jnp.transpose(w, (0, 2, 1)).reshape(cout, K * cin)
        out_dim = -(-L_valid // stride)
        p = max(0, (out_dim - 1) * stride + K - L_valid)
        desc = {
            "w": add(w_stk, jnp.bfloat16),
            "b": add(jnp.reshape(b, (cout, 1))),
            "K": K,
            "pad_left": p // 2,
            "L_valid": L_valid,                            # input valid length (mask bound)
            "sel": None,
        }
        macs[0] += cout * K * cin * L_pad
        if stride > 1:
            desc["sel"], L_valid_out, L_pad_out = subsample_sel(L_valid, L_pad, stride)
            macs[0] += cout * L_pad * L_pad_out
        else:
            L_valid_out, L_pad_out = out_dim, L_pad
        return desc, L_valid_out, L_pad_out

    # ---- static plan ---------------------------------------------------------
    plan = {}
    L_valid, L_pad = Lraw, L_pad0
    plan["first"], L_valid, L_pad = add_conv(
        params["first_conv_w"], params["first_conv_b"], params["first_bn"],
        1, L_valid, L_pad, cin_pad=Cin_pad)
    C = int(params["first_conv_w"].shape[0])

    block_plans = []
    for blk in params["blocks"]:
        in_ch, out_ch = int(blk["in_channels"]), int(blk["out_channels"])
        assert in_ch == C
        bp = {"bn1": None, "pool": None, "chpad": None}
        L_valid_in, L_pad_in = L_valid, L_pad
        if not blk["is_first_block"]:
            bp["bn1"] = add_bn(blk["bn1"], in_ch)
        stride = int(blk["stride"])
        bp["conv1"], L_valid, L_pad = add_conv(
            blk["conv1_w"], blk["conv1_b"], blk["bn2"], stride, L_valid, L_pad)
        bp["conv2"], L_valid, L_pad = add_conv(
            blk["conv2_w"], blk["conv2_b"], None, 1, L_valid, L_pad)
        if blk["downsample"]:
            # MyMaxPool1dPadSame(kp): pad with stride=1 rule (p = kp-1, constant 0),
            # then MaxPool1d(kp) (stride kp).
            kp = stride
            sel, L_pool_valid, L_pool_pad = subsample_sel(L_valid_in, L_pad_in, kp)
            assert L_pool_valid == L_valid and L_pool_pad == L_pad
            bp["pool"] = {"sel": sel, "k": kp, "pad_left": (kp - 1) // 2,
                          "L_valid": L_valid_in}
            macs[0] += in_ch * L_pad_in * L_pad
        if out_ch != in_ch:
            ch1 = (out_ch - in_ch) // 2
            P = np.zeros((out_ch, in_ch), np.float32)
            P[ch1 + np.arange(in_ch), np.arange(in_ch)] = 1.0
            bp["chpad"] = add(P)                           # tiny exact f32 channel pad
            macs[0] += out_ch * in_ch * L_pad
        block_plans.append(bp)
        C = out_ch
    plan["blocks"] = block_plans
    plan["final_bn"] = add_bn(params["final_bn"], C)

    dense_w = jnp.asarray(params["dense_w"], jnp.float32)  # (n_classes, in_features)
    n_classes, in_features = (int(d) for d in dense_w.shape)
    assert L_valid == in_features, (
        f"sequence length after the network ({L_valid}) must equal nn.Linear "
        f"in_features ({in_features}); adjust LENGTH / stride schedule.")
    wt = jnp.zeros((L_pad, n_classes), jnp.float32).at[:in_features].set(dense_w.T)
    plan["dense_w"] = add(wt)                              # zero rows kill padded lanes
    plan["dense_b"] = add(jnp.reshape(params["dense_b"], (1, n_classes)))
    macs[0] += L_pad * n_classes

    # ---- the single fused kernel (one sample per grid step) ------------------
    def shifted_taps(h, K, pad_left, L_valid_in):
        # tap_k[:, l] = h[:, l + k - pad_left], zero outside [0, L_valid_in).
        C_, Lp = h.shape
        col = lax.broadcasted_iota(jnp.int32, (C_, Lp), 1)
        outs = []
        for k in range(K):
            sh = (pad_left - k) % Lp
            hk = h if sh == 0 else pltpu.roll(h, shift=sh, axis=1)
            src = col + (k - pad_left)
            outs.append(jnp.where((src >= 0) & (src < L_valid_in), hk, 0.0))
        return outs

    def conv_apply(refs, h, cd):
        taps = shifted_taps(h, cd["K"], cd["pad_left"], cd["L_valid"])
        hs = jnp.concatenate(taps, axis=0).astype(jnp.bfloat16)     # (K*cin, L_pad)
        y = jnp.dot(refs[cd["w"]][...], hs,
                    preferred_element_type=jnp.float32) + refs[cd["b"]][...]
        if cd["sel"] is not None:                                   # strided conv
            y = jnp.dot(y.astype(jnp.bfloat16), refs[cd["sel"]][...],
                        preferred_element_type=jnp.float32)
        return y

    def kernel(x_ref, *rest):
        refs, out_ref = rest[:-1], rest[-1]
        h = x_ref[...]                                      # (Cin_pad, L_pad0) f32
        # first conv (+ folded first_bn) + relu
        h = jnp.maximum(conv_apply(refs, h, plan["first"]), 0.0)
        for bp in plan["blocks"]:
            identity = h
            if bp["bn1"] is not None:                       # bn1 + relu1
                s_i, t_i = bp["bn1"]
                h = jnp.maximum(h * refs[s_i][...] + refs[t_i][...], 0.0)
            # dropout(p=0.5) == identity in eval mode
            h = jnp.maximum(conv_apply(refs, h, bp["conv1"]), 0.0)   # conv1+bn2+relu2
            h = conv_apply(refs, h, bp["conv2"])                     # conv2
            if bp["pool"] is not None:                      # SAME max-pool of identity
                pp = bp["pool"]
                taps = shifted_taps(identity, pp["k"], pp["pad_left"], pp["L_valid"])
                wmax = taps[0]
                for t in taps[1:]:
                    wmax = jnp.maximum(wmax, t)
                sel_f32 = refs[pp["sel"]][...].astype(jnp.float32)   # exact residual path
                identity = jnp.dot(wmax, sel_f32, preferred_element_type=jnp.float32)
            if bp["chpad"] is not None:                     # zero-pad channels
                identity = jnp.dot(refs[bp["chpad"]][...], identity,
                                   preferred_element_type=jnp.float32)
            h = h + identity
        s_i, t_i = plan["final_bn"]                         # final bn + relu
        h = jnp.maximum(h * refs[s_i][...] + refs[t_i][...], 0.0)
        feat = jnp.mean(h, axis=0, keepdims=True)           # .mean(-2): (1, L_pad)
        y = jnp.dot(feat, refs[plan["dense_w"]][...],
                    preferred_element_type=jnp.float32) + refs[plan["dense_b"]][...]
        inv = lax.rsqrt(jnp.maximum(jnp.sum(y * y, axis=-1, keepdims=True), 1e-24))
        out_ref[...] = y * inv                              # F.normalize(p=2, dim=1)

    def _const_spec(a):
        zeros = (0,) * a.ndim
        return pl.BlockSpec(tuple(int(d) for d in a.shape), lambda b, _z=zeros: _z)

    const_specs = [_const_spec(a) for a in flat]
    in_bytes = (4 * N * Cin_pad * L_pad0
                + sum(int(a.size) * a.dtype.itemsize for a in flat))

    call = pl.pallas_call(
        kernel,
        out_shape=jax.ShapeDtypeStruct((N, 1, n_classes), jnp.float32),
        grid=(N,),
        in_specs=[pl.BlockSpec((None, Cin_pad, L_pad0), lambda b: (b, 0, 0))]
                 + const_specs,
        out_specs=pl.BlockSpec((None, 1, n_classes), lambda b: (b, 0, 0)),
        compiler_params=pltpu.CompilerParams(
            dimension_semantics=("parallel",),
            vmem_limit_bytes=16 * 1024 * 1024),
        cost_estimate=pl.CostEstimate(flops=int(2 * N * macs[0]), transcendentals=0,
                                      bytes_accessed=int(in_bytes + 4 * N * n_classes)),
    )

    consts = tuple(flat)

    @jax.jit
    def _forward(x, consts):
        x = x.astype(jnp.float32)
        x = jnp.pad(x, ((0, 0), (0, Cin_pad - Cin), (0, L_pad0 - Lraw)))
        return call(x, *consts).reshape(N, n_classes)

    return lambda x: _forward(x, consts)


# --------------------------- pure-JAX f32 reference ---------------------------

def ref_forward(params, x, eps=1e-5):
    def bn(h, p):
        s = p["gamma"] / jnp.sqrt(p["var"] + eps)
        return (h - p["mean"][None, :, None]) * s[None, :, None] + p["beta"][None, :, None]

    def conv_same(h, w, b, stride):
        K = w.shape[-1]
        L = h.shape[-1]
        out_dim = -(-L // stride)
        p = max(0, (out_dim - 1) * stride + K - L)
        y = lax.conv_general_dilated(h, w, window_strides=(stride,),
                                     padding=[(p // 2, p - p // 2)],
                                     dimension_numbers=("NCH", "OIH", "NCH"))
        return y + b[None, :, None]

    def maxpool_same(h, k):
        p = k - 1
        hp = jnp.pad(h, ((0, 0), (0, 0), (p // 2, p - p // 2)))
        n = (hp.shape[-1] - k) // k + 1
        return hp[..., :n * k].reshape(h.shape[0], h.shape[1], n, k).max(-1)

    h = jnp.maximum(bn(conv_same(x, params["first_conv_w"], params["first_conv_b"], 1),
                       params["first_bn"]), 0.0)
    for blk in params["blocks"]:
        identity = h
        out = h
        if not blk["is_first_block"]:
            out = jnp.maximum(bn(out, blk["bn1"]), 0.0)
        out = conv_same(out, blk["conv1_w"], blk["conv1_b"], blk["stride"])
        out = jnp.maximum(bn(out, blk["bn2"]), 0.0)
        out = conv_same(out, blk["conv2_w"], blk["conv2_b"], 1)
        if blk["downsample"]:
            identity = maxpool_same(identity, blk["stride"])
        in_ch, out_ch = blk["in_channels"], blk["out_channels"]
        if out_ch != in_ch:
            ch1 = (out_ch - in_ch) // 2
            identity = jnp.pad(identity, ((0, 0), (ch1, out_ch - in_ch - ch1), (0, 0)))
        h = out + identity
    h = jnp.maximum(bn(h, params["final_bn"]), 0.0)
    feat = h.mean(-2)
    y = feat @ params["dense_w"].T + params["dense_b"]
    nrm = jnp.sqrt(jnp.sum(y * y, axis=1, keepdims=True))
    return y / jnp.maximum(nrm, 1e-12)


# ------------------------------ parameter init ------------------------------

def init_params(key, in_channels, base_filters, kernel_size, stride, groups,
                n_block, n_classes, downsample_gap, increasefilter_gap):
    assert groups == 1, "grouped conv not implemented"   # TODO(synk): groups > 1
    keys = iter(jax.random.split(key, 128))

    def conv_init(cout, cin, k):
        std = 1.0 / math.sqrt(cin * k)
        w = jax.random.normal(next(keys), (cout, cin, k), jnp.float32) * std
        b = jax.random.normal(next(keys), (cout,), jnp.float32) * std
        return w, b

    def bn_init(c):
        return {
            "gamma": 1.0 + 0.1 * jax.random.normal(next(keys), (c,), jnp.float32),
            "beta": 0.1 * jax.random.normal(next(keys), (c,), jnp.float32),
            "mean": 0.1 * jax.random.normal(next(keys), (c,), jnp.float32),
            "var": 1.0 + 0.1 * jax.random.uniform(next(keys), (c,), jnp.float32),
        }

    params = {}
    params["first_conv_w"], params["first_conv_b"] = conv_init(
        base_filters, in_channels, kernel_size)
    params["first_bn"] = bn_init(base_filters)

    blocks = []
    out_channels = base_filters
    for i_block in range(n_block):
        is_first_block = i_block == 0
        downsample = (i_block % downsample_gap == 1)
        if is_first_block:
            in_ch = base_filters
            out_ch = in_ch
        else:
            in_ch = int(base_filters * 2 ** ((i_block - 1) // increasefilter_gap))
            if i_block % increasefilter_gap == 0 and i_block != 0:
                out_ch = in_ch * 2
            else:
                out_ch = in_ch
        blk_stride = stride if downsample else 1
        c1w, c1b = conv_init(out_ch, in_ch, kernel_size)
        c2w, c2b = conv_init(out_ch, out_ch, kernel_size)
        blocks.append({
            "is_first_block": is_first_block,
            "downsample": downsample,
            "stride": blk_stride,
            "in_channels": in_ch,
            "out_channels": out_ch,
            "bn1": bn_init(in_ch),
            "conv1_w": c1w, "conv1_b": c1b,
            "bn2": bn_init(out_ch),
            "conv2_w": c2w, "conv2_b": c2b,
        })
        out_channels = out_ch
    params["blocks"] = blocks
    params["final_bn"] = bn_init(out_channels)
    # nn.Linear(222, n_classes)
    params["dense_w"] = jax.random.normal(
        next(keys), (n_classes, 222), jnp.float32) / math.sqrt(222)
    params["dense_b"] = 0.01 * jax.random.normal(next(keys), (n_classes,), jnp.float32)
    return params


# ----------------------------------- main -----------------------------------

if __name__ == "__main__":
    IN_CHANNELS = 4
    BASE_FILTERS = 8
    KERNEL_SIZE = 3
    STRIDE = 2
    GROUPS = 1
    N_BLOCK = 3            # block0: first, block1: downsample, block2: channel increase
    N_CLASSES = 5
    DOWNSAMPLE_GAP = 2
    INCREASEFILTER_GAP = 2
    BATCH = 2
    LENGTH = 444           # one downsample halves it -> 222 = in_features of nn.Linear(222,.)

    key = jax.random.PRNGKey(0)
    pkey, xkey = jax.random.split(key)
    params = init_params(pkey, IN_CHANNELS, BASE_FILTERS, KERNEL_SIZE, STRIDE,
                         GROUPS, N_BLOCK, N_CLASSES, DOWNSAMPLE_GAP,
                         INCREASEFILTER_GAP)
    x = jax.random.normal(xkey, (BATCH, IN_CHANNELS, LENGTH), jnp.float32)

    forward = make_forward_fn(params, batch=BATCH, in_channels=IN_CHANNELS,
                              length=LENGTH)
    out = jax.block_until_ready(forward(x))
    assert out.shape == (BATCH, N_CLASSES), out.shape
    assert bool(jnp.all(jnp.isfinite(out)))

    # sanity-check against a pure-JAX f32 reference (loose tol: conv path uses bf16 MXU)
    ref = jax.block_until_ready(ref_forward(params, x))
    err = float(jnp.max(jnp.abs(out - ref)))
    assert err < 8e-2, f"mismatch vs f32 reference: max|diff|={err}"
    print("KERNEL_OK")
</pallas_src>

<mosaic_0001>
module attributes {stable_mosaic.version = 11 : i64} {
  func.func @kernel(%arg0: i32, %arg1: memref<1x8x512xf32, #tpu.memory_space<vmem>>, %arg2: memref<8x24xbf16, #tpu.memory_space<vmem>>, %arg3: memref<8x1xf32, #tpu.memory_space<vmem>>, %arg4: memref<8x24xbf16, #tpu.memory_space<vmem>>, %arg5: memref<8x1xf32, #tpu.memory_space<vmem>>, %arg6: memref<8x24xbf16, #tpu.memory_space<vmem>>, %arg7: memref<8x1xf32, #tpu.memory_space<vmem>>, %arg8: memref<8x1xf32, #tpu.memory_space<vmem>>, %arg9: memref<8x1xf32, #tpu.memory_space<vmem>>, %arg10: memref<8x24xbf16, #tpu.memory_space<vmem>>, %arg11: memref<8x1xf32, #tpu.memory_space<vmem>>, %arg12: memref<512x256xbf16, #tpu.memory_space<vmem>>, %arg13: memref<8x24xbf16, #tpu.memory_space<vmem>>, %arg14: memref<8x1xf32, #tpu.memory_space<vmem>>, %arg15: memref<8x1xf32, #tpu.memory_space<vmem>>, %arg16: memref<8x1xf32, #tpu.memory_space<vmem>>, %arg17: memref<16x24xbf16, #tpu.memory_space<vmem>>, %arg18: memref<16x1xf32, #tpu.memory_space<vmem>>, %arg19: memref<16x48xbf16, #tpu.memory_space<vmem>>, %arg20: memref<16x1xf32, #tpu.memory_space<vmem>>, %arg21: memref<16x8xf32, #tpu.memory_space<vmem>>, %arg22: memref<16x1xf32, #tpu.memory_space<vmem>>, %arg23: memref<16x1xf32, #tpu.memory_space<vmem>>, %arg24: memref<256x5xf32, #tpu.memory_space<vmem>>, %arg25: memref<1x5xf32, #tpu.memory_space<vmem>>, %arg26: memref<1x1x5xf32, #tpu.memory_space<vmem>>) attributes {dimension_semantics = [#tpu.dimension_semantics<parallel>], iteration_bounds = array<i64: 2>, scalar_prefetch = 0 : i64, scratch_operands = 0 : i64, tpu.core_type = #tpu.core_type<tc>, window_params = [{transform_indices = @transform_0, window_bounds = array<i64: 1, 8, 512>}, {pipeline_mode = #tpu.pipeline_mode<synchronous>, transform_indices = @transform_1, window_bounds = array<i64: 8, 24>}, {pipeline_mode = #tpu.pipeline_mode<synchronous>, transform_indices = @transform_2, window_bounds = array<i64: 8, 1>}, {pipeline_mode = #tpu.pipeline_mode<synchronous>, transform_indices = @transform_3, window_bounds = array<i64: 8, 24>}, {pipeline_mode = #tpu.pipeline_mode<synchronous>, transform_indices = @transform_4, window_bounds = array<i64: 8, 1>}, {pipeline_mode = #tpu.pipeline_mode<synchronous>, transform_indices = @transform_5, window_bounds = array<i64: 8, 24>}, {pipeline_mode = #tpu.pipeline_mode<synchronous>, transform_indices = @transform_6, window_bounds = array<i64: 8, 1>}, {pipeline_mode = #tpu.pipeline_mode<synchronous>, transform_indices = @transform_7, window_bounds = array<i64: 8, 1>}, {pipeline_mode = #tpu.pipeline_mode<synchronous>, transform_indices = @transform_8, window_bounds = array<i64: 8, 1>}, {pipeline_mode = #tpu.pipeline_mode<synchronous>, transform_indices = @transform_9, window_bounds = array<i64: 8, 24>}, {pipeline_mode = #tpu.pipeline_mode<synchronous>, transform_indices = @transform_10, window_bounds = array<i64: 8, 1>}, {pipeline_mode = #tpu.pipeline_mode<synchronous>, transform_indices = @transform_11, window_bounds = array<i64: 512, 256>}, {pipeline_mode = #tpu.pipeline_mode<synchronous>, transform_indices = @transform_12, window_bounds = array<i64: 8, 24>}, {pipeline_mode = #tpu.pipeline_mode<synchronous>, transform_indices = @transform_13, window_bounds = array<i64: 8, 1>}, {pipeline_mode = #tpu.pipeline_mode<synchronous>, transform_indices = @transform_14, window_bounds = array<i64: 8, 1>}, {pipeline_mode = #tpu.pipeline_mode<synchronous>, transform_indices = @transform_15, window_bounds = array<i64: 8, 1>}, {pipeline_mode = #tpu.pipeline_mode<synchronous>, transform_indices = @transform_16, window_bounds = array<i64: 16, 24>}, {pipeline_mode = #tpu.pipeline_mode<synchronous>, transform_indices = @transform_17, window_bounds = array<i64: 16, 1>}, {pipeline_mode = #tpu.pipeline_mode<synchronous>, transform_indices = @transform_18, window_bounds = array<i64: 16, 48>}, {pipeline_mode = #tpu.pipeline_mode<synchronous>, transform_indices = @transform_19, window_bounds = array<i64: 16, 1>}, {pipeline_mode = #tpu.pipeline_mode<synchronous>, transform_indices = @transform_20, window_bounds = array<i64: 16, 8>}, {pipeline_mode = #tpu.pipeline_mode<synchronous>, transform_indices = @transform_21, window_bounds = array<i64: 16, 1>}, {pipeline_mode = #tpu.pipeline_mode<synchronous>, transform_indices = @transform_22, window_bounds = array<i64: 16, 1>}, {pipeline_mode = #tpu.pipeline_mode<synchronous>, transform_indices = @transform_23, window_bounds = array<i64: 256, 5>}, {pipeline_mode = #tpu.pipeline_mode<synchronous>, transform_indices = @transform_24, window_bounds = array<i64: 1, 5>}, {transform_indices = @transform_25, window_bounds = array<i64: 1, 1, 5>}]} {
    %c0 = arith.constant 0 : index
    %c0_0 = arith.constant 0 : index
    %c0_1 = arith.constant 0 : index
    %0 = vector.load %arg1[%c0, %c0_0, %c0_1] : memref<1x8x512xf32, #tpu.memory_space<vmem>>, vector<1x8x512xf32>
    %1 = vector.shape_cast %0 : vector<1x8x512xf32> to vector<8x512xf32>
    %2 = tpu.iota {dimensions = array<i32: 1>} : vector<8x512xi32>
    %c1_i32 = arith.constant 1 : i32
    %3 = tpu.dynamic_rotate %1 by %c1_i32 dim 1 : vector<8x512xf32>, i32 -> vector<8x512xf32>
    %c-1_i32 = arith.constant -1 : i32
    %4 = vector.broadcast %c-1_i32 : i32 to vector<8x512xi32>
    %5 = arith.addi %2, %4 : vector<8x512xi32>
    %c0_i32 = arith.constant 0 : i32
    %6 = vector.broadcast %c0_i32 : i32 to vector<8x512xi32>
    %7 = arith.cmpi sge, %5, %6 : vector<8x512xi32>
    %c444_i32 = arith.constant 444 : i32
    %8 = vector.broadcast %c444_i32 : i32 to vector<8x512xi32>
    %9 = arith.cmpi slt, %5, %8 : vector<8x512xi32>
    %10 = arith.andi %7, %9 : vector<8x512xi1>
    %cst = arith.constant 0.000000e+00 : f32
    %11 = vector.broadcast %cst : f32 to vector<8x512xf32>
    %12 = arith.select %10, %3, %11 : vector<8x512xi1>, vector<8x512xf32>
    %c0_i32_2 = arith.constant 0 : i32
    %13 = vector.broadcast %c0_i32_2 : i32 to vector<8x512xi32>
    %14 = arith.addi %2, %13 : vector<8x512xi32>
    %c0_i32_3 = arith.constant 0 : i32
    %15 = vector.broadcast %c0_i32_3 : i32 to vector<8x512xi32>
    %16 = arith.cmpi sge, %14, %15 : vector<8x512xi32>
    %c444_i32_4 = arith.constant 444 : i32
    %17 = vector.broadcast %c444_i32_4 : i32 to vector<8x512xi32>
    %18 = arith.cmpi slt, %14, %17 : vector<8x512xi32>
    %19 = arith.andi %16, %18 : vector<8x512xi1>
    %cst_5 = arith.constant 0.000000e+00 : f32
    %20 = vector.broadcast %cst_5 : f32 to vector<8x512xf32>
    %21 = arith.select %19, %1, %20 : vector<8x512xi1>, vector<8x512xf32>
    %c511_i32 = arith.constant 511 : i32
    %22 = tpu.dynamic_rotate %1 by %c511_i32 dim 1 : vector<8x512xf32>, i32 -> vector<8x512xf32>
    %c1_i32_6 = arith.constant 1 : i32
    %23 = vector.broadcast %c1_i32_6 : i32 to vector<8x512xi32>
    %24 = arith.addi %2, %23 : vector<8x512xi32>
    %c0_i32_7 = arith.constant 0 : i32
    %25 = vector.broadcast %c0_i32_7 : i32 to vector<8x512xi32>
    %26 = arith.cmpi sge, %24, %25 : vector<8x512xi32>
    %c444_i32_8 = arith.constant 444 : i32
    %27 = vector.broadcast %c444_i32_8 : i32 to vector<8x512xi32>
    %28 = arith.cmpi slt, %24, %27 : vector<8x512xi32>
    %29 = arith.andi %26, %28 : vector<8x512xi1>
    %cst_9 = arith.constant 0.000000e+00 : f32
    %30 = vector.broadcast %cst_9 : f32 to vector<8x512xf32>
    %31 = arith.select %29, %22, %30 : vector<8x512xi1>, vector<8x512xf32>
    %32 = tpu.concatenate %12, %21, %31 in 0 : vector<8x512xf32>, vector<8x512xf32>, vector<8x512xf32> -> vector<24x512xf32>
    %33 = arith.truncf %32 : vector<24x512xf32> to vector<24x512xbf16>
    %c0_10 = arith.constant 0 : index
    %c0_11 = arith.constant 0 : index
    %34 = vector.load %arg2[%c0_10, %c0_11] : memref<8x24xbf16, #tpu.memory_space<vmem>>, vector<8x24xbf16>
    %cst_12 = arith.constant dense<0.000000e+00> : vector<8x512xf32>
    %35 = tpu.matmul %34, %33, %cst_12 {dimension_numbers = #tpu.dot_dimension_numbers<[1], [0], [0], [1], [0, 0, 1, 1], [], []>} : vector<8x24xbf16>, vector<24x512xbf16>, vector<8x512xf32> -> vector<8x512xf32>
    %c0_13 = arith.constant 0 : index
    %c0_14 = arith.constant 0 : index
    %36 = vector.load %arg3[%c0_13, %c0_14] : memref<8x1xf32, #tpu.memory_space<vmem>>, vector<8x1xf32>
    %37 = vector.broadcast %36 : vector<8x1xf32> to vector<8x512xf32>
    %38 = arith.addf %35, %37 : vector<8x512xf32>
    %cst_15 = arith.constant 0.000000e+00 : f32
    %39 = vector.broadcast %cst_15 : f32 to vector<8x512xf32>
    %40 = arith.maximumf %38, %39 : vector<8x512xf32>
    %41 = tpu.iota {dimensions = array<i32: 1>} : vector<8x512xi32>
    %c1_i32_16 = arith.constant 1 : i32
    %42 = tpu.dynamic_rotate %40 by %c1_i32_16 dim 1 : vector<8x512xf32>, i32 -> vector<8x512xf32>
    %c-1_i32_17 = arith.constant -1 : i32
    %43 = vector.broadcast %c-1_i32_17 : i32 to vector<8x512xi32>
    %44 = arith.addi %41, %43 : vector<8x512xi32>
    %c0_i32_18 = arith.constant 0 : i32
    %45 = vector.broadcast %c0_i32_18 : i32 to vector<8x512xi32>
    %46 = arith.cmpi sge, %44, %45 : vector<8x512xi32>
    %c444_i32_19 = arith.constant 444 : i32
    %47 = vector.broadcast %c444_i32_19 : i32 to vector<8x512xi32>
    %48 = arith.cmpi slt, %44, %47 : vector<8x512xi32>
    %49 = arith.andi %46, %48 : vector<8x512xi1>
    %cst_20 = arith.constant 0.000000e+00 : f32
    %50 = vector.broadcast %cst_20 : f32 to vector<8x512xf32>
    %51 = arith.select %49, %42, %50 : vector<8x512xi1>, vector<8x512xf32>
    %c0_i32_21 = arith.constant 0 : i32
    %52 = vector.broadcast %c0_i32_21 : i32 to vector<8x512xi32>
    %53 = arith.addi %41, %52 : vector<8x512xi32>
    %c0_i32_22 = arith.constant 0 : i32
    %54 = vector.broadcast %c0_i32_22 : i32 to vector<8x512xi32>
    %55 = arith.cmpi sge, %53, %54 : vector<8x512xi32>
    %c444_i32_23 = arith.constant 444 : i32
    %56 = vector.broadcast %c444_i32_23 : i32 to vector<8x512xi32>
    %57 = arith.cmpi slt, %53, %56 : vector<8x512xi32>
    %58 = arith.andi %55, %57 : vector<8x512xi1>
    %cst_24 = arith.constant 0.000000e+00 : f32
    %59 = vector.broadcast %cst_24 : f32 to vector<8x512xf32>
    %60 = arith.select %58, %40, %59 : vector<8x512xi1>, vector<8x512xf32>
    %c511_i32_25 = arith.constant 511 : i32
    %61 = tpu.dynamic_rotate %40 by %c511_i32_25 dim 1 : vector<8x512xf32>, i32 -> vector<8x512xf32>
    %c1_i32_26 = arith.constant 1 : i32
    %62 = vector.broadcast %c1_i32_26 : i32 to vector<8x512xi32>
    %63 = arith.addi %41, %62 : vector<8x512xi32>
    %c0_i32_27 = arith.constant 0 : i32
    %64 = vector.broadcast %c0_i32_27 : i32 to vector<8x512xi32>
    %65 = arith.cmpi sge, %63, %64 : vector<8x512xi32>
    %c444_i32_28 = arith.constant 444 : i32
    %66 = vector.broadcast %c444_i32_28 : i32 to vector<8x512xi32>
    %67 = arith.cmpi slt, %63, %66 : vector<8x512xi32>
    %68 = arith.andi %65, %67 : vector<8x512xi1>
    %cst_29 = arith.constant 0.000000e+00 : f32
    %69 = vector.broadcast %cst_29 : f32 to vector<8x512xf32>
    %70 = arith.select %68, %61, %69 : vector<8x512xi1>, vector<8x512xf32>
    %71 = tpu.concatenate %51, %60, %70 in 0 : vector<8x512xf32>, vector<8x512xf32>, vector<8x512xf32> -> vector<24x512xf32>
    %72 = arith.truncf %71 : vector<24x512xf32> to vector<24x512xbf16>
    %c0_30 = arith.constant 0 : index
    %c0_31 = arith.constant 0 : index
    %73 = vector.load %arg4[%c0_30, %c0_31] : memref<8x24xbf16, #tpu.memory_space<vmem>>, vector<8x24xbf16>
    %cst_32 = arith.constant dense<0.000000e+00> : vector<8x512xf32>
    %74 = tpu.matmul %73, %72, %cst_32 {dimension_numbers = #tpu.dot_dimension_numbers<[1], [0], [0], [1], [0, 0, 1, 1], [], []>} : vector<8x24xbf16>, vector<24x512xbf16>, vector<8x512xf32> -> vector<8x512xf32>
    %c0_33 = arith.constant 0 : index
    %c0_34 = arith.constant 0 : index
    %75 = vector.load %arg5[%c0_33, %c0_34] : memref<8x1xf32, #tpu.memory_space<vmem>>, vector<8x1xf32>
    %76 = vector.broadcast %75 : vector<8x1xf32> to vector<8x512xf32>
    %77 = arith.addf %74, %76 : vector<8x512xf32>
    %cst_35 = arith.constant 0.000000e+00 : f32
    %78 = vector.broadcast %cst_35 : f32 to vector<8x512xf32>
    %79 = arith.maximumf %77, %78 : vector<8x512xf32>
    %80 = tpu.iota {dimensions = array<i32: 1>} : vector<8x512xi32>
    %c1_i32_36 = arith.constant 1 : i32
    %81 = tpu.dynamic_rotate %79 by %c1_i32_36 dim 1 : vector<8x512xf32>, i32 -> vector<8x512xf32>
    %c-1_i32_37 = arith.constant -1 : i32
    %82 = vector.broadcast %c-1_i32_37 : i32 to vector<8x512xi32>
    %83 = arith.addi %80, %82 : vector<8x512xi32>
    %c0_i32_38 = arith.constant 0 : i32
    %84 = vector.broadcast %c0_i32_38 : i32 to vector<8x512xi32>
    %85 = arith.cmpi sge, %83, %84 : vector<8x512xi32>
    %c444_i32_39 = arith.constant 444 : i32
    %86 = vector.broadcast %c444_i32_39 : i32 to vector<8x512xi32>
    %87 = arith.cmpi slt, %83, %86 : vector<8x512xi32>
    %88 = arith.andi %85, %87 : vector<8x512xi1>
    %cst_40 = arith.constant 0.000000e+00 : f32
    %89 = vector.broadcast %cst_40 : f32 to vector<8x512xf32>
    %90 = arith.select %88, %81, %89 : vector<8x512xi1>, vector<8x512xf32>
    %c0_i32_41 = arith.constant 0 : i32
    %91 = vector.broadcast %c0_i32_41 : i32 to vector<8x512xi32>
    %92 = arith.addi %80, %91 : vector<8x512xi32>
    %c0_i32_42 = arith.constant 0 : i32
    %93 = vector.broadcast %c0_i32_42 : i32 to vector<8x512xi32>
    %94 = arith.cmpi sge, %92, %93 : vector<8x512xi32>
    %c444_i32_43 = arith.constant 444 : i32
    %95 = vector.broadcast %c444_i32_43 : i32 to vector<8x512xi32>
    %96 = arith.cmpi slt, %92, %95 : vector<8x512xi32>
    %97 = arith.andi %94, %96 : vector<8x512xi1>
    %cst_44 = arith.constant 0.000000e+00 : f32
    %98 = vector.broadcast %cst_44 : f32 to vector<8x512xf32>
    %99 = arith.select %97, %79, %98 : vector<8x512xi1>, vector<8x512xf32>
    %c511_i32_45 = arith.constant 511 : i32
    %100 = tpu.dynamic_rotate %79 by %c511_i32_45 dim 1 : vector<8x512xf32>, i32 -> vector<8x512xf32>
    %c1_i32_46 = arith.constant 1 : i32
    %101 = vector.broadcast %c1_i32_46 : i32 to vector<8x512xi32>
    %102 = arith.addi %80, %101 : vector<8x512xi32>
    %c0_i32_47 = arith.constant 0 : i32
    %103 = vector.broadcast %c0_i32_47 : i32 to vector<8x512xi32>
    %104 = arith.cmpi sge, %102, %103 : vector<8x512xi32>
    %c444_i32_48 = arith.constant 444 : i32
    %105 = vector.broadcast %c444_i32_48 : i32 to vector<8x512xi32>
    %106 = arith.cmpi slt, %102, %105 : vector<8x512xi32>
    %107 = arith.andi %104, %106 : vector<8x512xi1>
    %cst_49 = arith.constant 0.000000e+00 : f32
    %108 = vector.broadcast %cst_49 : f32 to vector<8x512xf32>
    %109 = arith.select %107, %100, %108 : vector<8x512xi1>, vector<8x512xf32>
    %110 = tpu.concatenate %90, %99, %109 in 0 : vector<8x512xf32>, vector<8x512xf32>, vector<8x512xf32> -> vector<24x512xf32>
    %111 = arith.truncf %110 : vector<24x512xf32> to vector<24x512xbf16>
    %c0_50 = arith.constant 0 : index
    %c0_51 = arith.constant 0 : index
    %112 = vector.load %arg6[%c0_50, %c0_51] : memref<8x24xbf16, #tpu.memory_space<vmem>>, vector<8x24xbf16>
    %cst_52 = arith.constant dense<0.000000e+00> : vector<8x512xf32>
    %113 = tpu.matmul %112, %111, %cst_52 {dimension_numbers = #tpu.dot_dimension_numbers<[1], [0], [0], [1], [0, 0, 1, 1], [], []>} : vector<8x24xbf16>, vector<24x512xbf16>, vector<8x512xf32> -> vector<8x512xf32>
    %c0_53 = arith.constant 0 : index
    %c0_54 = arith.constant 0 : index
    %114 = vector.load %arg7[%c0_53, %c0_54] : memref<8x1xf32, #tpu.memory_space<vmem>>, vector<8x1xf32>
    %115 = vector.broadcast %114 : vector<8x1xf32> to vector<8x512xf32>
    %116 = arith.addf %113, %115 : vector<8x512xf32>
    %117 = arith.addf %116, %40 : vector<8x512xf32>
    %c0_55 = arith.constant 0 : index
    %c0_56 = arith.constant 0 : index
    %118 = vector.load %arg8[%c0_55, %c0_56] : memref<8x1xf32, #tpu.memory_space<vmem>>, vector<8x1xf32>
    %119 = vector.broadcast %118 : vector<8x1xf32> to vector<8x512xf32>
    %120 = arith.mulf %117, %119 : vector<8x512xf32>
    %c0_57 = arith.constant 0 : index
    %c0_58 = arith.constant 0 : index
    %121 = vector.load %arg9[%c0_57, %c0_58] : memref<8x1xf32, #tpu.memory_space<vmem>>, vector<8x1xf32>
    %122 = vector.broadcast %121 : vector<8x1xf32> to vector<8x512xf32>
    %123 = arith.addf %120, %122 : vector<8x512xf32>
    %cst_59 = arith.constant 0.000000e+00 : f32
    %124 = vector.broadcast %cst_59 : f32 to vector<8x512xf32>
    %125 = arith.maximumf %123, %124 : vector<8x512xf32>
    %126 = tpu.iota {dimensions = array<i32: 1>} : vector<8x512xi32>
    %c0_i32_60 = arith.constant 0 : i32
    %127 = vector.broadcast %c0_i32_60 : i32 to vector<8x512xi32>
    %128 = arith.addi %126, %127 : vector<8x512xi32>
    %c0_i32_61 = arith.constant 0 : i32
    %129 = vector.broadcast %c0_i32_61 : i32 to vector<8x512xi32>
    %130 = arith.cmpi sge, %128, %129 : vector<8x512xi32>
    %c444_i32_62 = arith.constant 444 : i32
    %131 = vector.broadcast %c444_i32_62 : i32 to vector<8x512xi32>
    %132 = arith.cmpi slt, %128, %131 : vector<8x512xi32>
    %133 = arith.andi %130, %132 : vector<8x512xi1>
    %cst_63 = arith.constant 0.000000e+00 : f32
    %134 = vector.broadcast %cst_63 : f32 to vector<8x512xf32>
    %135 = arith.select %133, %125, %134 : vector<8x512xi1>, vector<8x512xf32>
    %c511_i32_64 = arith.constant 511 : i32
    %136 = tpu.dynamic_rotate %125 by %c511_i32_64 dim 1 : vector<8x512xf32>, i32 -> vector<8x512xf32>
    %c1_i32_65 = arith.constant 1 : i32
    %137 = vector.broadcast %c1_i32_65 : i32 to vector<8x512xi32>
    %138 = arith.addi %126, %137 : vector<8x512xi32>
    %c0_i32_66 = arith.constant 0 : i32
    %139 = vector.broadcast %c0_i32_66 : i32 to vector<8x512xi32>
    %140 = arith.cmpi sge, %138, %139 : vector<8x512xi32>
    %c444_i32_67 = arith.constant 444 : i32
    %141 = vector.broadcast %c444_i32_67 : i32 to vector<8x512xi32>
    %142 = arith.cmpi slt, %138, %141 : vector<8x512xi32>
    %143 = arith.andi %140, %142 : vector<8x512xi1>
    %cst_68 = arith.constant 0.000000e+00 : f32
    %144 = vector.broadcast %cst_68 : f32 to vector<8x512xf32>
    %145 = arith.select %143, %136, %144 : vector<8x512xi1>, vector<8x512xf32>
    %c510_i32 = arith.constant 510 : i32
    %146 = tpu.dynamic_rotate %125 by %c510_i32 dim 1 : vector<8x512xf32>, i32 -> vector<8x512xf32>
    %c2_i32 = arith.constant 2 : i32
    %147 = vector.broadcast %c2_i32 : i32 to vector<8x512xi32>
    %148 = arith.addi %126, %147 : vector<8x512xi32>
    %c0_i32_69 = arith.constant 0 : i32
    %149 = vector.broadcast %c0_i32_69 : i32 to vector<8x512xi32>
    %150 = arith.cmpi sge, %148, %149 : vector<8x512xi32>
    %c444_i32_70 = arith.constant 444 : i32
    %151 = vector.broadcast %c444_i32_70 : i32 to vector<8x512xi32>
    %152 = arith.cmpi slt, %148, %151 : vector<8x512xi32>
    %153 = arith.andi %150, %152 : vector<8x512xi1>
    %cst_71 = arith.constant 0.000000e+00 : f32
    %154 = vector.broadcast %cst_71 : f32 to vector<8x512xf32>
    %155 = arith.select %153, %146, %154 : vector<8x512xi1>, vector<8x512xf32>
    %156 = tpu.concatenate %135, %145, %155 in 0 : vector<8x512xf32>, vector<8x512xf32>, vector<8x512xf32> -> vector<24x512xf32>
    %157 = arith.truncf %156 : vector<24x512xf32> to vector<24x512xbf16>
    %c0_72 = arith.constant 0 : index
    %c0_73 = arith.constant 0 : index
    %158 = vector.load %arg10[%c0_72, %c0_73] : memref<8x24xbf16, #tpu.memory_space<vmem>>, vector<8x24xbf16>
    %cst_74 = arith.constant dense<0.000000e+00> : vector<8x512xf32>
    %159 = tpu.matmul %158, %157, %cst_74 {dimension_numbers = #tpu.dot_dimension_numbers<[1], [0], [0], [1], [0, 0, 1, 1], [], []>} : vector<8x24xbf16>, vector<24x512xbf16>, vector<8x512xf32> -> vector<8x512xf32>
    %c0_75 = arith.constant 0 : index
    %c0_76 = arith.constant 0 : index
    %160 = vector.load %arg11[%c0_75, %c0_76] : memref<8x1xf32, #tpu.memory_space<vmem>>, vector<8x1xf32>
    %161 = vector.broadcast %160 : vector<8x1xf32> to vector<8x512xf32>
    %162 = arith.addf %159, %161 : vector<8x512xf32>
    %163 = arith.truncf %162 : vector<8x512xf32> to vector<8x512xbf16>
    %c0_77 = arith.constant 0 : index
    %c0_78 = arith.constant 0 : index
    %164 = vector.load %arg12[%c0_77, %c0_78] : memref<512x256xbf16, #tpu.memory_space<vmem>>, vector<512x256xbf16>
    %cst_79 = arith.constant dense<0.000000e+00> : vector<8x256xf32>
    %165 = tpu.matmul %163, %164, %cst_79 {dimension_numbers = #tpu.dot_dimension_numbers<[1], [0], [0], [1], [0, 0, 1, 1], [], []>} : vector<8x512xbf16>, vector<512x256xbf16>, vector<8x256xf32> -> vector<8x256xf32>
    %cst_80 = arith.constant 0.000000e+00 : f32
    %166 = vector.broadcast %cst_80 : f32 to vector<8x256xf32>
    %167 = arith.maximumf %165, %166 : vector<8x256xf32>
    %168 = tpu.iota {dimensions = array<i32: 1>} : vector<8x256xi32>
    %c1_i32_81 = arith.constant 1 : i32
    %169 = tpu.dynamic_rotate %167 by %c1_i32_81 dim 1 : vector<8x256xf32>, i32 -> vector<8x256xf32>
    %c-1_i32_82 = arith.constant -1 : i32
    %170 = vector.broadcast %c-1_i32_82 : i32 to vector<8x256xi32>
    %171 = arith.addi %168, %170 : vector<8x256xi32>
    %c0_i32_83 = arith.constant 0 : i32
    %172 = vector.broadcast %c0_i32_83 : i32 to vector<8x256xi32>
    %173 = arith.cmpi sge, %171, %172 : vector<8x256xi32>
    %c222_i32 = arith.constant 222 : i32
    %174 = vector.broadcast %c222_i32 : i32 to vector<8x256xi32>
    %175 = arith.cmpi slt, %171, %174 : vector<8x256xi32>
    %176 = arith.andi %173, %175 : vector<8x256xi1>
    %cst_84 = arith.constant 0.000000e+00 : f32
    %177 = vector.broadcast %cst_84 : f32 to vector<8x256xf32>
    %178 = arith.select %176, %169, %177 : vector<8x256xi1>, vector<8x256xf32>
    %c0_i32_85 = arith.constant 0 : i32
    %179 = vector.broadcast %c0_i32_85 : i32 to vector<8x256xi32>
    %180 = arith.addi %168, %179 : vector<8x256xi32>
    %c0_i32_86 = arith.constant 0 : i32
    %181 = vector.broadcast %c0_i32_86 : i32 to vector<8x256xi32>
    %182 = arith.cmpi sge, %180, %181 : vector<8x256xi32>
    %c222_i32_87 = arith.constant 222 : i32
    %183 = vector.broadcast %c222_i32_87 : i32 to vector<8x256xi32>
    %184 = arith.cmpi slt, %180, %183 : vector<8x256xi32>
    %185 = arith.andi %182, %184 : vector<8x256xi1>
    %cst_88 = arith.constant 0.000000e+00 : f32
    %186 = vector.broadcast %cst_88 : f32 to vector<8x256xf32>
    %187 = arith.select %185, %167, %186 : vector<8x256xi1>, vector<8x256xf32>
    %c255_i32 = arith.constant 255 : i32
    %188 = tpu.dynamic_rotate %167 by %c255_i32 dim 1 : vector<8x256xf32>, i32 -> vector<8x256xf32>
    %c1_i32_89 = arith.constant 1 : i32
    %189 = vector.broadcast %c1_i32_89 : i32 to vector<8x256xi32>
    %190 = arith.addi %168, %189 : vector<8x256xi32>
    %c0_i32_90 = arith.constant 0 : i32
    %191 = vector.broadcast %c0_i32_90 : i32 to vector<8x256xi32>
    %192 = arith.cmpi sge, %190, %191 : vector<8x256xi32>
    %c222_i32_91 = arith.constant 222 : i32
    %193 = vector.broadcast %c222_i32_91 : i32 to vector<8x256xi32>
    %194 = arith.cmpi slt, %190, %193 : vector<8x256xi32>
    %195 = arith.andi %192, %194 : vector<8x256xi1>
    %cst_92 = arith.constant 0.000000e+00 : f32
    %196 = vector.broadcast %cst_92 : f32 to vector<8x256xf32>
    %197 = arith.select %195, %188, %196 : vector<8x256xi1>, vector<8x256xf32>
    %198 = tpu.concatenate %178, %187, %197 in 0 : vector<8x256xf32>, vector<8x256xf32>, vector<8x256xf32> -> vector<24x256xf32>
    %199 = arith.truncf %198 : vector<24x256xf32> to vector<24x256xbf16>
    %c0_93 = arith.constant 0 : index
    %c0_94 = arith.constant 0 : index
    %200 = vector.load %arg13[%c0_93, %c0_94] : memref<8x24xbf16, #tpu.memory_space<vmem>>, vector<8x24xbf16>
    %cst_95 = arith.constant dense<0.000000e+00> : vector<8x256xf32>
    %201 = tpu.matmul %200, %199, %cst_95 {dimension_numbers = #tpu.dot_dimension_numbers<[1], [0], [0], [1], [0, 0, 1, 1], [], []>} : vector<8x24xbf16>, vector<24x256xbf16>, vector<8x256xf32> -> vector<8x256xf32>
    %c0_96 = arith.constant 0 : index
    %c0_97 = arith.constant 0 : index
    %202 = vector.load %arg14[%c0_96, %c0_97] : memref<8x1xf32, #tpu.memory_space<vmem>>, vector<8x1xf32>
    %203 = vector.broadcast %202 : vector<8x1xf32> to vector<8x256xf32>
    %204 = arith.addf %201, %203 : vector<8x256xf32>
    %205 = tpu.iota {dimensions = array<i32: 1>} : vector<8x512xi32>
    %c0_i32_98 = arith.constant 0 : i32
    %206 = vector.broadcast %c0_i32_98 : i32 to vector<8x512xi32>
    %207 = arith.addi %205, %206 : vector<8x512xi32>
    %c0_i32_99 = arith.constant 0 : i32
    %208 = vector.broadcast %c0_i32_99 : i32 to vector<8x512xi32>
    %209 = arith.cmpi sge, %207, %208 : vector<8x512xi32>
    %c444_i32_100 = arith.constant 444 : i32
    %210 = vector.broadcast %c444_i32_100 : i32 to vector<8x512xi32>
    %211 = arith.cmpi slt, %207, %210 : vector<8x512xi32>
    %212 = arith.andi %209, %211 : vector<8x512xi1>
    %cst_101 = arith.constant 0.000000e+00 : f32
    %213 = vector.broadcast %cst_101 : f32 to vector<8x512xf32>
    %214 = arith.select %212, %117, %213 : vector<8x512xi1>, vector<8x512xf32>
    %c511_i32_102 = arith.constant 511 : i32
    %215 = tpu.dynamic_rotate %117 by %c511_i32_102 dim 1 : vector<8x512xf32>, i32 -> vector<8x512xf32>
    %c1_i32_103 = arith.constant 1 : i32
    %216 = vector.broadcast %c1_i32_103 : i32 to vector<8x512xi32>
    %217 = arith.addi %205, %216 : vector<8x512xi32>
    %c0_i32_104 = arith.constant 0 : i32
    %218 = vector.broadcast %c0_i32_104 : i32 to vector<8x512xi32>
    %219 = arith.cmpi sge, %217, %218 : vector<8x512xi32>
    %c444_i32_105 = arith.constant 444 : i32
    %220 = vector.broadcast %c444_i32_105 : i32 to vector<8x512xi32>
    %221 = arith.cmpi slt, %217, %220 : vector<8x512xi32>
    %222 = arith.andi %219, %221 : vector<8x512xi1>
    %cst_106 = arith.constant 0.000000e+00 : f32
    %223 = vector.broadcast %cst_106 : f32 to vector<8x512xf32>
    %224 = arith.select %222, %215, %223 : vector<8x512xi1>, vector<8x512xf32>
    %225 = arith.maximumf %214, %224 : vector<8x512xf32>
    %c0_107 = arith.constant 0 : index
    %c0_108 = arith.constant 0 : index
    %226 = vector.load %arg12[%c0_107, %c0_108] : memref<512x256xbf16, #tpu.memory_space<vmem>>, vector<512x256xbf16>
    %227 = arith.extf %226 : vector<512x256xbf16> to vector<512x256xf32>
    %cst_109 = arith.constant dense<0.000000e+00> : vector<8x256xf32>
    %228 = tpu.matmul %225, %227, %cst_109 {dimension_numbers = #tpu.dot_dimension_numbers<[1], [0], [0], [1], [0, 0, 1, 1], [], []>} : vector<8x512xf32>, vector<512x256xf32>, vector<8x256xf32> -> vector<8x256xf32>
    %229 = arith.addf %204, %228 : vector<8x256xf32>
    %c0_110 = arith.constant 0 : index
    %c0_111 = arith.constant 0 : index
    %230 = vector.load %arg15[%c0_110, %c0_111] : memref<8x1xf32, #tpu.memory_space<vmem>>, vector<8x1xf32>
    %231 = vector.broadcast %230 : vector<8x1xf32> to vector<8x256xf32>
    %232 = arith.mulf %229, %231 : vector<8x256xf32>
    %c0_112 = arith.constant 0 : index
    %c0_113 = arith.constant 0 : index
    %233 = vector.load %arg16[%c0_112, %c0_113] : memref<8x1xf32, #tpu.memory_space<vmem>>, vector<8x1xf32>
    %234 = vector.broadcast %233 : vector<8x1xf32> to vector<8x256xf32>
    %235 = arith.addf %232, %234 : vector<8x256xf32>
    %cst_114 = arith.constant 0.000000e+00 : f32
    %236 = vector.broadcast %cst_114 : f32 to vector<8x256xf32>
    %237 = arith.maximumf %235, %236 : vector<8x256xf32>
    %238 = tpu.iota {dimensions = array<i32: 1>} : vector<8x256xi32>
    %c1_i32_115 = arith.constant 1 : i32
    %239 = tpu.dynamic_rotate %237 by %c1_i32_115 dim 1 : vector<8x256xf32>, i32 -> vector<8x256xf32>
    %c-1_i32_116 = arith.constant -1 : i32
    %240 = vector.broadcast %c-1_i32_116 : i32 to vector<8x256xi32>
    %241 = arith.addi %238, %240 : vector<8x256xi32>
    %c0_i32_117 = arith.constant 0 : i32
    %242 = vector.broadcast %c0_i32_117 : i32 to vector<8x256xi32>
    %243 = arith.cmpi sge, %241, %242 : vector<8x256xi32>
    %c222_i32_118 = arith.constant 222 : i32
    %244 = vector.broadcast %c222_i32_118 : i32 to vector<8x256xi32>
    %245 = arith.cmpi slt, %241, %244 : vector<8x256xi32>
    %246 = arith.andi %243, %245 : vector<8x256xi1>
    %cst_119 = arith.constant 0.000000e+00 : f32
    %247 = vector.broadcast %cst_119 : f32 to vector<8x256xf32>
    %248 = arith.select %246, %239, %247 : vector<8x256xi1>, vector<8x256xf32>
    %c0_i32_120 = arith.constant 0 : i32
    %249 = vector.broadcast %c0_i32_120 : i32 to vector<8x256xi32>
    %250 = arith.addi %238, %249 : vector<8x256xi32>
    %c0_i32_121 = arith.constant 0 : i32
    %251 = vector.broadcast %c0_i32_121 : i32 to vector<8x256xi32>
    %252 = arith.cmpi sge, %250, %251 : vector<8x256xi32>
    %c222_i32_122 = arith.constant 222 : i32
    %253 = vector.broadcast %c222_i32_122 : i32 to vector<8x256xi32>
    %254 = arith.cmpi slt, %250, %253 : vector<8x256xi32>
    %255 = arith.andi %252, %254 : vector<8x256xi1>
    %cst_123 = arith.constant 0.000000e+00 : f32
    %256 = vector.broadcast %cst_123 : f32 to vector<8x256xf32>
    %257 = arith.select %255, %237, %256 : vector<8x256xi1>, vector<8x256xf32>
    %c255_i32_124 = arith.constant 255 : i32
    %258 = tpu.dynamic_rotate %237 by %c255_i32_124 dim 1 : vector<8x256xf32>, i32 -> vector<8x256xf32>
    %c1_i32_125 = arith.constant 1 : i32
    %259 = vector.broadcast %c1_i32_125 : i32 to vector<8x256xi32>
    %260 = arith.addi %238, %259 : vector<8x256xi32>
    %c0_i32_126 = arith.constant 0 : i32
    %261 = vector.broadcast %c0_i32_126 : i32 to vector<8x256xi32>
    %262 = arith.cmpi sge, %260, %261 : vector<8x256xi32>
    %c222_i32_127 = arith.constant 222 : i32
    %263 = vector.broadcast %c222_i32_127 : i32 to vector<8x256xi32>
    %264 = arith.cmpi slt, %260, %263 : vector<8x256xi32>
    %265 = arith.andi %262, %264 : vector<8x256xi1>
    %cst_128 = arith.constant 0.000000e+00 : f32
    %266 = vector.broadcast %cst_128 : f32 to vector<8x256xf32>
    %267 = arith.select %265, %258, %266 : vector<8x256xi1>, vector<8x256xf32>
    %268 = tpu.concatenate %248, %257, %267 in 0 : vector<8x256xf32>, vector<8x256xf32>, vector<8x256xf32> -> vector<24x256xf32>
    %269 = arith.truncf %268 : vector<24x256xf32> to vector<24x256xbf16>
    %c0_129 = arith.constant 0 : index
    %c0_130 = arith.constant 0 : index
    %270 = vector.load %arg17[%c0_129, %c0_130] : memref<16x24xbf16, #tpu.memory_space<vmem>>, vector<16x24xbf16>
    %cst_131 = arith.constant dense<0.000000e+00> : vector<16x256xf32>
    %271 = tpu.matmul %270, %269, %cst_131 {dimension_numbers = #tpu.dot_dimension_numbers<[1], [0], [0], [1], [0, 0, 1, 1], [], []>} : vector<16x24xbf16>, vector<24x256xbf16>, vector<16x256xf32> -> vector<16x256xf32>
    %c0_132 = arith.constant 0 : index
    %c0_133 = arith.constant 0 : index
    %272 = vector.load %arg18[%c0_132, %c0_133] : memref<16x1xf32, #tpu.memory_space<vmem>>, vector<16x1xf32>
    %273 = vector.broadcast %272 : vector<16x1xf32> to vector<16x256xf32>
    %274 = arith.addf %271, %273 : vector<16x256xf32>
    %cst_134 = arith.constant 0.000000e+00 : f32
    %275 = vector.broadcast %cst_134 : f32 to vector<16x256xf32>
    %276 = arith.maximumf %274, %275 : vector<16x256xf32>
    %277 = tpu.iota {dimensions = array<i32: 1>} : vector<16x256xi32>
    %c1_i32_135 = arith.constant 1 : i32
    %278 = tpu.dynamic_rotate %276 by %c1_i32_135 dim 1 : vector<16x256xf32>, i32 -> vector<16x256xf32>
    %c-1_i32_136 = arith.constant -1 : i32
    %279 = vector.broadcast %c-1_i32_136 : i32 to vector<16x256xi32>
    %280 = arith.addi %277, %279 : vector<16x256xi32>
    %c0_i32_137 = arith.constant 0 : i32
    %281 = vector.broadcast %c0_i32_137 : i32 to vector<16x256xi32>
    %282 = arith.cmpi sge, %280, %281 : vector<16x256xi32>
    %c222_i32_138 = arith.constant 222 : i32
    %283 = vector.broadcast %c222_i32_138 : i32 to vector<16x256xi32>
    %284 = arith.cmpi slt, %280, %283 : vector<16x256xi32>
    %285 = arith.andi %282, %284 : vector<16x256xi1>
    %cst_139 = arith.constant 0.000000e+00 : f32
    %286 = vector.broadcast %cst_139 : f32 to vector<16x256xf32>
    %287 = arith.select %285, %278, %286 : vector<16x256xi1>, vector<16x256xf32>
    %c0_i32_140 = arith.constant 0 : i32
    %288 = vector.broadcast %c0_i32_140 : i32 to vector<16x256xi32>
    %289 = arith.addi %277, %288 : vector<16x256xi32>
    %c0_i32_141 = arith.constant 0 : i32
    %290 = vector.broadcast %c0_i32_141 : i32 to vector<16x256xi32>
    %291 = arith.cmpi sge, %289, %290 : vector<16x256xi32>
    %c222_i32_142 = arith.constant 222 : i32
    %292 = vector.broadcast %c222_i32_142 : i32 to vector<16x256xi32>
    %293 = arith.cmpi slt, %289, %292 : vector<16x256xi32>
    %294 = arith.andi %291, %293 : vector<16x256xi1>
    %cst_143 = arith.constant 0.000000e+00 : f32
    %295 = vector.broadcast %cst_143 : f32 to vector<16x256xf32>
    %296 = arith.select %294, %276, %295 : vector<16x256xi1>, vector<16x256xf32>
    %c255_i32_144 = arith.constant 255 : i32
    %297 = tpu.dynamic_rotate %276 by %c255_i32_144 dim 1 : vector<16x256xf32>, i32 -> vector<16x256xf32>
    %c1_i32_145 = arith.constant 1 : i32
    %298 = vector.broadcast %c1_i32_145 : i32 to vector<16x256xi32>
    %299 = arith.addi %277, %298 : vector<16x256xi32>
    %c0_i32_146 = arith.constant 0 : i32
    %300 = vector.broadcast %c0_i32_146 : i32 to vector<16x256xi32>
    %301 = arith.cmpi sge, %299, %300 : vector<16x256xi32>
    %c222_i32_147 = arith.constant 222 : i32
    %302 = vector.broadcast %c222_i32_147 : i32 to vector<16x256xi32>
    %303 = arith.cmpi slt, %299, %302 : vector<16x256xi32>
    %304 = arith.andi %301, %303 : vector<16x256xi1>
    %cst_148 = arith.constant 0.000000e+00 : f32
    %305 = vector.broadcast %cst_148 : f32 to vector<16x256xf32>
    %306 = arith.select %304, %297, %305 : vector<16x256xi1>, vector<16x256xf32>
    %307 = tpu.concatenate %287, %296, %306 in 0 : vector<16x256xf32>, vector<16x256xf32>, vector<16x256xf32> -> vector<48x256xf32>
    %308 = arith.truncf %307 : vector<48x256xf32> to vector<48x256xbf16>
    %c0_149 = arith.constant 0 : index
    %c0_150 = arith.constant 0 : index
    %309 = vector.load %arg19[%c0_149, %c0_150] : memref<16x48xbf16, #tpu.memory_space<vmem>>, vector<16x48xbf16>
    %cst_151 = arith.constant dense<0.000000e+00> : vector<16x256xf32>
    %310 = tpu.matmul %309, %308, %cst_151 {dimension_numbers = #tpu.dot_dimension_numbers<[1], [0], [0], [1], [0, 0, 1, 1], [], []>} : vector<16x48xbf16>, vector<48x256xbf16>, vector<16x256xf32> -> vector<16x256xf32>
    %c0_152 = arith.constant 0 : index
    %c0_153 = arith.constant 0 : index
    %311 = vector.load %arg20[%c0_152, %c0_153] : memref<16x1xf32, #tpu.memory_space<vmem>>, vector<16x1xf32>
    %312 = vector.broadcast %311 : vector<16x1xf32> to vector<16x256xf32>
    %313 = arith.addf %310, %312 : vector<16x256xf32>
    %c0_154 = arith.constant 0 : index
    %c0_155 = arith.constant 0 : index
    %314 = vector.load %arg21[%c0_154, %c0_155] : memref<16x8xf32, #tpu.memory_space<vmem>>, vector<16x8xf32>
    %cst_156 = arith.constant dense<0.000000e+00> : vector<16x256xf32>
    %315 = tpu.matmul %314, %229, %cst_156 {dimension_numbers = #tpu.dot_dimension_numbers<[1], [0], [0], [1], [0, 0, 1, 1], [], []>} : vector<16x8xf32>, vector<8x256xf32>, vector<16x256xf32> -> vector<16x256xf32>
    %316 = arith.addf %313, %315 : vector<16x256xf32>
    %c0_157 = arith.constant 0 : index
    %c0_158 = arith.constant 0 : index
    %317 = vector.load %arg22[%c0_157, %c0_158] : memref<16x1xf32, #tpu.memory_space<vmem>>, vector<16x1xf32>
    %318 = vector.broadcast %317 : vector<16x1xf32> to vector<16x256xf32>
    %319 = arith.mulf %316, %318 : vector<16x256xf32>
    %c0_159 = arith.constant 0 : index
    %c0_160 = arith.constant 0 : index
    %320 = vector.load %arg23[%c0_159, %c0_160] : memref<16x1xf32, #tpu.memory_space<vmem>>, vector<16x1xf32>
    %321 = vector.broadcast %320 : vector<16x1xf32> to vector<16x256xf32>
    %322 = arith.addf %319, %321 : vector<16x256xf32>
    %cst_161 = arith.constant 0.000000e+00 : f32
    %323 = vector.broadcast %cst_161 : f32 to vector<16x256xf32>
    %324 = arith.maximumf %322, %323 : vector<16x256xf32>
    %cst_162 = arith.constant dense<0.000000e+00> : vector<256xf32>
    %325 = vector.multi_reduction <add>, %324, %cst_162 [0] : vector<16x256xf32> to vector<256xf32>
    %326 = vector.shape_cast %325 : vector<256xf32> to vector<1x256xf32>
    %cst_163 = arith.constant 1.600000e+01 : f32
    %327 = vector.broadcast %cst_163 : f32 to vector<1x256xf32>
    %328 = arith.divf %326, %327 : vector<1x256xf32>
    %c0_164 = arith.constant 0 : index
    %c0_165 = arith.constant 0 : index
    %329 = vector.load %arg24[%c0_164, %c0_165] : memref<256x5xf32, #tpu.memory_space<vmem>>, vector<256x5xf32>
    %cst_166 = arith.constant dense<0.000000e+00> : vector<1x5xf32>
    %330 = tpu.matmul %328, %329, %cst_166 {dimension_numbers = #tpu.dot_dimension_numbers<[1], [0], [0], [1], [0, 0, 1, 1], [], []>} : vector<1x256xf32>, vector<256x5xf32>, vector<1x5xf32> -> vector<1x5xf32>
    %c0_167 = arith.constant 0 : index
    %c0_168 = arith.constant 0 : index
    %331 = vector.load %arg25[%c0_167, %c0_168] : memref<1x5xf32, #tpu.memory_space<vmem>>, vector<1x5xf32>
    %332 = arith.addf %330, %331 : vector<1x5xf32>
    %333 = arith.mulf %332, %332 : vector<1x5xf32>
    %cst_169 = arith.constant dense<0.000000e+00> : vector<1xf32>
    %334 = vector.multi_reduction <add>, %333, %cst_169 [1] : vector<1x5xf32> to vector<1xf32>
    %335 = vector.shape_cast %334 : vector<1xf32> to vector<1x1xf32>
    %cst_170 = arith.constant 1.000000e-24 : f32
    %336 = vector.broadcast %cst_170 : f32 to vector<1x1xf32>
    %337 = arith.maximumf %335, %336 : vector<1x1xf32>
    %338 = math.rsqrt %337 : vector<1x1xf32>
    %339 = vector.broadcast %338 : vector<1x1xf32> to vector<1x5xf32>
    %340 = arith.mulf %332, %339 : vector<1x5xf32>
    %c0_171 = arith.constant 0 : index
    %c0_172 = arith.constant 0 : index
    %c0_173 = arith.constant 0 : index
    %341 = vector.load %arg26[%c0_171, %c0_172, %c0_173] : memref<1x1x5xf32, #tpu.memory_space<vmem>>, vector<1x1x5xf32>
    %342 = vector.shape_cast %341 : vector<1x1x5xf32> to vector<1x5xf32>
    %343 = vector.shape_cast %340 : vector<1x5xf32> to vector<1x1x5xf32>
    tpu.vector_store %arg26[%c0_171, %c0_172, %c0_173], %343 {strides = array<i32>} : memref<1x1x5xf32, #tpu.memory_space<vmem>>, vector<1x1x5xf32>,
    return
  }
  func.func @transform_0(%arg0: i32) -> (i32, i32, i32) {
    %c0_i32 = arith.constant 0 : i32
    %c0_i32_0 = arith.constant 0 : i32
    %c0_i32_1 = arith.constant 0 : i32
    return %arg0, %c0_i32, %c0_i32_0 : i32, i32, i32
  }
  func.func @transform_1(%arg0: i32) -> (i32, i32) {
    %c0_i32 = arith.constant 0 : i32
    %c0_i32_0 = arith.constant 0 : i32
    %c0_i32_1 = arith.constant 0 : i32
    return %c0_i32, %c0_i32_0 : i32, i32
  }
  func.func @transform_2(%arg0: i32) -> (i32, i32) {
    %c0_i32 = arith.constant 0 : i32
    %c0_i32_0 = arith.constant 0 : i32
    %c0_i32_1 = arith.constant 0 : i32
    return %c0_i32, %c0_i32_0 : i32, i32
  }
  func.func @transform_3(%arg0: i32) -> (i32, i32) {
    %c0_i32 = arith.constant 0 : i32
    %c0_i32_0 = arith.constant 0 : i32
    %c0_i32_1 = arith.constant 0 : i32
    return %c0_i32, %c0_i32_0 : i32, i32
  }
  func.func @transform_4(%arg0: i32) -> (i32, i32) {
    %c0_i32 = arith.constant 0 : i32
    %c0_i32_0 = arith.constant 0 : i32
    %c0_i32_1 = arith.constant 0 : i32
    return %c0_i32, %c0_i32_0 : i32, i32
  }
  func.func @transform_5(%arg0: i32) -> (i32, i32) {
    %c0_i32 = arith.constant 0 : i32
    %c0_i32_0 = arith.constant 0 : i32
    %c0_i32_1 = arith.constant 0 : i32
    return %c0_i32, %c0_i32_0 : i32, i32
  }
  func.func @transform_6(%arg0: i32) -> (i32, i32) {
    %c0_i32 = arith.constant 0 : i32
    %c0_i32_0 = arith.constant 0 : i32
    %c0_i32_1 = arith.constant 0 : i32
    return %c0_i32, %c0_i32_0 : i32, i32
  }
  func.func @transform_7(%arg0: i32) -> (i32, i32) {
    %c0_i32 = arith.constant 0 : i32
    %c0_i32_0 = arith.constant 0 : i32
    %c0_i32_1 = arith.constant 0 : i32
    return %c0_i32, %c0_i32_0 : i32, i32
  }
  func.func @transform_8(%arg0: i32) -> (i32, i32) {
    %c0_i32 = arith.constant 0 : i32
    %c0_i32_0 = arith.constant 0 : i32
    %c0_i32_1 = arith.constant 0 : i32
    return %c0_i32, %c0_i32_0 : i32, i32
  }
  func.func @transform_9(%arg0: i32) -> (i32, i32) {
    %c0_i32 = arith.constant 0 : i32
    %c0_i32_0 = arith.constant 0 : i32
    %c0_i32_1 = arith.constant 0 : i32
    return %c0_i32, %c0_i32_0 : i32, i32
  }
  func.func @transform_10(%arg0: i32) -> (i32, i32) {
    %c0_i32 = arith.constant 0 : i32
    %c0_i32_0 = arith.constant 0 : i32
    %c0_i32_1 = arith.constant 0 : i32
    return %c0_i32, %c0_i32_0 : i32, i32
  }
  func.func @transform_11(%arg0: i32) -> (i32, i32) {
    %c0_i32 = arith.constant 0 : i32
    %c0_i32_0 = arith.constant 0 : i32
    %c0_i32_1 = arith.constant 0 : i32
    return %c0_i32, %c0_i32_0 : i32, i32
  }
  func.func @transform_12(%arg0: i32) -> (i32, i32) {
    %c0_i32 = arith.constant 0 : i32
    %c0_i32_0 = arith.constant 0 : i32
    %c0_i32_1 = arith.constant 0 : i32
    return %c0_i32, %c0_i32_0 : i32, i32
  }
  func.func @transform_13(%arg0: i32) -> (i32, i32) {
    %c0_i32 = arith.constant 0 : i32
    %c0_i32_0 = arith.constant 0 : i32
    %c0_i32_1 = arith.constant 0 : i32
    return %c0_i32, %c0_i32_0 : i32, i32
  }
  func.func @transform_14(%arg0: i32) -> (i32, i32) {
    %c0_i32 = arith.constant 0 : i32
    %c0_i32_0 = arith.constant 0 : i32
    %c0_i32_1 = arith.constant 0 : i32
    return %c0_i32, %c0_i32_0 : i32, i32
  }
  func.func @transform_15(%arg0: i32) -> (i32, i32) {
    %c0_i32 = arith.constant 0 : i32
    %c0_i32_0 = arith.constant 0 : i32
    %c0_i32_1 = arith.constant 0 : i32
    return %c0_i32, %c0_i32_0 : i32, i32
  }
  func.func @transform_16(%arg0: i32) -> (i32, i32) {
    %c0_i32 = arith.constant 0 : i32
    %c0_i32_0 = arith.constant 0 : i32
    %c0_i32_1 = arith.constant 0 : i32
    return %c0_i32, %c0_i32_0 : i32, i32
  }
  func.func @transform_17(%arg0: i32) -> (i32, i32) {
    %c0_i32 = arith.constant 0 : i32
    %c0_i32_0 = arith.constant 0 : i32
    %c0_i32_1 = arith.constant 0 : i32
    return %c0_i32, %c0_i32_0 : i32, i32
  }
  func.func @transform_18(%arg0: i32) -> (i32, i32) {
    %c0_i32 = arith.constant 0 : i32
    %c0_i32_0 = arith.constant 0 : i32
    %c0_i32_1 = arith.constant 0 : i32
    return %c0_i32, %c0_i32_0 : i32, i32
  }
  func.func @transform_19(%arg0: i32) -> (i32, i32) {
    %c0_i32 = arith.constant 0 : i32
    %c0_i32_0 = arith.constant 0 : i32
    %c0_i32_1 = arith.constant 0 : i32
    return %c0_i32, %c0_i32_0 : i32, i32
  }
  func.func @transform_20(%arg0: i32) -> (i32, i32) {
    %c0_i32 = arith.constant 0 : i32
    %c0_i32_0 = arith.constant 0 : i32
    %c0_i32_1 = arith.constant 0 : i32
    return %c0_i32, %c0_i32_0 : i32, i32
  }
  func.func @transform_21(%arg0: i32) -> (i32, i32) {
    %c0_i32 = arith.constant 0 : i32
    %c0_i32_0 = arith.constant 0 : i32
    %c0_i32_1 = arith.constant 0 : i32
    return %c0_i32, %c0_i32_0 : i32, i32
  }
  func.func @transform_22(%arg0: i32) -> (i32, i32) {
    %c0_i32 = arith.constant 0 : i32
    %c0_i32_0 = arith.constant 0 : i32
    %c0_i32_1 = arith.constant 0 : i32
    return %c0_i32, %c0_i32_0 : i32, i32
  }
  func.func @transform_23(%arg0: i32) -> (i32, i32) {
    %c0_i32 = arith.constant 0 : i32
    %c0_i32_0 = arith.constant 0 : i32
    %c0_i32_1 = arith.constant 0 : i32
    return %c0_i32, %c0_i32_0 : i32, i32
  }
  func.func @transform_24(%arg0: i32) -> (i32, i32) {
    %c0_i32 = arith.constant 0 : i32
    %c0_i32_0 = arith.constant 0 : i32
    %c0_i32_1 = arith.constant 0 : i32
    return %c0_i32, %c0_i32_0 : i32, i32
  }
  func.func @transform_25(%arg0: i32) -> (i32, i32, i32) {
    %c0_i32 = arith.constant 0 : i32
    %c0_i32_0 = arith.constant 0 : i32
    %c0_i32_1 = arith.constant 0 : i32
    return %arg0, %c0_i32, %c0_i32_0 : i32, i32, i32
  }
}

</mosaic_0001>

<bundles_post_ra>
// kernel: _forward.1
= control target key start
LH: loop header
LB: loop body
LE: loop exit
PB: predicated region body
PF: predicated region fallthrough
CT: control target
= control target key end

     0   :  { %s5203_s0 = inlined_call_operand.vmem [shape: f32[2,8,512], index: 0, kind: input, shape index: {}]   ;;  %s5204_s1 = inlined_call_operand.hbm [shape: bf16[8,24], index: 1, kind: input, shape index: {}]   ;;  %s5205_s2 = inlined_call_operand.vmem [shape: f32[8,1], index: 2, kind: input, shape index: {}]   ;;  %s5206_s3 = inlined_call_operand.hbm [shape: bf16[8,24], index: 3, kind: input, shape index: {}]   ;;  %s5207_s4 = inlined_call_operand.vmem [shape: f32[8,1], index: 4, kind: input, shape index: {}]   ;;  %s5208_s5 = inlined_call_operand.hbm [shape: bf16[8,24], index: 5, kind: input, shape index: {}]   ;;  %s5209_s6 = inlined_call_operand.vmem [shape: f32[8,1], index: 6, kind: input, shape index: {}]   ;;  %s5210_s7 = inlined_call_operand.vmem [shape: f32[8,1], index: 7, kind: input, shape index: {}]   ;;  %s5211_s8 = inlined_call_operand.vmem [shape: f32[8,1], index: 8, kind: input, shape index: {}]   ;;  %s5212_s9 = inlined_call_operand.hbm [shape: bf16[8,24], index: 9, kind: input, shape index: {}]   ;;  %s5213_s10 = inlined_call_operand.vmem [shape: f32[8,1], index: 10, kind: input, shape index: {}]   ;;  %s5214_s11 = inlined_call_operand.vmem [shape: bf16[512,256], index: 11, kind: input, shape index: {}]   ;;  %s5215_s12 = inlined_call_operand.hbm [shape: bf16[8,24], index: 12, kind: input, shape index: {}]   ;;  %s5216_s13 = inlined_call_operand.vmem [shape: f32[8,1], index: 13, kind: input, shape index: {}]   ;;  %s5217_s14 = inlined_call_operand.vmem [shape: f32[8,1], index: 14, kind: input, shape index: {}]   ;;  %s5218_s15 = inlined_call_operand.vmem [shape: f32[8,1], index: 15, kind: input, shape index: {}]   ;;  %s5219_s16 = inlined_call_operand.vmem [shape: bf16[16,24], index: 16, kind: input, shape index: {}]   ;;  %s5220_s17 = inlined_call_operand.vmem [shape: f32[16,1], index: 17, kind: input, shape index: {}]   ;;  %s5221_s18 = inlined_call_operand.vmem [shape: bf16[16,48], index: 18, kind: input, shape index: {}]   ;;  %s5222_s19 = inlined_call_operand.vmem [shape: f32[16,1], index: 19, kind: input, shape index: {}]   ;;  %s5223_s20 = inlined_call_operand.vmem [shape: f32[16,8], index: 20, kind: input, shape index: {}]   ;;  %s5224_s21 = inlined_call_operand.vmem [shape: f32[16,1], index: 21, kind: input, shape index: {}]   ;;  %s5225_s22 = inlined_call_operand.vmem [shape: f32[16,1], index: 22, kind: input, shape index: {}]   ;;  %s5226_s23 = inlined_call_operand.vmem [shape: f32[256,5], index: 23, kind: input, shape index: {}]   ;;  %s5227_s24 = inlined_call_operand.vmem [shape: f32[1,5], index: 24, kind: input, shape index: {}]   ;;  %s5228_s25 = inlined_call_operand.hbm [shape: f32[2,1,5], index: 25, kind: output, shape index: {}]  }
   0x1   :  { %5240 = sst [smem:[#allocation24_spill]] %s5203_s0 }
   0x2   :  { %5241 = sst [smem:[#allocation25_spill]] %s5204_s1 }
   0x3   :  { %5242 = sst [smem:[#allocation26_spill]] %s5205_s2 }
   0x4   :  { %5243 = sst [smem:[#allocation27_spill]] %s5206_s3 }
   0x5   :  { %5244 = sst [smem:[#allocation28_spill]] %s5207_s4 }
   0x6   :  { %5245 = sst [smem:[#allocation29_spill]] %s5208_s5 }
   0x7   :  { %5246 = sst [smem:[#allocation30_spill]] %s5209_s6 }
   0x8   :  { %5247 = sst [smem:[#allocation31_spill]] %s5210_s7 }
   0x9   :  { %5248 = sst [smem:[#allocation32_spill]] %s5211_s8 }
   0xa   :  { %5249 = sst [smem:[#allocation33_spill]] %s5212_s9 }
   0xb   :  { %5250 = sst [smem:[#allocation34_spill]] %s5226_s23 }
   0xc   :  { %5251 = sst [smem:[#allocation35_spill]] %s5227_s24 }
   0xd   :  { %5252 = sst [smem:[#allocation36_spill]] %s5228_s25 }
   0xe   :  { %30 = vsyncpa [#allocation3], 0 }
   0xf   :  { %31 = vsyncpa [#allocation6], 0 }
  0x10   :  { %32 = vsyncpa [#allocation9], 0 }
  0x11   :  { %33 = vsyncpa [#allocation4], 0 }
  0x12   :  { %35 = vsyncpa [#allocation4 + $0x1], 0  ;;  %s3797_s29 = smov 0   ;;  %s3799_s2 = smov 0  }
  0x13   :  { %s3801_s6 = smov 0   ;;  %s3803_s30 = smov 0  }
  0x14 LB: > { %5253 = sst [smem:[#allocation16_spill]] %s3642_s29  ;;  %s3818_s7 = sadd.s32 4294967295, %s3654_s30   ;;  %s3654_s30 = sphi %s3803_s30, %s5292_s30   ;;  %s3650_s6 = sphi %s3801_s6, %s5295_s6   ;;  %s3646_s2 = sphi %s3799_s2, %s5294_s2   ;;  %s3642_s29 = sphi %s3797_s29, %s5293_s29  }
  0x15   : > { %5254 = sst [smem:[#allocation17_spill]] %s3646_s2  ;;  %s2822_s3 = sadd.s32 4294967294, %s3654_s30  }
  0x16   : > { %5255 = sst [smem:[#allocation18_spill]] %s3650_s6  ;;  %s3822_s26 = sadd.s32 1, %s3654_s30  }
  0x17   : > { %5256 = sst [smem:[#allocation19_spill]] %s3654_s30  ;;  %s578_s1 = sadd.s32 1, %s3650_s6 }
  0x18   : > { %5257 = sst [smem:[#allocation20_spill]] %s3822_s26  ;;  %s575_s8 = ssub.s32 %s3654_s30, %s3822_s26 }
  0x19   : > { %p588_p0 = scmp.ne.s32.totalorder %s3650_s6, %s3646_s2  ;;  %p576_p1 = scmp.eq.s32.totalorder %s575_s8, 0 }
  0x1a   : > { %p589_p2 = scmp.eq.s32.totalorder %s3818_s7, 1  ;;  %p594_p3 = scmp.ne.s32.totalorder %s3646_s2, %s3642_s29 }
  0x1b   : > { %p595_p4 = scmp.eq.s32.totalorder %s2822_s3, 1  ;;  %p2823_p7 = scmp.ge.s32.totalorder %s3654_s30, 1 }
  0x1c   : > { %s3833_s27 = scalar_select %p576_p1, %s3650_s6, %s578_s1  }
  0x1d   : > { %p3835_p5 = por %p589_p2, %p588_p0  ;;  %p3839_p6 = por %p595_p4, %p594_p3 }
  0x1e   : > { %5258 = sst [smem:[#allocation21_spill]] %s3833_s27  ;;  %p602_p8 = scmp.lt.s32.totalorder %s3654_s30, 3 }
  0x1f   : > { %s5259_s4 = scalar_select %p3835_p5, 1, 0 }
  0x20   : > { %s5261_s28 = scalar_select %p3839_p6, 1, 0 }
  0x21   : > { %5260 = sst [smem:[#allocation22_spill]] %s5259_s4  ;;  %p3284_p9 = scmp.eq.s32.totalorder %s3818_s7, 0 }
  0x22   : > { %5262 = sst [smem:[#allocation23_spill]] %s5261_s28  ;;  %p3846_p10 = pnand %p2823_p7, %p602_p8 }
  0x23   : > { %s5264_s3 = sld [smem:[#allocation27_spill]]  ;;  %s3656_s8 = smov [#allocation5]  }
  0x24   : > { %p3264_p11 = pneg %p3846_p10  ;;  %s631_s27 = sshll.u32 %s3656_s8, 4  ;;  %s632_s27 = int_to_ptr.vmem [resolvable:$true] %s631_s27 }
  0x25   : > { %s5265_s28 = sld [smem:[#allocation33_spill]]  ;;  %s3657_s25 = smov [#allocation8]  }
  0x26   : > { %p3860_p12 = pnand %p3284_p9, %p3264_p11  ;;  %s667_s8 = sshll.u32 %s3657_s25, 4  ;;  %s668_s8 = int_to_ptr.vmem [resolvable:$true] %s667_s8 }
  0x27   : > { %s3658_s24 = smov [#allocation2]   ;;  %s3659_s5 = smov [#allocation7]  }
  0x28   : > { %s616_s23 = sshll.u32 %s3658_s24, 4  ;;  %s646_s0 = sshll.u32 %s3659_s5, 4  ;;  %s617_s23 = int_to_ptr.vmem [resolvable:$true] %s616_s23  ;;  %s647_s0 = int_to_ptr.vmem [resolvable:$true] %s646_s0 }
  0x29   : > { %s629_s1 = sshll.u32 %s5264_s3, 4  ;;  %s5267_s3 = sld [smem:[#allocation25_spill]]  ;;  %s630_s1 = int_to_ptr.hbm [resolvable:$true] %s629_s1 }
  0x2a   : > { %3270 = dma.hbm_to_vmem [thread:$0]  (!%p3860_p12), %s630_s1, 64, %s632_s27, [#allocation6]  }
  0x2b   : > { %s665_s29 = sshll.u32 %s5265_s28, 4  ;;  %s5268_s28 = sld [smem:[#allocation29_spill]]  ;;  %s666_s29 = int_to_ptr.hbm [resolvable:$true] %s665_s29 }
  0x2c   : > { %3276 = dma.hbm_to_vmem [thread:$0]  (!%p3860_p12), %s666_s29, 64, %s668_s8, [#allocation9]  }
  0x2d   : > { %s683_s27 = sshll.u32 %s5215_s12, 4  ;;  %s3660_s29 = smov [#allocation10]   ;;  %s684_s27 = int_to_ptr.hbm [resolvable:$true] %s683_s27 }
  0x2e   : > { %s685_s1 = sshll.u32 %s3660_s29, 4  ;;  %s686_s1 = int_to_ptr.vmem [resolvable:$true] %s685_s1 }
  0x2f   : > { %s614_s4 = sshll.u32 %s5267_s3, 4  ;;  %742 = sbr.rel (%p3846_p10) target bundleno = 2491 (0x9bb), region = 120  ;;  %s615_s4 = int_to_ptr.hbm [resolvable:$true] %s614_s4 }
  0x30   : > { %3267 = dma.hbm_to_vmem [thread:$0]  (!%p3860_p12), %s615_s4, 64, %s617_s23, [#allocation3]  }
  0x31   : > { %s644_s2 = sshll.u32 %s5268_s28, 4  ;;  %s645_s2 = int_to_ptr.hbm [resolvable:$true] %s644_s2 }
  0x32   : > { %3273 = dma.hbm_to_vmem [thread:$0]  (!%p3860_p12), %s645_s2, 64, %s647_s0, [#allocation6]  }
  0x33   : > { %3279 = dma.hbm_to_vmem [thread:$0]  (!%p3860_p12), %s684_s27, 64, %s686_s1, [#allocation9]  }
  0x34   : > { %3625 = dma.done.wait (%p3284_p9), [#allocation3], 64  }
  0x35   : > { %3627 = vsyncadd (%p3284_p9), [#allocation3], 4294967232 }
  0x36   : > { %3629 = dma.done.wait (%p3284_p9), [#allocation6], 128  }
  0x37   : > { %3631 = vsyncadd (%p3284_p9), [#allocation6], 4294967168 }
  0x38   : > { %3633 = dma.done.wait (%p3284_p9), [#allocation9], 128  }
  0x39   : > { %3635 = vsyncadd (%p3284_p9), [#allocation9], 4294967168  ;;  %p830_p13 = scmp.lt.s32.totalorder %s3818_s7, 1  ;;  %s5269_s4 = sld [smem:[#allocation24_spill]]  ;;  %v3663_v6 = vmov 0   ;;  %v840_v7 = vlaneseq  ;;  %vm946_vm2 = vcmask 1043456  }
  0x3a   : > { %s3661_s8 = smov 127   ;;  %s3662_s6 = smov 1   ;;  %3348 = vset.pattern.permute.xlu0 %v3663_v6  ;;  %3359 = vset.pattern.permute.xlu2 %v3663_v6  ;;  %v935_v34 = vld [vmem:[#allocation2] sm:$0xf]  ;;  %vm942_vm4 = vcmask 195584   ;;  %vm3664_vm8 = vmmov 1  }
  0x3b   : > { %s831_s23 = scalar_select %p830_p13, %s3818_s7, 1  ;;  %3370 = vset.pattern.permute.xlu1 %v3663_v6  ;;  %v3920_v8 = vand.u32 127, %v840_v7 }
  0x3c   : > { %s5270_s5 = sld [smem:[#allocation26_spill]]  ;;  %s3665_s26 = smov 126  }
  0x3d   : > { %s3175_s24 = sshll.u32 %s831_s23, 5  ;;  %v3926_v10 = vadd.s32 384, %v3920_v8  ;;  %vm853_vm0 = vcmp.lt.s32.totalorder %v3920_v8, 1  ;;  %vm902_vm1 = vcmp.lt.s32.totalorder %v3920_v8, 127  ;;  %v3940_v24 = vadd.s32 4294967295, %v3920_v8  ;;  %s5275_s3 = sld [smem:[#allocation28_spill]] }
  0x3e   : > { %s5276_s1 = sld [smem:[#allocation32_spill]]  ;;  %vm1311_vm11 = vcmp.lt.s32.totalorder %v3920_v8, 126 }
  0x3f   : > { %s834_s9 = scalar_lea.vmem %s5269_s4, %s3175_s24  ;;  %v3933_v19 = vadd.s32 1, %v3926_v10  ;;  %v861_v29 = vadd.s32 4294967295, %v3926_v10  ;;  %vm862_vm5 = vcmp.ge.s32.totalorder %v3940_v24, 0  ;;  %vm885_vm7 = vcmp.lt.s32.totalorder %v3926_v10, 444  ;;  %s5277_s2 = sld [smem:[#allocation30_spill]] }
  0x40   : > { %v837_v0 = vld [vmem:[%s834_s9 + $0x8] sm:$0xff]  ;;  %v3902_v1 = vld [vmem:[%s834_s9 + $0x10] sm:$0xff]  ;;  %v3904_v2 = vld [vmem:[%s834_s9] sm:$0xff]  ;;  %s5283_s30 = sld [smem:[#allocation34_spill]] }
  0x41   : > { %v3338_v3 = vpack.i.bf16 %v3902_v1, %v837_v0  ;;  %v3343_v4 = vpack.i.bf16 %v837_v0, %v3904_v2  ;;  %v3908_v5 = vld [vmem:[%s834_s9 + $0x18] sm:$0xff]  ;;  %vm918_vm3 = vcmp.lt.s32.totalorder %v3933_v19, 444  ;;  %vm869_vm6 = vcmp.lt.s32.totalorder %v861_v29, 444  ;;  %vm3962_vm9 = vmpackc.low %vm3664_vm8, %vm862_vm5  ;;  %s5278_s9 = sld [smem:[#allocation31_spill]] }
  0x42   : > { %900 = vrot.lane.b32.xlu2 %v3908_v5, %s3661_s8  ;;  %v936_v9 = vld [vmem:[%s5270_s5] sm:$0xff]  ;;  %vm3970_vm10 = vmpackc.low %vm885_vm7, %vm869_vm6  ;;  %s5287_s0 = sld [smem:[#allocation36_spill]] }
  0x43   : > { %3339 = vrot.lane.b32.xlu0 %v3338_v3, %s3661_s8  ;;  %3344 = vrot.lane.b32.xlu1 %v3343_v4, %s3662_s6  ;;  %vm4154_vm13 = vmpackc.low %vm918_vm3, %vm885_vm7 }
  0x46   : > { %s5284_s4 = smov %s5283_s30 }
  0x48   : > { %s2713_s25 = scalar_lea.hbm %s5287_s0, %s3818_s7 }
  0x49   : > { %s2717_s29 = sshll.u32 %s2713_s25, 4  ;;  %s2718_s29 = int_to_ptr.hbm [resolvable:$true] %s2717_s29 }
  0x4a   : > { %849 = vrot.lane.b32.xlu2 %v3902_v1, %s3662_s6  ;;  %s3594_s23 = sshra.s32 %s2718_s29, 4  ;;  %s3595_s23 = int_to_ptr.hbm [resolvable:$true] %s3594_s23 }
  0x4b   : > { %851 = vrot.lane.b32.xlu1 %v3908_v5, %s3662_s6  ;;  %894 = vrot.lane.b32.xlu0 %v3904_v2, %s3661_s8  ;;  %s3596_s24 = scalar_lea.hbm %s3595_s23, 1  ;;  %p3601_p3 = scmp.lt.s32.totalorder %s3595_s23, %s5287_s0 }
  0x4c   : > { %p3597_p0 = scmp.ne.s32.totalorder %s3595_s23, %s3596_s24 }
  0x4e   : > { %p3598_p1 = pnand %p3597_p0, %p3835_p5 }
  0x50   : > { %p3599_p2 = pneg %p3598_p1 }
  0x53   : > { %939 = vperm.xlu0 %3348, %v936_v9   ;;  %v1060_v9 = vld [vmem:[%s5275_s3] sm:$0xff] }
  0x9c   : > { %v901_v13 = vpop.permute.xlu2 %900 }
  0xa4   : > { %v850_v33 = vpop.permute.xlu2 %849 }
  0xb5   : > { %v3340_v11 = vpop.permute.xlu0 %3339  ;;  %v3345_v12 = vpop.permute.xlu1 %3344 }
  0xb6   : > { %v3342_v14 = vunpack.i.h.bf16 %v3340_v11  ;;  %v3341_v15 = vunpack.i.l.bf16 %v3340_v11  ;;  %v3347_v16 = vunpack.i.h.bf16 %v3345_v12  ;;  %v3346_v17 = vunpack.i.l.bf16 %v3345_v12 }
  0xb8   : > { %v904_v18 = vsel %vm902_vm1, %v3341_v15, %v3342_v14  ;;  %v856_v21 = vsel %vm853_vm0, %v3346_v17, %v3347_v16  ;;  %v903_v32 = vsel %vm902_vm1, %v3342_v14, %v901_v13  ;;  %v855_v45 = vsel %vm853_vm0, %v3347_v16, %v850_v33 }
  0xb9   : > { %v932_v20 = vpack.c.bf16 %v904_v18, %v904_v18  ;;  %v928_v23 = vpack.c.bf16 %v837_v0, %v856_v21  ;;  %v933_v40 = vpack.c.bf16 %v903_v32, %v903_v32  ;;  %v929_v47 = vpack.c.bf16 %v3902_v1, %v855_v45 }
  0xbb   : > { %v951_v22 = vsel %vm946_vm2, %v932_v20, 0  ;;  %v954_v46 = vsel %vm946_vm2, %v933_v40, 0 }
  0xbc   : > { %978 = vmatpush.bf16.msra.mxu3 %v951_v22 }
  0xbd   : > { %v895_v25 = vpop.permute.xlu0 %894  ;;  %v852_v26 = vpop.permute.xlu1 %851 }
  0xbe   : > { %v905_v27 = vsel %vm902_vm1, %v895_v25, %v3341_v15  ;;  %v906_v28 = vsel %vm902_vm1, %v901_v13, %v895_v25  ;;  %v854_v36 = vsel %vm853_vm0, %v850_v33, %v852_v26  ;;  %v857_v37 = vsel %vm853_vm0, %v852_v26, %v3346_v17 }
  0xbf   : > { %v931_v30 = vpack.c.bf16 %v905_v27, %v905_v27  ;;  %v926_v31 = vsel %vm918_vm3, %v906_v28, 0.0  ;;  %v2839_v42 = vpack.c.bf16 %v3904_v2, %v857_v37  ;;  %v2845_v43 = vpack.c.bf16 %v3908_v5, %v854_v36 }
  0xc0   : > { %979 = vmatpush.bf16.msra.mxu3 %v928_v23  ;;  %v934_v35 = vpack.c.bf16 %v926_v31, %v926_v31 }
  0xc1   : > { %v948_v38 = vsel %vm946_vm2, %v931_v30, 0 }
  0xc2   : > { %965 = vmatpush.bf16.msra.mxu2 %v948_v38  ;;  %v957_v39 = vsel %vm946_vm2, %v934_v35, 0 }
  0xc3   : > { %2842 = vmatmul.msk.bf16.vlgmr.msra.gmra.mxu3 %vm942_vm4, %v935_v34 }
  0xc4   : > { %1004 = vmatpush.bf16.msrb.mxu3 %v957_v39 }
  0xc5   : > { %v940_v48 = vpop.permute.xlu0 %939 }
  0xc6   : > { %2840 = vmatpush.bf16.msk.msra.mxu2 %vm3962_vm9, %v2839_v42 }
  0xc8   : > { %2846 = vmatpush.bf16.msk.msrb.mxu3 %vm3970_vm10, %v2845_v43 }
  0xc9   : > { %2841 = vmatmul.msk.bf16.vlgmr.msra.gmra.mxu2 %vm942_vm4, %v935_v34 }
  0xca   : > { %991 = vmatpush.bf16.msrb.mxu2 %v954_v46 }
  0xce   : > { %992 = vmatpush.bf16.msrb.mxu2 %v929_v47 }
  0xd3   : > { %2847 = vmatmul.msk.bf16.vlgmr.msrb.gmra.mxu3 %vm942_vm4, %v935_v34 }
  0xd9   : > { %2843 = vmatmul.msk.bf16.vlgmr.msrb.gmra.mxu2 %vm942_vm4, %v935_v34  ;;  %v1059_v34 = vld [vmem:[#allocation5] sm:$0xf] }
 0x146   : > { %v981_v49 = vpop.f32.mrf.mxu3 }
 0x147   : > { %v982_v50 = vadd.f32 %v981_v49, %v940_v48 }
 0x149   : > { %v3985_v51 = vmax.f32 %v982_v50, 0.0 }
 0x14b   : > { %1037 = vrot.lane.b32.xlu0 %v3985_v51, %s3661_s8 }
 0x14c   : > { %v968_v52 = vpop.f32.mrf.mxu2 }
 0x14d   : > { %v969_v55 = vadd.f32 %v968_v52, %v940_v48 }
 0x14e   : > { %v983_v53 = vpop.f32.mrf.mxu3 }
 0x14f   : > { %v3989_v58 = vmax.f32 %v969_v55, 0.0 }
 0x154   : > { %v970_v54 = vpop.f32.mrf.mxu2 }
 0x156   : > { %v1007_v56 = vpop.f32.mrf.mxu3 }
 0x157   : > { %v1008_v57 = vadd.f32 %v1007_v56, %v940_v48 }
 0x159   : > { %v3991_v59 = vmax.f32 %v1008_v57, 0.0 }
 0x15b   : > { %v3349_v60 = vpack.i.bf16 %v3991_v59, %v3989_v58 }
 0x15c   : > { %v994_v61 = vpop.f32.mrf.mxu2 }
 0x15d   : > { %v995_v62 = vadd.f32 %v994_v61, %v940_v48  ;;  %3350 = vrot.lane.b32.xlu1 %v3349_v60, %s3661_s8 }
 0x15e   : > { %v1009_v63 = vpop.f32.mrf.mxu3 }
 0x15f   : > { %v3996_v0 = vmax.f32 %v995_v62, 0.0 }
 0x161   : > { %1039 = vrot.lane.b32.xlu2 %v3996_v0, %s3661_s8  ;;  %v3354_v1 = vpack.i.bf16 %v3991_v59, %v3996_v0 }
 0x164   : > { %v996_v2 = vpop.f32.mrf.mxu2 }
 0x165   : > { %3355 = vrot.lane.b32.xlu1 %v3354_v1, %s3662_s6  ;;  %v1269_v1 = vld [vmem:[%s5276_s1] sm:$0xff] }
 0x166   : > { %v1182_v2 = vld [vmem:[%s5277_s2] sm:$0xff] }
 0x169   : > { %1017 = vrot.lane.b32.xlu2 %v3985_v51, %s3662_s6 }
 0x16d   : > { %1015 = vrot.lane.b32.xlu1 %v3989_v58, %s3662_s6 }
 0x171   : > { %1063 = vperm.xlu2 %3359, %v1060_v9  }
 0x1bb   : > { %v1040_v3 = vpop.permute.xlu2 %1039 }
 0x1bd   : > { %v1038_v4 = vpop.permute.xlu0 %1037 }
 0x1be   : > { %v1044_v5 = vsel %vm902_vm1, %v1038_v4, %v1040_v3 }
 0x1bf   : > { %v1056_v6 = vpack.c.bf16 %v1044_v5, %v1044_v5 }
 0x1c1   : > { %v1073_v7 = vsel %vm946_vm2, %v1056_v6, 0 }
 0x1c2   : > { %1100 = vmatpush.bf16.msra.mxu1 %v1073_v7 }
 0x1c3   : > { %v1018_v29 = vpop.permute.xlu2 %1017 }
 0x1cb   : > { %v1064_v40 = vpop.permute.xlu2 %1063 }
 0x1cf   : > { %v3351_v11 = vpop.permute.xlu1 %3350 }
 0x1d0   : > { %v3353_v12 = vunpack.i.h.bf16 %v3351_v11  ;;  %v3352_v13 = vunpack.i.l.bf16 %v3351_v11 }
 0x1d2   : > { %v1046_v14 = vsel %vm902_vm1, %v3353_v12, %v3352_v13  ;;  %v1045_v15 = vsel %vm902_vm1, %v3352_v13, %v1038_v4  ;;  %v1043_v16 = vsel %vm902_vm1, %v1040_v3, %v3353_v12  ;;  %v1259_v3 = vld [vmem:[%s5278_s9] sm:$0xff]  ;;  %s5285_s9 = sld [smem:[#allocation35_spill]] }
 0x1d3   : > { %v1055_v17 = vpack.c.bf16 %v1045_v15, %v1045_v15  ;;  %v1057_v18 = vpack.c.bf16 %v1043_v16, %v1043_v16  ;;  %v1050_v20 = vsel %vm918_vm3, %v1046_v14, 0.0 }
 0x1d4   : > { %v1058_v21 = vpack.c.bf16 %v1050_v20, %v1050_v20 }
 0x1d5   : > { %v1070_v22 = vsel %vm946_vm2, %v1055_v17, 0  ;;  %v1076_v23 = vsel %vm946_vm2, %v1057_v18, 0 }
 0x1d6   : > { %1087 = vmatpush.bf16.msra.mxu0 %v1070_v22  ;;  %1113 = vmatpush.bf16.msra.mxu2 %v1076_v23  ;;  %v1079_v25 = vsel %vm946_vm2, %v1058_v21, 0 }
 0x1d7   : > { %v3356_v26 = vpop.permute.xlu1 %3355  ;;  %1126 = vmatpush.bf16.msra.mxu3 %v1079_v25 }
 0x1d8   : > { %v3358_v27 = vunpack.i.h.bf16 %v3356_v26  ;;  %v3357_v28 = vunpack.i.l.bf16 %v3356_v26 }
 0x1da   : > { %v1023_v30 = vsel %vm853_vm0, %v3357_v28, %v3358_v27  ;;  %v1024_v31 = vsel %vm853_vm0, %v1018_v29, %v3357_v28 }
 0x1db   : > { %v2855_v32 = vpack.c.bf16 %v3991_v59, %v1023_v30  ;;  %v1053_v33 = vpack.c.bf16 %v3996_v0, %v1024_v31 }
 0x1dd   : > { %1114 = vmatpush.bf16.msra.mxu2 %v1053_v33  ;;  %2856 = vmatpush.bf16.msk.msra.mxu3 %vm3970_vm10, %v2855_v32 }
 0x1df   : > { %v1016_v35 = vpop.permute.xlu1 %1015 }
 0x1e0   : > { %v1025_v36 = vsel %vm853_vm0, %v1016_v35, %v1018_v29  ;;  %v1026_v37 = vsel %vm853_vm0, %v3358_v27, %v1016_v35  ;;  %2853 = vmatmul.msk.bf16.vlgmr.msra.gmra.mxu2 %vm942_vm4, %v1059_v34  ;;  %2857 = vmatmul.msk.bf16.vlgmr.msra.gmra.mxu3 %vm942_vm4, %v1059_v34 }
 0x1e1   : > { %v2849_v38 = vpack.c.bf16 %v3989_v58, %v1026_v37  ;;  %v1052_v39 = vpack.c.bf16 %v3985_v51, %v1025_v36  ;;  %v1181_v37 = vld [vmem:[#allocation7] sm:$0xf] }
 0x1e3   : > { %2850 = vmatpush.bf16.msk.msra.mxu0 %vm3962_vm9, %v2849_v38  ;;  %1101 = vmatpush.bf16.msra.mxu1 %v1052_v39 }
 0x1e6   : > { %2851 = vmatmul.msk.bf16.vlgmr.msra.gmra.mxu0 %vm942_vm4, %v1059_v34  ;;  %2852 = vmatmul.msk.bf16.vlgmr.msra.gmra.mxu1 %vm942_vm4, %v1059_v34 }
 0x263   : > { %v1090_v42 = vpop.f32.mrf.mxu0  ;;  %v1103_v43 = vpop.f32.mrf.mxu1 }
 0x264   : > { %v1091_v45 = vadd.f32 %v1090_v42, %v1064_v40  ;;  %v1104_v46 = vadd.f32 %v1103_v43, %v1064_v40  ;;  %v1116_v47 = vpop.f32.mrf.mxu2  ;;  %v1129_v48 = vpop.f32.mrf.mxu3 }
 0x265   : > { %v1117_v49 = vadd.f32 %v1116_v47, %v1064_v40  ;;  %v1130_v50 = vadd.f32 %v1129_v48, %v1064_v40 }
 0x266   : > { %v1133_v52 = vmax.f32 %v1091_v45, 0.0  ;;  %v1134_v53 = vmax.f32 %v1104_v46, 0.0 }
 0x267   : > { %v1135_v54 = vmax.f32 %v1117_v49, 0.0  ;;  %v1136_v55 = vmax.f32 %v1130_v50, 0.0 }
 0x269   : > { %1161 = vrot.lane.b32.xlu1 %v1135_v54, %s3661_s8  ;;  %v3360_v56 = vpack.i.bf16 %v1135_v54, %v1134_v53  ;;  %v3365_v57 = vpack.i.bf16 %v1136_v55, %v1133_v52 }
 0x26b   : > { %3361 = vrot.lane.b32.xlu2 %v3360_v56, %s3662_s6  ;;  %3366 = vrot.lane.b32.xlu0 %v3365_v57, %s3661_s8  ;;  %v1092_v60 = vpop.f32.mrf.mxu0  ;;  %v1105_v61 = vpop.f32.mrf.mxu1 }
 0x26c   : > { %v1118_v62 = vpop.f32.mrf.mxu2  ;;  %v1131_v63 = vpop.f32.mrf.mxu3 }
 0x271   : > { %1159 = vrot.lane.b32.xlu1 %v1134_v53, %s3661_s8 }
 0x273   : > { %1137 = vrot.lane.b32.xlu2 %v1133_v52, %s3662_s6  ;;  %1143 = vrot.lane.b32.xlu0 %v1136_v55, %s3662_s6 }
 0x279   : > { %1262 = vperm.xlu1 %3370, %v1259_v3  }
 0x27b   : > { %1272 = vperm.xlu2 %3359, %v1269_v1   ;;  %1185 = vperm.xlu0 %3348, %v1182_v2  }
 0x2c5   : > { %v3362_v4 = vpop.permute.xlu2 %3361 }
 0x2c6   : > { %v3364_v11 = vunpack.i.h.bf16 %v3362_v4  ;;  %v3363_v12 = vunpack.i.l.bf16 %v3362_v4 }
 0x2c8   : > { %v1146_v21 = vsel %vm853_vm0, %v3363_v12, %v3364_v11 }
 0x2c9   : > { %v1175_v31 = vpack.c.bf16 %v1135_v54, %v1146_v21 }
 0x2cd   : > { %v1138_v26 = vpop.permute.xlu2 %1137 }
 0x2ce   : > { %v1147_v36 = vsel %vm853_vm0, %v1138_v26, %v3363_v12 }
 0x2cf   : > { %v1174_v39 = vpack.c.bf16 %v1134_v53, %v1147_v36 }
 0x2db   : > { %v1162_v5 = vpop.permute.xlu1 %1161 }
 0x2dd   : > { %v3367_v6 = vpop.permute.xlu0 %3366 }
 0x2de   : > { %v3369_v7 = vunpack.i.h.bf16 %v3367_v6  ;;  %v3368_v9 = vunpack.i.l.bf16 %v3367_v6 }
 0x2e0   : > { %v1168_v13 = vsel %vm902_vm1, %v3369_v7, %v3368_v9  ;;  %v1165_v14 = vsel %vm902_vm1, %v1162_v5, %v3369_v7 }
 0x2e1   : > { %v1179_v15 = vpack.c.bf16 %v1165_v14, %v1165_v14  ;;  %v1172_v16 = vsel %vm918_vm3, %v1168_v13, 0.0  ;;  %v1947_v13 = vld [vmem:[%s5216_s13] sm:$0xff] }
 0x2e2   : > { %v1180_v17 = vpack.c.bf16 %v1172_v16, %v1172_v16  ;;  %v1319_v16 = vadd.s32 2, %v3926_v10 }
 0x2e3   : > { %v1160_v18 = vpop.permute.xlu1 %1159  ;;  %v1198_v20 = vsel %vm946_vm2, %v1179_v15, 0 }
 0x2e4   : > { %v1166_v22 = vsel %vm902_vm1, %v1160_v18, %v1162_v5  ;;  %v1167_v23 = vsel %vm902_vm1, %v3368_v9, %v1160_v18  ;;  %1235 = vmatpush.bf16.msrb.mxu2 %v1198_v20  ;;  %v1201_v25 = vsel %vm946_vm2, %v1180_v17, 0  ;;  %vm1327_vm12 = vcmp.lt.s32.totalorder %v1319_v16, 444  ;;  %v3237_v16 = vld [vmem:[%s5214_s11 + $0x1e4] sm:$0xf0] }
 0x2e5   : > { %v1177_v27 = vpack.c.bf16 %v1167_v23, %v1167_v23  ;;  %v1178_v28 = vpack.c.bf16 %v1166_v22, %v1166_v22  ;;  %v1144_v29 = vpop.permute.xlu0 %1143  ;;  %1248 = vmatpush.bf16.msrb.mxu3 %v1201_v25 }
 0x2e6   : > { %v1145_v30 = vsel %vm853_vm0, %v3364_v11, %v1144_v29  ;;  %v1148_v32 = vsel %vm853_vm0, %v1144_v29, %v1138_v26  ;;  %v1345_v11 = vld [vmem:[%s5213_s10] sm:$0xff] }
 0x2e7   : > { %v2865_v33 = vpack.c.bf16 %v1136_v55, %v1145_v30  ;;  %v1192_v34 = vsel %vm946_vm2, %v1177_v27, 0  ;;  %v1195_v35 = vsel %vm946_vm2, %v1178_v28, 0  ;;  %v2859_v38 = vpack.c.bf16 %v1133_v52, %v1148_v32  ;;  %v1273_v55 = vpop.permute.xlu2 %1272 }
 0x2e8   : > { %1209 = vmatpush.bf16.msrb.mxu0 %v1192_v34  ;;  %1222 = vmatpush.bf16.msrb.mxu1 %v1195_v35  ;;  %v3061_v35 = vld [vmem:[%s5214_s11 + $0x170] sm:$0xf] }
 0x2e9   : > { %1236 = vmatpush.bf16.msrb.mxu2 %v1175_v31  ;;  %2866 = vmatpush.bf16.msk.msrb.mxu3 %vm3970_vm10, %v2865_v33 }
 0x2eb   : > { %v1263_v46 = vpop.permute.xlu1 %1262 }
 0x2ec   : > { %2863 = vmatmul.msk.bf16.vlgmr.msrb.gmra.mxu2 %vm942_vm4, %v1181_v37  ;;  %2860 = vmatpush.bf16.msk.msrb.mxu0 %vm3962_vm9, %v2859_v38 }
 0x2ed   : > { %1223 = vmatpush.bf16.msrb.mxu1 %v1174_v39  ;;  %2867 = vmatmul.msk.bf16.vlgmr.msrb.gmra.mxu3 %vm942_vm4, %v1181_v37  ;;  %v1186_v40 = vpop.permute.xlu0 %1185 }
 0x2ef   : > { %2861 = vmatmul.msk.bf16.vlgmr.msrb.gmra.mxu0 %vm942_vm4, %v1181_v37 }
 0x2f0   : > { %2862 = vmatmul.msk.bf16.vlgmr.msrb.gmra.mxu1 %vm942_vm4, %v1181_v37 }
 0x36c   : > { %v1212_v42 = vpop.f32.mrf.mxu0 }
 0x36d   : > { %v1213_v43 = vadd.f32 %v1212_v42, %v1186_v40  ;;  %v1225_v44 = vpop.f32.mrf.mxu1 }
 0x36e   : > { %v1226_v45 = vadd.f32 %v1225_v44, %v1186_v40  ;;  %v2933_v44 = vld [vmem:[%s5214_s11 + $0x70] sm:$0xf] }
 0x36f   : > { %v4090_v47 = vadd.f32 %v1213_v43, %v3989_v58  ;;  %v1238_v48 = vpop.f32.mrf.mxu2 }
 0x370   : > { %v1239_v49 = vadd.f32 %v1238_v48, %v1186_v40  ;;  %v1251_v50 = vpop.f32.mrf.mxu3  ;;  %v4093_v52 = vadd.f32 %v1226_v45, %v3985_v51  ;;  %v3191_v45 = vld [vmem:[%s5214_s11 + $0x74] sm:$0xf0] }
 0x371   : > { %v1252_v53 = vadd.f32 %v1251_v50, %v1186_v40  ;;  %v1265_v54 = vmul.f32 %v1263_v46, %v4090_v47  ;;  %v3223_v40 = vld [vmem:[%s5214_s11 + $0x174] sm:$0xf0] }
 0x372   : > { %v4097_v56 = vadd.f32 %v1239_v49, %v3996_v0  ;;  %v1266_v62 = vmul.f32 %v1263_v46, %v4093_v52  ;;  %v3391_v12 = vpack.i.bf16 %v4093_v52, %v4090_v47 }
 0x373   : > { %v4100_v57 = vadd.f32 %v1252_v53, %v3991_v59  ;;  %v1275_v60 = vadd.f32 %v1273_v55, %v1265_v54  ;;  %v3062_v54 = vor.u32 %v3223_v40, %v3061_v35  ;;  %v3029_v35 = vld [vmem:[%s5214_s11 + $0x130] sm:$0xf] }
 0x374   : > { %v1267_v58 = vmul.f32 %v1263_v46, %v4097_v56  ;;  %v1214_v61 = vpop.f32.mrf.mxu0  ;;  %v1276_v6 = vadd.f32 %v1273_v55, %v1266_v62 }
 0x375   : > { %v1268_v63 = vmul.f32 %v1263_v46, %v4100_v57  ;;  %v4105_v51 = vmax.f32 %v1275_v60, 0.0  ;;  %v1227_v1 = vpop.f32.mrf.mxu1  ;;  %v2997_v60 = vld [vmem:[%s5214_s11 + $0xf0] sm:$0xf] }
 0x376   : > { %v1277_v2 = vadd.f32 %v1273_v55, %v1267_v58  ;;  %v4112_v9 = vmax.f32 %v1276_v6, 0.0  ;;  %v3207_v58 = vld [vmem:[%s5214_s11 + $0xf4] sm:$0xf0]  ;;  %v3221_v1 = vld [vmem:[%s5214_s11 + $0x164] sm:$0xf0] }
 0x377   : > { %v4107_v3 = vadd.f32 %v1273_v55, %v1268_v63  ;;  %v1240_v4 = vpop.f32.mrf.mxu2  ;;  %1303 = vrot.lane.b32.xlu1 %v4105_v51, %s3665_s26  ;;  %v3053_v55 = vld [vmem:[%s5214_s11 + $0x160] sm:$0xf] }
 0x378   : > { %v1281_v59 = vmax.f32 %v1277_v2, 0.0  ;;  %v1253_v0 = vpop.f32.mrf.mxu3  ;;  %v2934_v2 = vor.u32 %v3191_v45, %v2933_v44  ;;  %v3239_v4 = vld [vmem:[%s5214_s11 + $0x1f4] sm:$0xf0]  ;;  %v3054_v6 = vor.u32 %v3221_v1, %v3053_v55  ;;  %v2901_v44 = vld [vmem:[%s5214_s11 + $0x30] sm:$0xf] }
 0x379   : > { %v1282_v5 = vmax.f32 %v4107_v3, 0.0  ;;  %v3125_v3 = vld [vmem:[%s5214_s11 + $0x1f0] sm:$0xf]  ;;  %v3189_v0 = vld [vmem:[%s5214_s11 + $0x64] sm:$0xf0] }
 0x37a   : > { %v3183_v45 = vld [vmem:[%s5214_s11 + $0x34] sm:$0xf0]  ;;  %v3213_v55 = vld [vmem:[%s5214_s11 + $0x124] sm:$0xf0] }
 0x37b   : > { %v3376_v7 = vpack.i.bf16 %v1282_v5, %v1281_v59 }
 0x37d   : > { %3377 = vrot.lane.b32.xlu2 %v3376_v7, %s3661_s8  ;;  %3372 = vrot.lane.b32.xlu0 %v3376_v7, %s3665_s26  ;;  %v3045_v7 = vld [vmem:[%s5214_s11 + $0x150] sm:$0xf] }
 0x37f   : > { %1305 = vrot.lane.b32.xlu1 %v4112_v9, %s3665_s26  ;;  %s5286_s26 = sld [smem:[#allocation17_spill]] }
 0x385   : > { %1289 = vrot.lane.b32.xlu2 %v4112_v9, %s3661_s8  ;;  %1287 = vrot.lane.b32.xlu0 %v4105_v51, %s3661_s8  ;;  %s828_s28 = sand.u32 1, %s5286_s26  }
 0x386   : > { %s829_s3 = scalar_lea.vmem [#allocation11], %s828_s28  ;;  %s2705_s1 = scalar_lea.sflag [#allocation4], %s828_s28 }
 0x387   : > { %s2715_s27 = sshll.u32 %s829_s3, 4  ;;  %s2716_s27 = int_to_ptr.vmem [resolvable:$true] %s2715_s27 }
 0x38d   : > { %1348 = vperm.xlu0 %3348, %v1345_v11   ;;  %v3205_v11 = vld [vmem:[%s5214_s11 + $0xe4] sm:$0xf0] }
 0x395   : > { %3392 = vrot.lane.b32.xlu0 %v3391_v12, %s3661_s8  ;;  %v3126_v12 = vor.u32 %v3239_v4, %v3125_v3  ;;  %v3013_v3 = vld [vmem:[%s5214_s11 + $0x110] sm:$0xf]  ;;  %v2957_v4 = vld [vmem:[%s5214_s11 + $0xa0] sm:$0xf] }
 0x39d   : > { %1950 = vperm.xlu0 %3348, %v1947_v13   ;;  %v3219_v13 = vld [vmem:[%s5214_s11 + $0x154] sm:$0xf0] }
 0x3d7   : > { %v3378_v14 = vpop.permute.xlu2 %3377 }
 0x3d8   : > { %v3380_v21 = vunpack.i.h.bf16 %v3378_v14  ;;  %v3379_v22 = vunpack.i.l.bf16 %v3378_v14 }
 0x3da   : > { %v1295_v39 = vsel %vm902_vm1, %v3379_v22, %v3380_v21 }
 0x3db   : > { %v1338_v53 = vpack.c.bf16 %v1295_v39, %v1281_v59  ;;  %v1344_v59 = vld [vmem:[#allocation8] sm:$0xf]  ;;  %v3215_v39 = vld [vmem:[%s5214_s11 + $0x134] sm:$0xf0] }
 0x3dc   : > { %v3030_v48 = vor.u32 %v3215_v39, %v3029_v35  ;;  %v3206_v35 = vld [vmem:[%s5214_s11 + $0xf4] sm:$0xf]  ;;  %v2999_v39 = vld [vmem:[%s5214_s11 + $0xf8] sm:$0xf0] }
 0x3df   : > { %v1290_v29 = vpop.permute.xlu2 %1289 }
 0x3e0   : > { %v1296_v42 = vsel %vm902_vm1, %v1290_v29, %v3379_v22  ;;  %v3037_v22 = vld [vmem:[%s5214_s11 + $0x140] sm:$0xf] }
 0x3e1   : > { %v1337_v61 = vpack.c.bf16 %v1296_v42, %v4112_v9  ;;  %v2989_v9 = vld [vmem:[%s5214_s11 + $0xe0] sm:$0xf] }
 0x3e2   : > { %v3101_v42 = vld [vmem:[%s5214_s11 + $0x1c0] sm:$0xf] }
 0x3e9   : > { %v1304_v15 = vpop.permute.xlu1 %1303 }
 0x3ef   : > { %v3373_v17 = vpop.permute.xlu0 %3372 }
 0x3f0   : > { %v3375_v18 = vunpack.i.h.bf16 %v3373_v17  ;;  %v3374_v20 = vunpack.i.l.bf16 %v3373_v17  ;;  %v2917_v17 = vld [vmem:[%s5214_s11 + $0x50] sm:$0xf] }
 0x3f1   : > { %v1306_v23 = vpop.permute.xlu1 %1305 }
 0x3f2   : > { %v1313_v25 = vsel %vm1311_vm11, %v1306_v23, %v3374_v20  ;;  %v1314_v26 = vsel %vm1311_vm11, %v1304_v15, %v1306_v23  ;;  %v1312_v27 = vsel %vm1311_vm11, %v3374_v20, %v3375_v18  ;;  %v1315_v28 = vsel %vm1311_vm11, %v3375_v18, %v1304_v15  ;;  %v3117_v15 = vld [vmem:[%s5214_s11 + $0x1e0] sm:$0xf]  ;;  %v3187_v18 = vld [vmem:[%s5214_s11 + $0x54] sm:$0xf0]  ;;  %v2981_v23 = vld [vmem:[%s5214_s11 + $0xd0] sm:$0xf] }
 0x3f3   : > { %v1340_v30 = vpack.c.bf16 %v1314_v26, %v1314_v26  ;;  %v1341_v31 = vpack.c.bf16 %v1313_v25, %v1313_v25  ;;  %v1342_v32 = vpack.c.bf16 %v1312_v27, %v1312_v27  ;;  %v1335_v33 = vsel %vm1327_vm12, %v1315_v28, 0.0  ;;  %v3203_v25 = vld [vmem:[%s5214_s11 + $0xd4] sm:$0xf0]  ;;  %v3217_v27 = vld [vmem:[%s5214_s11 + $0x144] sm:$0xf0] }
 0x3f4   : > { %v1343_v34 = vpack.c.bf16 %v1335_v33, %v1335_v33  ;;  %v2990_v20 = vor.u32 %v3205_v11, %v2989_v9  ;;  %v3118_v26 = vor.u32 %v3237_v16, %v3117_v15  ;;  %v2918_v28 = vor.u32 %v3187_v18, %v2917_v17  ;;  %v2885_v9 = vld [vmem:[%s5214_s11 + $0x10] sm:$0xf]  ;;  %v3179_v11 = vld [vmem:[%s5214_s11 + $0x14] sm:$0xf0]  ;;  %v3209_v15 = vld [vmem:[%s5214_s11 + $0x104] sm:$0xf0] }
 0x3f5   : > { %v1361_v36 = vsel %vm946_vm2, %v1342_v32, 0  ;;  %v1355_v37 = vsel %vm946_vm2, %v1340_v30, 0  ;;  %v1358_v38 = vsel %vm946_vm2, %v1341_v31, 0  ;;  %v3235_v30 = vld [vmem:[%s5214_s11 + $0x1d4] sm:$0xf0]  ;;  %v2982_v33 = vor.u32 %v3203_v25, %v2981_v23 }
 0x3f6   : > { %1398 = vmatpush.bf16.msra.mxu2 %v1361_v36  ;;  %1372 = vmatpush.bf16.msra.mxu0 %v1355_v37  ;;  %v1364_v43 = vsel %vm946_vm2, %v1343_v34, 0  ;;  %v2909_v31 = vld [vmem:[%s5214_s11 + $0x40] sm:$0xf]  ;;  %v3185_v32 = vld [vmem:[%s5214_s11 + $0x44] sm:$0xf0]  ;;  %v3038_v34 = vor.u32 %v3217_v27, %v3037_v22 }
 0x3f7   : > { %v1288_v46 = vpop.permute.xlu0 %1287  ;;  %1385 = vmatpush.bf16.msra.mxu1 %v1358_v38  ;;  %1411 = vmatpush.bf16.msra.mxu3 %v1364_v43  ;;  %v2973_v36 = vld [vmem:[%s5214_s11 + $0xc0] sm:$0xf]  ;;  %v3201_v37 = vld [vmem:[%s5214_s11 + $0xc4] sm:$0xf0]  ;;  %v2910_v40 = vor.u32 %v3185_v32, %v2909_v31  ;;  %v2949_v16 = vld [vmem:[%s5214_s11 + $0x90] sm:$0xf] }
 0x3f8   : > { %v1297_v49 = vsel %vm902_vm1, %v1288_v46, %v1290_v29  ;;  %v1298_v50 = vsel %vm902_vm1, %v3380_v21, %v1288_v46  ;;  %v3046_v21 = vor.u32 %v3219_v13, %v3045_v7  ;;  %v3109_v29 = vld [vmem:[%s5214_s11 + $0x1d0] sm:$0xf]  ;;  %v3233_v43 = vld [vmem:[%s5214_s11 + $0x1c4] sm:$0xf0]  ;;  %v2974_v46 = vor.u32 %v3201_v37, %v2973_v36  ;;  %v3195_v17 = vld [vmem:[%s5214_s11 + $0x94] sm:$0xf0] }
 0x3f9   : > { %v1336_v62 = vpack.c.bf16 %v1297_v49, %v4105_v51  ;;  %v2872_v63 = vpack.c.bf16 %v1298_v50, %v1282_v5  ;;  %v2925_v51 = vld [vmem:[%s5214_s11 + $0x60] sm:$0xf]  ;;  %v2998_v5 = vor.u32 %v3207_v58, %v2997_v60  ;;  %v3110_v38 = vor.u32 %v3235_v30, %v3109_v29  ;;  %v2965_v50 = vld [vmem:[%s5214_s11 + $0xb0] sm:$0xf]  ;;  %v3229_v7 = vld [vmem:[%s5214_s11 + $0x1a4] sm:$0xf0] }
 0x3fa   : > { %1399 = vmatpush.bf16.msra.mxu2 %v1338_v53  ;;  %v2926_v14 = vor.u32 %v3189_v0, %v2925_v51  ;;  %v3021_v49 = vld [vmem:[%s5214_s11 + $0x120] sm:$0xf]  ;;  %v3199_v53 = vld [vmem:[%s5214_s11 + $0xb4] sm:$0xf0]  ;;  %v2902_v60 = vor.u32 %v3183_v45, %v2901_v44  ;;  %v3093_v58 = vld [vmem:[%s5214_s11 + $0x1b0] sm:$0xf] }
 0x3fb   : > { %1373 = vmatpush.bf16.msra.mxu0 %v1336_v62  ;;  %1386 = vmatpush.bf16.msra.mxu1 %v1337_v61  ;;  %v3231_v61 = vld [vmem:[%s5214_s11 + $0x1b4] sm:$0xf0]  ;;  %v2893_v62 = vld [vmem:[%s5214_s11 + $0x20] sm:$0xf]  ;;  %v2966_v1 = vor.u32 %v3199_v53, %v2965_v50  ;;  %v3077_v22 = vld [vmem:[%s5214_s11 + $0x190] sm:$0xf]  ;;  %v3002_v53 = vor.u32 %v3206_v35, %v2999_v39 }
 0x3fc   : > { %2873 = vmatpush.bf16.msk.msra.mxu3 %vm4154_vm13, %v2872_v63  ;;  %v3181_v63 = vld [vmem:[%s5214_s11 + $0x24] sm:$0xf0]  ;;  %v3094_v51 = vor.u32 %v3231_v61, %v3093_v58  ;;  %v3211_v0 = vld [vmem:[%s5214_s11 + $0x114] sm:$0xf0]  ;;  %v3063_v25 = vld [vmem:[%s5214_s11 + $0x178] sm:$0xf0] }
 0x3fd   : > { %2870 = vmatmul.msk.bf16.vlgmr.msra.gmra.mxu2 %vm942_vm4, %v1344_v59  ;;  %v3227_v23 = vld [vmem:[%s5214_s11 + $0x194] sm:$0xf0]  ;;  %v3177_v27 = vld [vmem:[%s5214_s11 + $0x4] sm:$0xf0]  ;;  %v3190_v29 = vld [vmem:[%s5214_s11 + $0x74] sm:$0xf] }
 0x3fe   : > { %1832 = vmatpush.bf16.msrb.mxu2 %v3062_v54  ;;  %2868 = vmatmul.msk.bf16.vlgmr.msra.gmra.mxu0 %vm942_vm4, %v1344_v59  ;;  %v3102_v54 = vor.u32 %v3233_v43, %v3101_v42  ;;  %v2935_v30 = vld [vmem:[%s5214_s11 + $0x78] sm:$0xf0]  ;;  %v3220_v32 = vld [vmem:[%s5214_s11 + $0x164] sm:$0xf]  ;;  %v3078_v36 = vor.u32 %v3227_v23, %v3077_v22  ;;  %v3225_v42 = vld [vmem:[%s5214_s11 + $0x184] sm:$0xf0] }
 0x3ff   : > { %1806 = vmatpush.bf16.msrb.mxu0 %v2934_v2  ;;  %2869 = vmatmul.msk.bf16.vlgmr.msra.gmra.mxu1 %vm942_vm4, %v1344_v59  ;;  %v3022_v2 = vor.u32 %v3213_v55, %v3021_v49  ;;  %v3055_v43 = vld [vmem:[%s5214_s11 + $0x168] sm:$0xf0]  ;;  %v2938_v44 = vor.u32 %v3190_v29, %v2935_v30  ;;  %v3238_v45 = vld [vmem:[%s5214_s11 + $0x1f4] sm:$0xf]  ;;  %v3188_v49 = vld [vmem:[%s5214_s11 + $0x64] sm:$0xf] }
 0x400   : > { %2874 = vmatmul.msk.bf16.vlgmr.msra.gmra.mxu3 %vm942_vm4, %v1344_v59  ;;  %1819 = vmatpush.bf16.msrb.mxu1 %v2998_v5  ;;  %v3197_v59 = vld [vmem:[%s5214_s11 + $0xa4] sm:$0xf0]  ;;  %v2894_v5 = vor.u32 %v3181_v63, %v2893_v62  ;;  %v2927_v50 = vld [vmem:[%s5214_s11 + $0x68] sm:$0xf0]  ;;  %v3058_v55 = vor.u32 %v3220_v32, %v3055_v43  ;;  %v3218_v62 = vld [vmem:[%s5214_s11 + $0x154] sm:$0xf] }
 0x401   : > { %1845 = vmatpush.bf16.msrb.mxu3 %v3126_v12  ;;  %v3005_v12 = vld [vmem:[%s5214_s11 + $0x100] sm:$0xf]  ;;  %v2958_v13 = vor.u32 %v3197_v59, %v2957_v4  ;;  %v2991_v58 = vld [vmem:[%s5214_s11 + $0xe8] sm:$0xf0]  ;;  %v3047_v63 = vld [vmem:[%s5214_s11 + $0x158] sm:$0xf0] }
 0x402   : > { %1833 = vmatpush.bf16.msrb.mxu2 %v3054_v6  ;;  %v3085_v6 = vld [vmem:[%s5214_s11 + $0x1a0] sm:$0xf]  ;;  %v3006_v31 = vor.u32 %v3209_v15, %v3005_v12  ;;  %v3050_v59 = vor.u32 %v3218_v62, %v3047_v63  ;;  %v3214_v12 = vld [vmem:[%s5214_s11 + $0x134] sm:$0xf]  ;;  %v3236_v15 = vld [vmem:[%s5214_s11 + $0x1e4] sm:$0xf] }
 0x403   : > { %1807 = vmatpush.bf16.msrb.mxu0 %v2926_v14  ;;  %v3014_v14 = vor.u32 %v3211_v0, %v3013_v3  ;;  %v3086_v18 = vor.u32 %v3229_v7, %v3085_v6  ;;  %v2919_v3 = vld [vmem:[%s5214_s11 + $0x58] sm:$0xf0]  ;;  %v3039_v6 = vld [vmem:[%s5214_s11 + $0x148] sm:$0xf0]  ;;  %v3184_v22 = vld [vmem:[%s5214_s11 + $0x44] sm:$0xf] }
 0x404   : > { %1820 = vmatpush.bf16.msrb.mxu1 %v2990_v20  ;;  %v3222_v20 = vld [vmem:[%s5214_s11 + $0x174] sm:$0xf]  ;;  %v2983_v0 = vld [vmem:[%s5214_s11 + $0xd8] sm:$0xf0]  ;;  %v2911_v23 = vld [vmem:[%s5214_s11 + $0x48] sm:$0xf0] }
 0x405   : > { %1846 = vmatpush.bf16.msrb.mxu3 %v3118_v26  ;;  %v2877_v26 = vld [vmem:[%s5214_s11] sm:$0xf]  ;;  %v3066_v37 = vor.u32 %v3222_v20, %v3063_v25  ;;  %v3023_v20 = vld [vmem:[%s5214_s11 + $0x128] sm:$0xf0]  ;;  %v3200_v25 = vld [vmem:[%s5214_s11 + $0xc4] sm:$0xf] }
 0x406   : > { %1834 = vmatpush.bf16.msrb.mxu2 %v3046_v21  ;;  %v2886_v21 = vor.u32 %v3179_v11, %v2885_v9  ;;  %v3234_v29 = vld [vmem:[%s5214_s11 + $0x1d4] sm:$0xf]  ;;  %v3111_v30 = vld [vmem:[%s5214_s11 + $0x1d8] sm:$0xf0]  ;;  %v3103_v43 = vld [vmem:[%s5214_s11 + $0x1c8] sm:$0xf0] }
 0x407   : > { %1808 = vmatpush.bf16.msrb.mxu0 %v2918_v28  ;;  %v2950_v28 = vor.u32 %v3195_v17, %v2949_v16  ;;  %v3119_v16 = vld [vmem:[%s5214_s11 + $0x1e8] sm:$0xf0]  ;;  %v3210_v32 = vld [vmem:[%s5214_s11 + $0x114] sm:$0xf]  ;;  %v2967_v39 = vld [vmem:[%s5214_s11 + $0xb8] sm:$0xf0] }
 0x408   : > { %1821 = vmatpush.bf16.msrb.mxu1 %v2982_v33  ;;  %v2941_v33 = vld [vmem:[%s5214_s11 + $0x80] sm:$0xf]  ;;  %v3122_v17 = vor.u32 %v3236_v15, %v3119_v16  ;;  %v3182_v35 = vld [vmem:[%s5214_s11 + $0x34] sm:$0xf]  ;;  %v3079_v15 = vld [vmem:[%s5214_s11 + $0x198] sm:$0xf0] }
 0x409   : > { %1847 = vmatpush.bf16.msrb.mxu3 %v3110_v38  ;;  %v2878_v38 = vor.u32 %v3177_v27, %v2877_v26  ;;  %v2914_v26 = vor.u32 %v3184_v22, %v2911_v23  ;;  %v2975_v27 = vld [vmem:[%s5214_s11 + $0xc8] sm:$0xf0]  ;;  %v3178_v63 = vld [vmem:[%s5214_s11 + $0x14] sm:$0xf] }
 0x40a   : > { %1835 = vmatpush.bf16.msrb.mxu2 %v3038_v34  ;;  %v3193_v34 = vld [vmem:[%s5214_s11 + $0x84] sm:$0xf0] }
 0x40b   : > { %1809 = vmatpush.bf16.msrb.mxu0 %v2910_v40  ;;  %v3069_v40 = vld [vmem:[%s5214_s11 + $0x180] sm:$0xf] }
 0x40c   : > { %1822 = vmatpush.bf16.msrb.mxu1 %v2974_v46  ;;  %v3127_v46 = vld [vmem:[%s5214_s11 + $0x1f8] sm:$0xf0] }
 0x40d   : > { %1848 = vmatpush.bf16.msrb.mxu3 %v3102_v54  ;;  %v3070_v54 = vor.u32 %v3225_v42, %v3069_v40  ;;  %v3130_v61 = vor.u32 %v3238_v45, %v3127_v46  ;;  %v3232_v42 = vld [vmem:[%s5214_s11 + $0x1c4] sm:$0xf]  ;;  %v3007_v46 = vld [vmem:[%s5214_s11 + $0x108] sm:$0xf0] }
 0x40e   : > { %1836 = vmatpush.bf16.msrb.mxu2 %v3030_v48  ;;  %v2942_v48 = vor.u32 %v3193_v34, %v2941_v33  ;;  %v3015_v33 = vld [vmem:[%s5214_s11 + $0x118] sm:$0xf0]  ;;  %v3208_v45 = vld [vmem:[%s5214_s11 + $0x104] sm:$0xf] }
 0x40f   : > { %1810 = vmatpush.bf16.msrb.mxu0 %v2902_v60  ;;  %v3204_v60 = vld [vmem:[%s5214_s11 + $0xe4] sm:$0xf]  ;;  %v3018_v34 = vor.u32 %v3210_v32, %v3015_v33  ;;  %v4550_v32 = vld [vmem:[%s5214_s11 + $0x70] sm:$0xff] }
 0x410   : > { %1823 = vmatpush.bf16.msrb.mxu1 %v2966_v1  ;;  %v2930_v1 = vor.u32 %v3188_v49, %v2927_v50  ;;  %v2994_v4 = vor.u32 %v3204_v60, %v2991_v58  ;;  %v3180_v49 = vld [vmem:[%s5214_s11 + $0x24] sm:$0xf]  ;;  %v2895_v50 = vld [vmem:[%s5214_s11 + $0x28] sm:$0xf0]  ;;  %v3230_v58 = vld [vmem:[%s5214_s11 + $0x1b4] sm:$0xf] }
 0x411   : > { %1849 = vmatpush.bf16.msrb.mxu3 %v3094_v51  ;;  %v3202_v51 = vld [vmem:[%s5214_s11 + $0xd4] sm:$0xf] }
 0x412   : > { %1837 = vmatpush.bf16.msrb.mxu2 %v3022_v2  ;;  %v3186_v2 = vld [vmem:[%s5214_s11 + $0x54] sm:$0xf]  ;;  %v2986_v9 = vor.u32 %v3202_v51, %v2983_v0  ;;  %v3228_v51 = vld [vmem:[%s5214_s11 + $0x1a4] sm:$0xf]  ;;  %v3087_v0 = vld [vmem:[%s5214_s11 + $0x1a8] sm:$0xf0] }
 0x413   : > { %1811 = vmatpush.bf16.msrb.mxu0 %v2894_v5  ;;  %v3216_v5 = vld [vmem:[%s5214_s11 + $0x144] sm:$0xf]  ;;  %v2922_v7 = vor.u32 %v3186_v2, %v2919_v3  ;;  %v3194_v2 = vld [vmem:[%s5214_s11 + $0x94] sm:$0xf] }
 0x414   : > { %1824 = vmatpush.bf16.msrb.mxu1 %v2958_v13  ;;  %v3042_v11 = vor.u32 %v3216_v5, %v3039_v6  ;;  %v3031_v13 = vld [vmem:[%s5214_s11 + $0x138] sm:$0xf0]  ;;  %v3090_v5 = vor.u32 %v3228_v51, %v3087_v0  ;;  %v3176_v6 = vld [vmem:[%s5214_s11 + $0x4] sm:$0xf] }
 0x415   : > { %1850 = vmatpush.bf16.msrb.mxu3 %v3086_v18  ;;  %v3212_v18 = vld [vmem:[%s5214_s11 + $0x124] sm:$0xf]  ;;  %v1425_v51 = vld [vmem:[%s5214_s11 + $0x18] sm:$0xff] }
 0x416   : > { %1838 = vmatpush.bf16.msrb.mxu2 %v3014_v14  ;;  %v3034_v14 = vor.u32 %v3214_v12, %v3031_v13  ;;  %v2943_v12 = vld [vmem:[%s5214_s11 + $0x88] sm:$0xf0] }
 0x417   : > { %1812 = vmatpush.bf16.msrb.mxu0 %v2886_v21  ;;  %v3026_v21 = vor.u32 %v3212_v18, %v3023_v20  ;;  %v3071_v18 = vld [vmem:[%s5214_s11 + $0x188] sm:$0xf0] }
 0x418   : > { %1825 = vmatpush.bf16.msrb.mxu1 %v2950_v28  ;;  %v2978_v28 = vor.u32 %v3200_v25, %v2975_v27 }
 0x419   : > { %1851 = vmatpush.bf16.msrb.mxu3 %v3078_v36  ;;  %v2903_v36 = vld [vmem:[%s5214_s11 + $0x38] sm:$0xf0] }
 0x41a   : > { %1839 = vmatpush.bf16.msrb.mxu2 %v3006_v31  ;;  %v3114_v31 = vor.u32 %v3234_v29, %v3111_v30  ;;  %v4545_v29 = vld [vmem:[%s5214_s11 + $0x78] sm:$0xff] }
 0x41b   : > { %1813 = vmatpush.bf16.msrb.mxu0 %v2878_v38  ;;  %v2906_v38 = vor.u32 %v3182_v35, %v2903_v36 }
 0x41c   : > { %1826 = vmatpush.bf16.msrb.mxu1 %v2942_v48  ;;  %v3010_v48 = vor.u32 %v3208_v45, %v3007_v46  ;;  %v1433_v45 = vld [vmem:[%s5214_s11 + $0x58] sm:$0xff] }
 0x41d   : > { %1852 = vmatpush.bf16.msrb.mxu3 %v3070_v54  ;;  %v2898_v54 = vor.u32 %v3180_v49, %v2895_v50  ;;  %v1432_v49 = vld [vmem:[%s5214_s11 + $0x50] sm:$0xff] }
 0x41e   : > { %1884 = vmatpush.bf16.msra.mxu2 %v3066_v37  ;;  %v3198_v37 = vld [vmem:[%s5214_s11 + $0xb4] sm:$0xf] }
 0x41f   : > { %1858 = vmatpush.bf16.msra.mxu0 %v2938_v44  ;;  %v2970_v40 = vor.u32 %v3198_v37, %v2967_v39  ;;  %v3106_v44 = vor.u32 %v3232_v42, %v3103_v43  ;;  %v4556_v39 = vld [vmem:[%s5214_s11 + $0x68] sm:$0xff]  ;;  %v4562_v43 = vld [vmem:[%s5214_s11 + $0x60] sm:$0xff] }
 0x420   : > { %1871 = vmatpush.bf16.msra.mxu1 %v3002_v53  ;;  %v3196_v53 = vld [vmem:[%s5214_s11 + $0xa4] sm:$0xf] }
 0x421   : > { %1897 = vmatpush.bf16.msra.mxu3 %v3130_v61  ;;  %v3095_v61 = vld [vmem:[%s5214_s11 + $0x1b8] sm:$0xf0] }
 0x422   : > { %1885 = vmatpush.bf16.msra.mxu2 %v3058_v55  ;;  %v2959_v55 = vld [vmem:[%s5214_s11 + $0xa8] sm:$0xf0]  ;;  %v3098_v62 = vor.u32 %v3230_v58, %v3095_v61  ;;  %v1429_v61 = vld [vmem:[%s5214_s11 + $0x38] sm:$0xff] }
 0x423   : > { %1859 = vmatpush.bf16.msra.mxu0 %v2930_v1  ;;  %v2962_v60 = vor.u32 %v3196_v53, %v2959_v55  ;;  %v2887_v1 = vld [vmem:[%s5214_s11 + $0x18] sm:$0xf0]  ;;  %v2034_v53 = vunpack.c.l.bf16 %v1433_v45  ;;  %v2032_v55 = vunpack.c.l.bf16 %v1432_v49 }
 0x424   : > { %1872 = vmatpush.bf16.msra.mxu1 %v2994_v4  ;;  %v2890_v3 = vor.u32 %v3178_v63, %v2887_v1  ;;  %v2951_v4 = vld [vmem:[%s5214_s11 + $0x98] sm:$0xf0]  ;;  %v1428_v63 = vld [vmem:[%s5214_s11 + $0x30] sm:$0xff]  ;;  %v2026_v1 = vunpack.c.l.bf16 %v1429_v61 }
 0x425   : > { %1898 = vmatpush.bf16.msra.mxu3 %v3122_v17  ;;  %v3224_v17 = vld [vmem:[%s5214_s11 + $0x184] sm:$0xf] }
 0x426   : > { %1886 = vmatpush.bf16.msra.mxu2 %v3050_v59  ;;  %v2954_v59 = vor.u32 %v3194_v2, %v2951_v4  ;;  %v3074_v20 = vor.u32 %v3224_v17, %v3071_v18  ;;  %v1427_v2 = vld [vmem:[%s5214_s11 + $0x28] sm:$0xff]  ;;  %v1426_v4 = vld [vmem:[%s5214_s11 + $0x20] sm:$0xff]  ;;  %v2043_v18 = vunpack.c.h.bf16 %v4545_v29 }
 0x427   : > { %1860 = vmatpush.bf16.msra.mxu0 %v2922_v7  ;;  %v2879_v7 = vld [vmem:[%s5214_s11 + $0x8] sm:$0xf0]  ;;  %v2020_v0 = vunpack.c.l.bf16 %v1426_v4 }
 0x428   : > { %1873 = vmatpush.bf16.msra.mxu1 %v2986_v9  ;;  %v3192_v9 = vld [vmem:[%s5214_s11 + $0x84] sm:$0xf] }
 0x429   : > { %1899 = vmatpush.bf16.msra.mxu3 %v3114_v31  ;;  %v2946_v13 = vor.u32 %v3192_v9, %v2943_v12  ;;  %v1423_v9 = vld [vmem:[%s5214_s11 + $0x8] sm:$0xff] }
 0x42a   : > { %1887 = vmatpush.bf16.msra.mxu2 %v3042_v11  ;;  %v2882_v11 = vor.u32 %v3176_v6, %v2879_v7  ;;  %v2018_v7 = vunpack.c.l.bf16 %v1425_v51 }
 0x42b   : > { %1861 = vmatpush.bf16.msra.mxu0 %v2914_v26 }
 0x42c   : > { %1874 = vmatpush.bf16.msra.mxu1 %v2978_v28 }
 0x42d   : > { %1900 = vmatpush.bf16.msra.mxu3 %v3106_v44  ;;  %v2038_v44 = vunpack.c.l.bf16 %v4556_v39 }
 0x42e   : > { %1888 = vmatpush.bf16.msra.mxu2 %v3034_v14  ;;  %v3226_v14 = vld [vmem:[%s5214_s11 + $0x194] sm:$0xf] }
 0x42f   : > { %1862 = vmatpush.bf16.msra.mxu0 %v2906_v38  ;;  %v3082_v16 = vor.u32 %v3226_v14, %v3079_v15  ;;  %v1422_v14 = vld [vmem:[%s5214_s11] sm:$0xff]  ;;  %v2014_v15 = vunpack.c.l.bf16 %v1423_v9 }
 0x430   : > { %1875 = vmatpush.bf16.msra.mxu1 %v2970_v40  ;;  %v2040_v40 = vunpack.c.l.bf16 %v4550_v32 }
 0x431   : > { %1901 = vmatpush.bf16.msra.mxu3 %v3098_v62 }
 0x432   : > { %1889 = vmatpush.bf16.msra.mxu2 %v3026_v21  ;;  %v1349_v21 = vpop.permute.xlu0 %1348 }
 0x433   : > { %1863 = vmatpush.bf16.msra.mxu0 %v2898_v54  ;;  %v1431_v54 = vld [vmem:[%s5214_s11 + $0x48] sm:$0xff] }
 0x434   : > { %1876 = vmatpush.bf16.msra.mxu1 %v2962_v60  ;;  %v1430_v60 = vld [vmem:[%s5214_s11 + $0x40] sm:$0xff]  ;;  %v2030_v58 = vunpack.c.l.bf16 %v1431_v54 }
 0x435   : > { %1902 = vmatpush.bf16.msra.mxu3 %v3090_v5  ;;  %v2028_v62 = vunpack.c.l.bf16 %v1430_v60  ;;  %v1424_v5 = vld [vmem:[%s5214_s11 + $0x10] sm:$0xff] }
 0x436   : > { %1890 = vmatpush.bf16.msra.mxu2 %v3018_v34  ;;  %v2042_v34 = vunpack.c.l.bf16 %v4545_v29  ;;  %v2027_v29 = vunpack.c.h.bf16 %v1429_v61 }
 0x437   : > { %1864 = vmatpush.bf16.msra.mxu0 %v2890_v3  ;;  %v2024_v3 = vunpack.c.l.bf16 %v1428_v63 }
 0x438   : > { %1877 = vmatpush.bf16.msra.mxu1 %v2954_v59  ;;  %v2022_v59 = vunpack.c.l.bf16 %v1427_v2 }
 0x439   : > { %1903 = vmatpush.bf16.msra.mxu3 %v3082_v16  ;;  %v2012_v16 = vunpack.c.l.bf16 %v1422_v14 }
 0x43a   : > { %1891 = vmatpush.bf16.msra.mxu2 %v3010_v48  ;;  %v2036_v48 = vunpack.c.l.bf16 %v4562_v43  ;;  %v4596_v6 = vpop.permute.xlu0 %3392 }
 0x43b   : > { %1865 = vmatpush.bf16.msra.mxu0 %v2882_v11  ;;  %v2016_v11 = vunpack.c.l.bf16 %v1424_v5  ;;  %v3395_v12 = vunpack.i.h.bf16 %v4596_v6 }
 0x43c   : > { %1878 = vmatpush.bf16.msra.mxu1 %v2946_v13  ;;  %v3394_v13 = vunpack.i.l.bf16 %v4596_v6 }
 0x43d   : > { %1904 = vmatpush.bf16.msra.mxu3 %v3074_v20  ;;  %v2041_v20 = vunpack.c.h.bf16 %v4550_v32  ;;  %v2019_v32 = vunpack.c.h.bf16 %v1425_v51  ;;  %v1452_v51 = vld [vmem:[%s5214_s11 + $0xf0] sm:$0xff] }
 0x43e   : > { %v2002_v17 = vsel %vm902_vm1, %v3394_v13, %v3395_v12 }
 0x47b   : > { %v1375_v22 = vpop.f32.mrf.mxu0 }
 0x47c   : > { %v1388_v23 = vpop.f32.mrf.mxu1  ;;  %v1376_v25 = vadd.f32 %v1375_v22, %v1349_v21  ;;  %v2039_v22 = vunpack.c.h.bf16 %v4556_v39 }
 0x47d   : > { %v1389_v26 = vadd.f32 %v1388_v23, %v1349_v21  ;;  %v2037_v23 = vunpack.c.h.bf16 %v4562_v43 }
 0x47e   : > { %v1418_v27 = vpack.c.bf16 %v1376_v25, %v1376_v25  ;;  %v2035_v25 = vunpack.c.h.bf16 %v1433_v45 }
 0x47f   : > { %v1419_v28 = vpack.c.bf16 %v1389_v26, %v1389_v26  ;;  %v2033_v26 = vunpack.c.h.bf16 %v1432_v49 }
 0x480   : > { %v1401_v30 = vpop.f32.mrf.mxu2  ;;  %1814 = vmatmul.bf16.vlgmr.msrb.gmra.mxu0 %v1418_v27 }
 0x481   : > { %1827 = vmatmul.bf16.vlgmr.msrb.gmra.mxu1 %v1419_v28  ;;  %v1402_v31 = vadd.f32 %v1401_v30, %v1349_v21  ;;  %v2023_v30 = vunpack.c.h.bf16 %v1427_v2 }
 0x483   : > { %v1414_v33 = vpop.f32.mrf.mxu3  ;;  %v1420_v35 = vpack.c.bf16 %v1402_v31, %v1402_v31  ;;  %v1377_v37 = vpop.f32.mrf.mxu0  ;;  %v2021_v31 = vunpack.c.h.bf16 %v1426_v4 }
 0x484   : > { %v1415_v36 = vadd.f32 %v1414_v33, %v1349_v21  ;;  %v1390_v38 = vpop.f32.mrf.mxu1  ;;  %v2008_v21 = vmax.f32 %v4090_v47, %v2002_v17  ;;  %v2025_v47 = vunpack.c.h.bf16 %v1428_v63  ;;  %v2017_v33 = vunpack.c.h.bf16 %v1424_v5  ;;  %v2310_v17 = vld [vmem:[%s5218_s15] sm:$0xff] }
 0x485   : > { %1840 = vmatmul.bf16.vlgmr.msrb.gmra.mxu2 %v1420_v35 }
 0x486   : > { %v1421_v42 = vpack.c.bf16 %v1415_v36, %v1415_v36  ;;  %2140 = vmatpush.msrb.mxu2 %v2042_v34  ;;  %v2015_v34 = vunpack.c.h.bf16 %v1423_v9  ;;  %v1450_v9 = vld [vmem:[%s5214_s11 + $0xe0] sm:$0xff] }
 0x488   : > { %1853 = vmatmul.bf16.vlgmr.msrb.gmra.mxu3 %v1421_v42  ;;  %2141 = vmatpush.msrb.mxu2 %v2040_v40  ;;  %v1403_v46 = vpop.f32.mrf.mxu2 }
 0x48a   : > { %2142 = vmatpush.msrb.mxu2 %v2038_v44 }
 0x48b   : > { %v1416_v50 = vpop.f32.mrf.mxu3 }
 0x48c   : > { %2143 = vmatpush.msrb.mxu2 %v2036_v48 }
 0x48e   : > { %2144 = vmatpush.msrb.mxu2 %v2034_v53 }
 0x490   : > { %2145 = vmatpush.msrb.mxu2 %v2032_v55  ;;  %1866 = vmatmul.bf16.vlgmr.msra.gmra.mxu0 %v1418_v27  ;;  %v2031_v27 = vunpack.c.h.bf16 %v1431_v54 }
 0x491   : > { %1879 = vmatmul.bf16.vlgmr.msra.gmra.mxu1 %v1419_v28  ;;  %v2029_v28 = vunpack.c.h.bf16 %v1430_v60 }
 0x492   : > { %2146 = vmatpush.msrb.mxu2 %v2030_v58 }
 0x494   : > { %2147 = vmatpush.msrb.mxu2 %v2028_v62 }
 0x495   : > { %1892 = vmatmul.bf16.vlgmr.msra.gmra.mxu2 %v1420_v35  ;;  %v2013_v35 = vunpack.c.h.bf16 %v1422_v14  ;;  %v1449_v14 = vld [vmem:[%s5214_s11 + $0xd8] sm:$0xff] }
 0x496   : > { %2148 = vmatpush.msrb.mxu2 %v2026_v1 }
 0x498   : > { %1905 = vmatmul.bf16.vlgmr.msra.gmra.mxu3 %v1421_v42  ;;  %2149 = vmatpush.msrb.mxu2 %v2024_v3 }
 0x49a   : > { %2150 = vmatpush.msrb.mxu2 %v2022_v59  ;;  %v1453_v59 = vld [vmem:[%s5214_s11 + $0xf8] sm:$0xff] }
 0x49b   : > { %v2074_v5 = vunpack.c.l.bf16 %v1453_v59 }
 0x49c   : > { %2151 = vmatpush.msrb.mxu2 %v2020_v0  ;;  %v1451_v0 = vld [vmem:[%s5214_s11 + $0xe8] sm:$0xff] }
 0x49d   : > { %2160 = vmatpush.msrb.mxu3 %v2074_v5 }
 0x49e   : > { %2152 = vmatpush.msrb.mxu2 %v2018_v7  ;;  %v2072_v7 = vunpack.c.l.bf16 %v1452_v51 }
 0x4a0   : > { %2153 = vmatpush.msrb.mxu2 %v2016_v11  ;;  %v2070_v11 = vunpack.c.l.bf16 %v1451_v0  ;;  %2161 = vmatpush.msrb.mxu3 %v2072_v7 }
 0x4a2   : > { %2154 = vmatpush.msrb.mxu2 %v2014_v15  ;;  %v2068_v15 = vunpack.c.l.bf16 %v1450_v9  ;;  %2162 = vmatpush.msrb.mxu3 %v2070_v11 }
 0x4a4   : > { %2155 = vmatpush.msrb.mxu2 %v2012_v16  ;;  %v1448_v16 = vld [vmem:[%s5214_s11 + $0xd0] sm:$0xff]  ;;  %2163 = vmatpush.msrb.mxu3 %v2068_v15 }
 0x4a5   : > { %2156 = vmatmul.f32.vlgmr.msrb.gmra.mxu2 %v2008_v21 }
 0x4a6   : > { %2220 = vmatpush.msra.mxu2 %v2043_v18  ;;  %v2302_v18 = vld [vmem:[%s5217_s14] sm:$0xff] }
 0x4a8   : > { %2221 = vmatpush.msra.mxu2 %v2041_v20  ;;  %v2066_v20 = vunpack.c.l.bf16 %v1449_v14 }
 0x4aa   : > { %2222 = vmatpush.msra.mxu2 %v2039_v22  ;;  %v2064_v22 = vunpack.c.l.bf16 %v1448_v16  ;;  %2164 = vmatpush.msrb.mxu3 %v2066_v20 }
 0x4ac   : > { %2223 = vmatpush.msra.mxu2 %v2037_v23  ;;  %v1446_v23 = vld [vmem:[%s5214_s11 + $0xc0] sm:$0xff]  ;;  %2165 = vmatpush.msrb.mxu3 %v2064_v22 }
 0x4ae   : > { %2224 = vmatpush.msra.mxu2 %v2035_v25 }
 0x4b0   : > { %2225 = vmatpush.msra.mxu2 %v2033_v26  ;;  %v1445_v26 = vld [vmem:[%s5214_s11 + $0xb8] sm:$0xff] }
 0x4b2   : > { %2226 = vmatpush.msra.mxu2 %v2031_v27  ;;  %v2060_v27 = vunpack.c.l.bf16 %v1446_v23 }
 0x4b4   : > { %2227 = vmatpush.msra.mxu2 %v2029_v28  ;;  %v1444_v28 = vld [vmem:[%s5214_s11 + $0xb0] sm:$0xff] }
 0x4b6   : > { %2228 = vmatpush.msra.mxu2 %v2027_v29  ;;  %v2344_v29 = vld [vmem:[%s5220_s17] sm:$0xff] }
 0x4b8   : > { %2229 = vmatpush.msra.mxu2 %v2025_v47  ;;  %v2058_v47 = vunpack.c.l.bf16 %v1445_v26 }
 0x4ba   : > { %2230 = vmatpush.msra.mxu2 %v2023_v30  ;;  %v2056_v30 = vunpack.c.l.bf16 %v1444_v28 }
 0x4bc   : > { %2231 = vmatpush.msra.mxu2 %v2021_v31  ;;  %v1443_v31 = vld [vmem:[%s5214_s11 + $0xa8] sm:$0xff] }
 0x4be   : > { %2232 = vmatpush.msra.mxu2 %v2019_v32  ;;  %v2054_v32 = vunpack.c.l.bf16 %v1443_v31 }
 0x4c0   : > { %2233 = vmatpush.msra.mxu2 %v2017_v33  ;;  %v1442_v33 = vld [vmem:[%s5214_s11 + $0xa0] sm:$0xff] }
 0x4c2   : > { %2234 = vmatpush.msra.mxu2 %v2015_v34  ;;  %v2052_v34 = vunpack.c.l.bf16 %v1442_v33 }
 0x4c4   : > { %2235 = vmatpush.msra.mxu2 %v2013_v35  ;;  %v1441_v35 = vld [vmem:[%s5214_s11 + $0x98] sm:$0xff] }
 0x4c5   : > { %2236 = vmatmul.f32.vlgmr.msra.gmra.mxu2 %v2008_v21  ;;  %v1447_v21 = vld [vmem:[%s5214_s11 + $0xc8] sm:$0xff] }
 0x4c6   : > { %v2062_v25 = vunpack.c.l.bf16 %v1447_v21 }
 0x4c8   : > { %2166 = vmatpush.msrb.mxu3 %v2062_v25 }
 0x4ca   : > { %2167 = vmatpush.msrb.mxu3 %v2060_v27  ;;  %v4714_v27 = vld [vmem:[%s5214_s11 + $0x178] sm:$0xff] }
 0x4cc   : > { %2168 = vmatpush.msrb.mxu3 %v2058_v47 }
 0x4ce   : > { %2169 = vmatpush.msrb.mxu3 %v2056_v30 }
 0x4d0   : > { %2170 = vmatpush.msrb.mxu3 %v2054_v32 }
 0x4d2   : > { %2171 = vmatpush.msrb.mxu3 %v2052_v34 }
 0x4fd   : > { %v1815_v36 = vpop.f32.mrf.mxu0 }
 0x4fe   : > { %v1828_v37 = vpop.f32.mrf.mxu1 }
 0x4ff   : > { %v1829_v48 = vadd.f32 %v1828_v37, %v1815_v36  ;;  %v1440_v36 = vld [vmem:[%s5214_s11 + $0x90] sm:$0xff]  ;;  %v2050_v37 = vunpack.c.l.bf16 %v1441_v35 }
 0x501   : > { %2172 = vmatpush.msrb.mxu3 %v2050_v37  ;;  %v4759_v37 = vld [vmem:[%s5214_s11 + $0x168] sm:$0xff] }
 0x502   : > { %v2103_v10 = vunpack.c.h.bf16 %v4759_v37 }
 0x505   : > { %v1817_v38 = vpop.f32.mrf.mxu0 }
 0x506   : > { %v1830_v39 = vpop.f32.mrf.mxu1  ;;  %v2048_v38 = vunpack.c.l.bf16 %v1440_v36 }
 0x507   : > { %v1439_v39 = vld [vmem:[%s5214_s11 + $0x88] sm:$0xff] }
 0x508   : > { %v1841_v40 = vpop.f32.mrf.mxu2  ;;  %2173 = vmatpush.msrb.mxu3 %v2048_v38  ;;  %v1946_v38 = vld [vmem:[#allocation10] sm:$0xf] }
 0x509   : > { %v1842_v49 = vadd.f32 %v1841_v40, %v1829_v48  ;;  %v2046_v40 = vunpack.c.l.bf16 %v1439_v39  ;;  %v2069_v48 = vunpack.c.h.bf16 %v1450_v9 }
 0x50b   : > { %v1854_v42 = vpop.f32.mrf.mxu3  ;;  %2174 = vmatpush.msrb.mxu3 %v2046_v40  ;;  %v4767_v40 = vld [vmem:[%s5214_s11 + $0x1e8] sm:$0xff] }
 0x50c   : > { %v4617_v60 = vadd.f32 %v1854_v42, %v1842_v49  ;;  %v1438_v42 = vld [vmem:[%s5214_s11 + $0x80] sm:$0xff]  ;;  %v2067_v49 = vunpack.c.h.bf16 %v1449_v14 }
 0x50d   : > { %v1867_v43 = vpop.f32.mrf.mxu0 }
 0x50e   : > { %v1880_v44 = vpop.f32.mrf.mxu1  ;;  %v1910_v63 = vmax.f32 %v4617_v60, 0.0  ;;  %v4751_v60 = vld [vmem:[%s5214_s11 + $0x1f0] sm:$0xff] }
 0x50f   : > { %v1881_v54 = vadd.f32 %v1880_v44, %v1867_v43  ;;  %v2044_v43 = vunpack.c.l.bf16 %v1438_v42  ;;  %v2075_v44 = vunpack.c.h.bf16 %v1453_v59  ;;  %v2047_v59 = vunpack.c.h.bf16 %v1439_v39 }
 0x510   : > { %v1843_v45 = vpop.f32.mrf.mxu2 }
 0x511   : > { %v2073_v45 = vunpack.c.h.bf16 %v1452_v51  ;;  %2175 = vmatpush.msrb.mxu3 %v2044_v43  ;;  %v2045_v51 = vunpack.c.h.bf16 %v1438_v42  ;;  %v4781_v42 = vld [vmem:[%s5214_s11 + $0x1e0] sm:$0xff]  ;;  %v2134_v43 = vunpack.c.l.bf16 %v4767_v40 }
 0x513   : > { %v1856_v46 = vpop.f32.mrf.mxu3  ;;  %2240 = vmatpush.msra.mxu3 %v2075_v44  ;;  %v4788_v44 = vld [vmem:[%s5214_s11 + $0x158] sm:$0xff] }
 0x514   : > { %v2071_v46 = vunpack.c.h.bf16 %v1451_v0  ;;  %v4691_v0 = vadd.s32 128, %v3920_v8  ;;  %v2628_v8 = vld [vmem:[%s5283_s30 + $0x78] sm:$0xff]  ;;  %s3600_s30 = scalar_lea.hbm %s5287_s0, 2 }
 0x515   : > { %v1869_v50 = vpop.f32.mrf.mxu0  ;;  %2241 = vmatpush.msra.mxu3 %v2073_v45  ;;  %p3602_p4 = scmp.lt.s32.totalorder %s3600_s30, %s3596_s24 }
 0x516   : > { %v1882_v53 = vpop.f32.mrf.mxu1  ;;  %v2065_v50 = vunpack.c.h.bf16 %v1448_v16  ;;  %v4694_v5 = vadd.s32 1, %v4691_v0  ;;  %vm1925_vm6 = vcmp.lt.s32.totalorder %v4691_v0, 222 }
 0x517   : > { %2242 = vmatpush.msra.mxu3 %v2071_v46  ;;  %v2063_v53 = vunpack.c.h.bf16 %v1447_v21  ;;  %v4795_v46 = vld [vmem:[%s5214_s11 + $0x1d8] sm:$0xff]  ;;  %p3603_p7 = por %p3602_p4, %p3601_p3 }
 0x518   : > { %v1893_v55 = vpop.f32.mrf.mxu2  ;;  %vm1937_vm14 = vcmp.lt.s32.totalorder %v4694_v5, 222 }
 0x519   : > { %v1894_v58 = vadd.f32 %v1893_v55, %v1881_v54  ;;  %2243 = vmatpush.msra.mxu3 %v2069_v48  ;;  %v2061_v54 = vunpack.c.h.bf16 %v1446_v23  ;;  %v2059_v55 = vunpack.c.h.bf16 %v1445_v26  ;;  %v2132_v48 = vunpack.c.l.bf16 %v4781_v42  ;;  %p3604_p8 = pnand %p3603_p7, %p3599_p2 }
 0x51b   : > { %v1906_v61 = vpop.f32.mrf.mxu3  ;;  %2244 = vmatpush.msra.mxu3 %v2067_v49  ;;  %v4801_v49 = vld [vmem:[%s5214_s11 + $0x150] sm:$0xff] }
 0x51c   : > { %v4619_v62 = vadd.f32 %v1906_v61, %v1894_v58  ;;  %v2057_v58 = vunpack.c.h.bf16 %v1444_v28  ;;  %v2055_v61 = vunpack.c.h.bf16 %v1443_v31  ;;  %v4719_v28 = vld [vmem:[%s5214_s11 + $0x1f8] sm:$0xff]  ;;  %v4729_v31 = vld [vmem:[%s5214_s11 + $0x170] sm:$0xff] }
 0x51d   : > { %2245 = vmatpush.msra.mxu3 %v2065_v50  ;;  %v2104_v39 = vunpack.c.l.bf16 %v4729_v31  ;;  %v2098_v50 = vunpack.c.l.bf16 %v4788_v44  ;;  %v2105_v19 = vunpack.c.h.bf16 %v4729_v31  ;;  %v2099_v31 = vunpack.c.h.bf16 %v4788_v44 }
 0x51e   : > { %v1911_v1 = vmax.f32 %v4619_v62, 0.0  ;;  %v4775_v62 = vld [vmem:[%s5214_s11 + $0x160] sm:$0xff] }
 0x51f   : > { %2246 = vmatpush.msra.mxu3 %v2063_v53  ;;  %v2100_v45 = vunpack.c.l.bf16 %v4775_v62  ;;  %v4807_v53 = vld [vmem:[%s5214_s11 + $0x1d0] sm:$0xff] }
 0x520   : > { %v3386_v2 = vpack.i.bf16 %v1911_v1, %v1910_v63  ;;  %v1895_v3 = vpop.f32.mrf.mxu2 }
 0x521   : > { %2247 = vmatpush.msra.mxu3 %v2061_v54  ;;  %v2051_v3 = vunpack.c.h.bf16 %v1441_v35  ;;  %v2106_v35 = vunpack.c.l.bf16 %v4714_v27  ;;  %v2130_v54 = vunpack.c.l.bf16 %v4795_v46 }
 0x522   : > { %3387 = vrot.lane.b32.xlu2 %v3386_v2, %s3662_s6  ;;  %3382 = vrot.lane.b32.xlu1 %v3386_v2, %s3661_s8  ;;  %v2053_v2 = vunpack.c.h.bf16 %v1442_v33 }
 0x523   : > { %v1908_v4 = vpop.f32.mrf.mxu3  ;;  %2248 = vmatpush.msra.mxu3 %v2059_v55  ;;  %v4813_v55 = vld [vmem:[%s5214_s11 + $0x148] sm:$0xff] }
 0x524   : > { %v2049_v4 = vunpack.c.h.bf16 %v1440_v36  ;;  %v2138_v36 = vunpack.c.l.bf16 %v4719_v28 }
 0x525   : > { %2249 = vmatpush.msra.mxu3 %v2057_v58  ;;  %v2096_v58 = vunpack.c.l.bf16 %v4801_v49 }
 0x527   : > { %2250 = vmatpush.msra.mxu3 %v2055_v61  ;;  %v4819_v61 = vld [vmem:[%s5214_s11 + $0x1c8] sm:$0xff] }
 0x529   : > { %2251 = vmatpush.msra.mxu3 %v2053_v2  ;;  %v2128_v2 = vunpack.c.l.bf16 %v4807_v53 }
 0x52a   : > { %1998 = vrot.lane.b32.xlu2 %v4100_v57, %s3661_s8  ;;  %1996 = vrot.lane.b32.xlu1 %v4097_v56, %s3661_s8 }
 0x52b   : > { %2252 = vmatpush.msra.mxu3 %v2051_v3  ;;  %v4825_v3 = vld [vmem:[%s5214_s11 + $0x140] sm:$0xff] }
 0x52d   : > { %2253 = vmatpush.msra.mxu3 %v2049_v4  ;;  %v2094_v4 = vunpack.c.l.bf16 %v4813_v55 }
 0x52f   : > { %2254 = vmatpush.msra.mxu3 %v2047_v59  ;;  %v4831_v59 = vld [vmem:[%s5214_s11 + $0x1c0] sm:$0xff] }
 0x530   : > { %v2125_v44 = vunpack.c.h.bf16 %v4831_v59 }
 0x531   : > { %2255 = vmatpush.msra.mxu3 %v2045_v51  ;;  %v2126_v51 = vunpack.c.l.bf16 %v4819_v61 }
 0x532   : > { %2313 = vperm.xlu2 %3359, %v2310_v17   ;;  %2305 = vperm.xlu1 %3370, %v2302_v18   ;;  %v4698_v17 = vadd.s32 4294967295, %v4691_v0 }
 0x534   : > { %vm1919_vm15 = vcmp.lt.s32.totalorder %v4698_v17, 222  ;;  %v2644_v17 = vld [vmem:[%s5284_s4 + $0xf8] sm:$0xff] }
 0x535   : > { %vm4742_vm8 = vmpackc.low %vm1925_vm6, %vm1919_vm15 }
 0x53a   : > { %2348 = vperm.xlu2 %3359, %v2344_v29  }
 0x57c   : > { %v3388_v7 = vpop.permute.xlu2 %3387 }
 0x57d   : > { %v3390_v15 = vunpack.i.h.bf16 %v3388_v7  ;;  %v3389_v16 = vunpack.i.l.bf16 %v3388_v7  ;;  %v4837_v7 = vld [vmem:[%s5214_s11 + $0x138] sm:$0xff] }
 0x57f   : > { %v1917_v25 = vsel %vm853_vm0, %v3390_v15, %v3389_v16  ;;  %v1916_v29 = vsel %vm853_vm0, %v3389_v16, %v3390_v15  ;;  %v4849_v15 = vld [vmem:[%s5214_s11 + $0x130] sm:$0xff]  ;;  %v2090_v16 = vunpack.c.l.bf16 %v4837_v7 }
 0x580   : > { %v3132_v32 = vpack.c.bf16 %v1910_v63, %v1917_v25 }
 0x594   : > { %v3383_v9 = vpop.permute.xlu1 %3382 }
 0x595   : > { %v3385_v11 = vunpack.i.h.bf16 %v3383_v9  ;;  %v3384_v14 = vunpack.i.l.bf16 %v3383_v9  ;;  %v2092_v9 = vunpack.c.l.bf16 %v4825_v3 }
 0x597   : > { %v1935_v18 = vsel %vm902_vm1, %v3385_v11, %v3384_v14  ;;  %v1934_v20 = vsel %vm902_vm1, %v3384_v14, %v3385_v11  ;;  %v4843_v11 = vld [vmem:[%s5214_s11 + $0x1b8] sm:$0xff]  ;;  %v2124_v14 = vunpack.c.l.bf16 %v4831_v59 }
 0x598   : > { %v1944_v21 = vpack.c.bf16 %v1934_v20, %v1934_v20  ;;  %v1941_v22 = vsel %vm1937_vm14, %v1935_v18, 0.0  ;;  %v4855_v18 = vld [vmem:[%s5214_s11 + $0x1b0] sm:$0xff]  ;;  %v2122_v20 = vunpack.c.l.bf16 %v4843_v11 }
 0x599   : > { %v1945_v23 = vpack.c.bf16 %v1941_v22, %v1941_v22  ;;  %v2088_v22 = vunpack.c.l.bf16 %v4849_v15  ;;  %v2120_v25 = vunpack.c.l.bf16 %v4855_v18 }
 0x59a   : > { %v1957_v26 = vsel %vm946_vm2, %v1944_v21, 0  ;;  %v4861_v21 = vld [vmem:[%s5214_s11 + $0x128] sm:$0xff] }
 0x59b   : > { %1968 = vmatpush.bf16.msrb.mxu0 %v1957_v26  ;;  %v1960_v47 = vsel %vm946_vm2, %v1945_v23, 0  ;;  %v4867_v23 = vld [vmem:[%s5214_s11 + $0x1a8] sm:$0xff]  ;;  %v4873_v26 = vld [vmem:[%s5214_s11 + $0x120] sm:$0xff] }
 0x59c   : > { %v4724_v30 = vpop.permute.xlu1 %1996  ;;  %1981 = vmatpush.bf16.msrb.mxu1 %v1960_v47  ;;  %v4879_v47 = vld [vmem:[%s5214_s11 + $0x1a0] sm:$0xff]  ;;  %v2085_v59 = vunpack.c.h.bf16 %v4873_v26 }
 0x59d   : > { %v2001_v33 = vsel %vm902_vm1, %v3395_v12, %v4724_v30  ;;  %v3136_v12 = vpack.c.bf16 %v1911_v1, %v1916_v29  ;;  %v2102_v1 = vunpack.c.l.bf16 %v4759_v37  ;;  %v2086_v29 = vunpack.c.l.bf16 %v4861_v21 }
 0x59e   : > { %v2009_v63 = vmax.f32 %v4093_v52, %v2001_v33  ;;  %v2136_v52 = vunpack.c.l.bf16 %v4751_v60  ;;  %v4885_v33 = vld [vmem:[%s5214_s11 + $0x118] sm:$0xff]  ;;  %v2129_v37 = vunpack.c.h.bf16 %v4807_v53  ;;  %v2089_v53 = vunpack.c.h.bf16 %v4849_v15 }
 0x59f   : > { %3133 = vmatpush.bf16.msk.msrb.mxu0 %vm3962_vm9, %v3132_v32  ;;  %v2118_v32 = vunpack.c.l.bf16 %v4867_v23 }
 0x5a0   : > { %3137 = vmatpush.bf16.msk.msrb.mxu1 %vm4742_vm8, %v3136_v12  ;;  %2176 = vmatmul.f32.vlgmr.msrb.gmra.mxu3 %v2009_v63  ;;  %v2116_v12 = vunpack.c.l.bf16 %v4879_v47 }
 0x5a2   : > { %3134 = vmatmul.msk.bf16.vlgmr.msrb.gmra.mxu0 %vm942_vm4, %v1946_v38 }
 0x5a3   : > { %2180 = vmatpush.msra.mxu0 %v2106_v35  ;;  %3138 = vmatmul.msk.bf16.vlgmr.msrb.gmra.mxu1 %vm942_vm4, %v1946_v38  ;;  %v2084_v35 = vunpack.c.l.bf16 %v4873_v26  ;;  %v2082_v38 = vunpack.c.l.bf16 %v4885_v33 }
 0x5a4   : > { %2200 = vmatpush.msra.mxu1 %v2138_v36  ;;  %v4891_v36 = vld [vmem:[%s5214_s11 + $0x198] sm:$0xff] }
 0x5a5   : > { %2181 = vmatpush.msra.mxu0 %v2104_v39  ;;  %v4903_v39 = vld [vmem:[%s5214_s11 + $0x190] sm:$0xff]  ;;  %v2115_v15 = vunpack.c.h.bf16 %v4891_v36 }
 0x5a6   : > { %2201 = vmatpush.msra.mxu1 %v2136_v52  ;;  %v1999_v52 = vpop.permute.xlu2 %1998 }
 0x5a7   : > { %2182 = vmatpush.msra.mxu0 %v2102_v1  ;;  %v2114_v1 = vunpack.c.l.bf16 %v4891_v36 }
 0x5a8   : > { %2202 = vmatpush.msra.mxu1 %v2134_v43  ;;  %2256 = vmatmul.f32.vlgmr.msra.gmra.mxu3 %v2009_v63  ;;  %v4897_v63 = vld [vmem:[%s5214_s11 + $0x110] sm:$0xff]  ;;  %v4909_v43 = vld [vmem:[%s5214_s11 + $0x108] sm:$0xff] }
 0x5a9   : > { %2183 = vmatpush.msra.mxu0 %v2100_v45  ;;  %v2080_v45 = vunpack.c.l.bf16 %v4897_v63 }
 0x5aa   : > { %2203 = vmatpush.msra.mxu1 %v2132_v48  ;;  %v4915_v48 = vld [vmem:[%s5214_s11 + $0x188] sm:$0xff] }
 0x5ab   : > { %2184 = vmatpush.msra.mxu0 %v2098_v50  ;;  %v2112_v50 = vunpack.c.l.bf16 %v4903_v39  ;;  %v2111_v26 = vunpack.c.h.bf16 %v4915_v48 }
 0x5ac   : > { %2204 = vmatpush.msra.mxu1 %v2130_v54  ;;  %v4921_v54 = vld [vmem:[%s5214_s11 + $0x100] sm:$0xff] }
 0x5ad   : > { %2185 = vmatpush.msra.mxu0 %v2096_v58  ;;  %v2003_v58 = vsel %vm902_vm1, %v1999_v52, %v3394_v13  ;;  %v2076_v6 = vunpack.c.l.bf16 %v4921_v54 }
 0x5ae   : > { %2205 = vmatpush.msra.mxu1 %v2128_v2  ;;  %v2078_v2 = vunpack.c.l.bf16 %v4909_v43  ;;  %v2007_v13 = vsel %vm918_vm3, %v2003_v58, 0.0  ;;  %vm3159_vm3 = vmpackc.low %vm1937_vm14, %vm1937_vm14 }
 0x5af   : > { %2186 = vmatpush.msra.mxu0 %v2094_v4  ;;  %v4931_v4 = vld [vmem:[%s5214_s11 + $0x180] sm:$0xff] }
 0x5b0   : > { %2206 = vmatpush.msra.mxu1 %v2126_v51  ;;  %v2110_v51 = vunpack.c.l.bf16 %v4915_v48 }
 0x5b1   : > { %2187 = vmatpush.msra.mxu0 %v2092_v9  ;;  %v2000_v9 = vsel %vm902_vm1, %v4724_v30, %v1999_v52  ;;  %v2139_v30 = vunpack.c.h.bf16 %v4719_v28  ;;  %v2133_v28 = vunpack.c.h.bf16 %v4781_v42  ;;  %v2093_v42 = vunpack.c.h.bf16 %v4825_v3 }
 0x5b2   : > { %2207 = vmatpush.msra.mxu1 %v2124_v14  ;;  %v2108_v14 = vunpack.c.l.bf16 %v4931_v4  ;;  %v2119_v3 = vunpack.c.h.bf16 %v4867_v23  ;;  %v2079_v23 = vunpack.c.h.bf16 %v4909_v43 }
 0x5b3   : > { %2188 = vmatpush.msra.mxu0 %v2090_v16  ;;  %v2107_v16 = vunpack.c.h.bf16 %v4714_v27  ;;  %v2137_v27 = vunpack.c.h.bf16 %v4751_v60  ;;  %v2131_v60 = vunpack.c.h.bf16 %v4795_v46  ;;  %v2091_v46 = vunpack.c.h.bf16 %v4837_v7 }
 0x5b4   : > { %2208 = vmatpush.msra.mxu1 %v2122_v20  ;;  %v1991_v20 = vsel %vm885_vm7, %v4100_v57, 0.0  ;;  %v2101_v57 = vunpack.c.h.bf16 %v4775_v62  ;;  %v2127_v62 = vunpack.c.h.bf16 %v4819_v61  ;;  %v2087_v61 = vunpack.c.h.bf16 %v4861_v21  ;;  %vm3165_vm7 = vmpackc.low %vm1919_vm15, %vm1919_vm15 }
 0x5b5   : > { %2189 = vmatpush.msra.mxu0 %v2088_v22  ;;  %v4946_v22 = vmax.f32 %v4097_v56, %v2000_v9  ;;  %v2135_v56 = vunpack.c.h.bf16 %v4767_v40  ;;  %v2095_v40 = vunpack.c.h.bf16 %v4813_v55  ;;  %v2121_v55 = vunpack.c.h.bf16 %v4855_v18 }
 0x5b6   : > { %2209 = vmatpush.msra.mxu1 %v2120_v25  ;;  %v4949_v25 = vmax.f32 %v1991_v20, %v2007_v13  ;;  %v2117_v7 = vunpack.c.h.bf16 %v4879_v47  ;;  %v2081_v18 = vunpack.c.h.bf16 %v4897_v63  ;;  %v2113_v21 = vunpack.c.h.bf16 %v4903_v39  ;;  %v2306_v13 = vpop.permute.xlu1 %2305 }
 0x5b7   : > { %2190 = vmatpush.msra.mxu0 %v2086_v29  ;;  %v2097_v29 = vunpack.c.h.bf16 %v4801_v49  ;;  %v2123_v49 = vunpack.c.h.bf16 %v4843_v11  ;;  %v2083_v11 = vunpack.c.h.bf16 %v4885_v33  ;;  %v2077_v47 = vunpack.c.h.bf16 %v4921_v54 }
 0x5b8   : > { %2210 = vmatpush.msra.mxu1 %v2118_v32  ;;  %v2109_v32 = vunpack.c.h.bf16 %v4931_v4 }
 0x5b9   : > { %2191 = vmatpush.msra.mxu0 %v2084_v35 }
 0x5ba   : > { %2211 = vmatpush.msra.mxu1 %v2116_v12 }
 0x5bb   : > { %2192 = vmatpush.msra.mxu0 %v2082_v38  ;;  %v2157_v38 = vpop.f32.mrf.mxu2 }
 0x5bc   : > { %2212 = vmatpush.msra.mxu1 %v2114_v1 }
 0x5bd   : > { %2193 = vmatpush.msra.mxu0 %v2080_v45  ;;  %v1951_v45 = vpop.permute.xlu0 %1950 }
 0x5be   : > { %2213 = vmatpush.msra.mxu1 %v2112_v50 }
 0x5bf   : > { %2194 = vmatpush.msra.mxu0 %v2078_v2 }
 0x5c0   : > { %2214 = vmatpush.msra.mxu1 %v2110_v51 }
 0x5c1   : > { %2195 = vmatpush.msra.mxu0 %v2076_v6 }
 0x5c2   : > { %2196 = vmatmul.f32.vlgmr.msra.gmra.mxu0 %v4946_v22  ;;  %2215 = vmatpush.msra.mxu1 %v2108_v14 }
 0x5c3   : > { %2260 = vmatpush.msrb.mxu0 %v2107_v16  ;;  %2216 = vmatmul.f32.vlgmr.msra.gmra.mxu1 %v4949_v25  ;;  %v2237_v2 = vpop.f32.mrf.mxu2 }
 0x5c4   : > { %2280 = vmatpush.msrb.mxu1 %v2139_v30  ;;  %v2314_v30 = vpop.permute.xlu2 %2313 }
 0x5c5   : > { %2261 = vmatpush.msrb.mxu0 %v2105_v19 }
 0x5c6   : > { %2281 = vmatpush.msrb.mxu1 %v2137_v27 }
 0x5c7   : > { %2262 = vmatpush.msrb.mxu0 %v2103_v10 }
 0x5c8   : > { %2282 = vmatpush.msrb.mxu1 %v2135_v56 }
 0x5c9   : > { %2263 = vmatpush.msrb.mxu0 %v2101_v57 }
 0x5ca   : > { %2283 = vmatpush.msrb.mxu1 %v2133_v28  ;;  %v2345_v28 = vld [vmem:[%s5220_s17 + $0x8] sm:$0xff] }
 0x5cb   : > { %2264 = vmatpush.msrb.mxu0 %v2099_v31 }
 0x5cc   : > { %2284 = vmatpush.msrb.mxu1 %v2131_v60 }
 0x5cd   : > { %2265 = vmatpush.msrb.mxu0 %v2097_v29 }
 0x5ce   : > { %2285 = vmatpush.msrb.mxu1 %v2129_v37 }
 0x5cf   : > { %2266 = vmatpush.msrb.mxu0 %v2095_v40 }
 0x5d0   : > { %2286 = vmatpush.msrb.mxu1 %v2127_v62 }
 0x5d1   : > { %2267 = vmatpush.msrb.mxu0 %v2093_v42 }
 0x5d2   : > { %2287 = vmatpush.msrb.mxu1 %v2125_v44 }
 0x5d3   : > { %2268 = vmatpush.msrb.mxu0 %v2091_v46 }
 0x5d4   : > { %2288 = vmatpush.msrb.mxu1 %v2123_v49 }
 0x5d5   : > { %2269 = vmatpush.msrb.mxu0 %v2089_v53 }
 0x5d6   : > { %2289 = vmatpush.msrb.mxu1 %v2121_v55 }
 0x5d7   : > { %2270 = vmatpush.msrb.mxu0 %v2087_v61 }
 0x5d8   : > { %2290 = vmatpush.msrb.mxu1 %v2119_v3 }
 0x5d9   : > { %2271 = vmatpush.msrb.mxu0 %v2085_v59 }
 0x5da   : > { %2291 = vmatpush.msrb.mxu1 %v2117_v7 }
 0x5db   : > { %2272 = vmatpush.msrb.mxu0 %v2083_v11 }
 0x5dc   : > { %2292 = vmatpush.msrb.mxu1 %v2115_v15  ;;  %v3240_v15 = vld [vmem:[%s5219_s16] sm:$0xff] }
 0x5dd   : > { %2273 = vmatpush.msrb.mxu0 %v2081_v18 }
 0x5de   : > { %2293 = vmatpush.msrb.mxu1 %v2113_v21 }
 0x5df   : > { %2274 = vmatpush.msrb.mxu0 %v2079_v23  ;;  %v2349_v23 = vpop.permute.xlu2 %2348 }
 0x5e0   : > { %2294 = vmatpush.msrb.mxu1 %v2111_v26 }
 0x5e1   : > { %2275 = vmatpush.msrb.mxu0 %v2077_v47 }
 0x5e2   : > { %2276 = vmatmul.f32.vlgmr.msrb.gmra.mxu0 %v4946_v22  ;;  %2295 = vmatpush.msrb.mxu1 %v2109_v32 }
 0x5e3   : > { %2296 = vmatmul.f32.vlgmr.msrb.gmra.mxu1 %v4949_v25 }
 0x61f   : > { %v1971_v33 = vpop.f32.mrf.mxu0 }
 0x620   : > { %v1984_v35 = vpop.f32.mrf.mxu1  ;;  %v1972_v48 = vadd.f32 %v1971_v33, %v1951_v45 }
 0x621   : > { %v1985_v14 = vadd.f32 %v1984_v35, %v1951_v45  ;;  %v2447_v45 = vld [vmem:[%s5222_s19 + $0x8] sm:$0xff] }
 0x623   : > { %v2177_v63 = vpop.f32.mrf.mxu3 }
 0x624   : > { %v2178_v39 = vadd.f32 %v2177_v63, %v2157_v38 }
 0x627   : > { %v1973_v36 = vpop.f32.mrf.mxu0 }
 0x628   : > { %v1986_v12 = vpop.f32.mrf.mxu1 }
 0x62b   : > { %v2257_v58 = vpop.f32.mrf.mxu3 }
 0x62c   : > { %v2258_v4 = vadd.f32 %v2257_v58, %v2237_v2  ;;  %v2555_v58 = vld [vmem:[%s5224_s21 + $0x8] sm:$0xff] }
 0x62d   : > { %v2571_v2 = vld [vmem:[%s5225_s22 + $0x8] sm:$0xff] }
 0x63f   : > { %v2197_v52 = vpop.f32.mrf.mxu0 }
 0x640   : > { %v2198_v1 = vadd.f32 %v2197_v52, %v2178_v39  ;;  %v2217_v43 = vpop.f32.mrf.mxu1 }
 0x642   : > { %v2218_v50 = vadd.f32 %v2217_v43, %v2198_v1 }
 0x644   : > { %v2300_v54 = vadd.f32 %v2218_v50, %v1972_v48  ;;  %v2446_v48 = vld [vmem:[%s5222_s19] sm:$0xff] }
 0x645   : > { %v2570_v50 = vld [vmem:[%s5225_s22] sm:$0xff] }
 0x646   : > { %2519 = vmatpush.msra.mxu0 %v2300_v54  ;;  %v2308_v16 = vmul.f32 %v2306_v13, %v2300_v54  ;;  %v2554_v54 = vld [vmem:[%s5224_s21] sm:$0xff] }
 0x648   : > { %v2316_v25 = vadd.f32 %v2314_v30, %v2308_v16  ;;  %2646 = vmatpush.msrb.mxu0 %v2628_v8 }
 0x64a   : > { %v2318_v10 = vmax.f32 %v2316_v25, 0.0 }
 0x65f   : > { %v2277_v51 = vpop.f32.mrf.mxu0 }
 0x660   : > { %v2278_v9 = vadd.f32 %v2277_v51, %v2258_v4  ;;  %v2297_v6 = vpop.f32.mrf.mxu1  ;;  %v2495_v4 = vld [vmem:[%s5223_s20] sm:$0xff] }
 0x662   : > { %v2298_v20 = vadd.f32 %v2297_v6, %v2278_v9  ;;  %v2496_v9 = vld [vmem:[%s5223_s20 + $0x8] sm:$0xff] }
 0x664   : > { %v2301_v22 = vadd.f32 %v2298_v20, %v1985_v14 }
 0x666   : > { %v2309_v19 = vmul.f32 %v2306_v13, %v2301_v22  ;;  %2542 = vmatpush.msra.mxu1 %v2301_v22 }
 0x668   : > { %v2317_v27 = vadd.f32 %v2314_v30, %v2309_v19  ;;  %2666 = vmatpush.msrb.mxu1 %v2644_v17 }
 0x66a   : > { %v2319_v56 = vmax.f32 %v2317_v27, 0.0 }
 0x66c   : > { %v3401_v57 = vpack.i.bf16 %v2319_v56, %v2318_v10 }
 0x66e   : > { %3402 = vrot.lane.b32.xlu1 %v3401_v57, %s3662_s6  ;;  %3397 = vrot.lane.b32.xlu0 %v3401_v57, %s3661_s8 }
 0x676   : > { %2353 = vperm.xlu0 %3348, %v2345_v28  }
 0x6e0   : > { %v3403_v31 = vpop.permute.xlu1 %3402  ;;  %v3398_v60 = vpop.permute.xlu0 %3397 }
 0x6e1   : > { %v3400_v29 = vunpack.i.h.bf16 %v3398_v60  ;;  %v3399_v37 = vunpack.i.l.bf16 %v3398_v60  ;;  %v3405_v40 = vunpack.i.h.bf16 %v3403_v31  ;;  %v3404_v62 = vunpack.i.l.bf16 %v3403_v31 }
 0x6e3   : > { %v2335_v42 = vsel %vm902_vm1, %v3400_v29, %v3399_v37  ;;  %v2334_v44 = vsel %vm902_vm1, %v3399_v37, %v3400_v29  ;;  %v2325_v55 = vsel %vm853_vm0, %v3405_v40, %v3404_v62  ;;  %v2324_v3 = vsel %vm853_vm0, %v3404_v62, %v3405_v40 }
 0x6e4   : > { %v2340_v46 = vpack.c.bf16 %v2334_v44, %v2334_v44  ;;  %v2337_v49 = vsel %vm1937_vm14, %v2335_v42, 0.0  ;;  %v3144_v7 = vpack.c.bf16 %v2318_v10, %v2325_v55  ;;  %v3148_v11 = vpack.c.bf16 %v2319_v56, %v2324_v3  ;;  %v3241_v42 = vld [vmem:[%s5221_s18] sm:$0xff]  ;;  %v2627_v44 = vld [vmem:[%s5284_s4 + $0x70] sm:$0xff]  ;;  %v2624_v3 = vld [vmem:[%s5284_s4 + $0x58] sm:$0xff] }
 0x6e5   : > { %v2341_v53 = vpack.c.bf16 %v2337_v49, %v2337_v49  ;;  %2647 = vmatpush.msrb.mxu0 %v2627_v44  ;;  %v2626_v49 = vld [vmem:[%s5284_s4 + $0x68] sm:$0xff]  ;;  %v2625_v55 = vld [vmem:[%s5284_s4 + $0x60] sm:$0xff] }
 0x6e6   : > { %v2365_v61 = vsel %vm946_vm2, %v2340_v46, 0  ;;  %v2643_v46 = vld [vmem:[%s5284_s4 + $0xf0] sm:$0xff] }
 0x6e7   : > { %2376 = vmatpush.bf16.msrb.mxu2 %v2365_v61  ;;  %v2368_v59 = vsel %vm946_vm2, %v2341_v53, 0  ;;  %vm2497_vm2 = vcmask 64512   ;;  %2667 = vmatpush.msrb.mxu1 %v2643_v46  ;;  %v2642_v53 = vld [vmem:[%s5284_s4 + $0xe8] sm:$0xff]  ;;  %v2641_v61 = vld [vmem:[%s5284_s4 + $0xe0] sm:$0xff] }
 0x6e8   : > { %2390 = vmatpush.bf16.msrb.mxu3 %v2368_v59  ;;  %v2354_v47 = vpop.permute.xlu0 %2353  ;;  %3169 = vmatmul.msk.f32.vlgmr.msra.gmra.mxu0 %vm2497_vm2, %v2495_v4  ;;  %v2640_v59 = vld [vmem:[%s5284_s4 + $0xd8] sm:$0xff] }
 0x6e9   : > { %3171 = vmatmul.msk.f32.vlgmr.msra.gmra.mxu1 %vm2497_vm2, %v2495_v4  ;;  %2648 = vmatpush.msrb.mxu0 %v2626_v49 }
 0x6ea   : > { %2668 = vmatpush.msrb.mxu1 %v2642_v53 }
 0x6eb   : > { %3145 = vmatpush.bf16.msk.msrb.mxu2 %vm3962_vm9, %v3144_v7  ;;  %2649 = vmatpush.msrb.mxu0 %v2625_v55  ;;  %v2623_v7 = vld [vmem:[%s5284_s4 + $0x50] sm:$0xff]  ;;  %vm2687_vm9 = vcmask 32768  }
 0x6ec   : > { %3149 = vmatpush.bf16.msk.msrb.mxu3 %vm4742_vm8, %v3148_v11  ;;  %2669 = vmatpush.msrb.mxu1 %v2641_v61  ;;  %v2639_v11 = vld [vmem:[%s5284_s4 + $0xd0] sm:$0xff] }
 0x6ed   : > { %2650 = vmatpush.msrb.mxu0 %v2624_v3 }
 0x6ee   : > { %3146 = vmatmul.msk.bf16.vlgmr.msrb.gmra.mxu2 %vm942_vm4, %v3240_v15  ;;  %2670 = vmatpush.msrb.mxu1 %v2640_v59 }
 0x6ef   : > { %3150 = vmatmul.msk.bf16.vlgmr.msrb.gmra.mxu3 %vm942_vm4, %v3240_v15  ;;  %vm3162_vm4 = vmpackc.low %vm1925_vm6, %vm1925_vm6  ;;  %2651 = vmatpush.msrb.mxu0 %v2623_v7  ;;  %v2622_v15 = vld [vmem:[%s5284_s4 + $0x48] sm:$0xff] }
 0x6f0   : > { %3170 = vmatmul.msk.f32.gmra.mxu0 %vm2497_vm2, %v2496_v9  ;;  %2671 = vmatpush.msrb.mxu1 %v2639_v11 }
 0x6f1   : > { %3172 = vmatmul.msk.f32.gmra.mxu1 %vm2497_vm2, %v2496_v9  ;;  %2652 = vmatpush.msrb.mxu0 %v2622_v15 }
 0x771   : > { %v2379_v18 = vpop.f32.mrf.mxu2 }
 0x772   : > { %v2393_v21 = vpop.f32.mrf.mxu3  ;;  %v2380_v26 = vadd.f32 %v2379_v18, %v2349_v23  ;;  %v2638_v18 = vld [vmem:[%s5284_s4 + $0xc8] sm:$0xff] }
 0x773   : > { %v2394_v32 = vadd.f32 %v2393_v21, %v2349_v23  ;;  %2672 = vmatpush.msrb.mxu1 %v2638_v18  ;;  %v2621_v21 = vld [vmem:[%s5284_s4 + $0x40] sm:$0xff] }
 0x774   : > { %v2398_v63 = vmax.f32 %v2380_v26, 0.0  ;;  %v2637_v23 = vld [vmem:[%s5284_s4 + $0xc0] sm:$0xff]  ;;  %2653 = vmatpush.msrb.mxu0 %v2621_v21  ;;  %v2620_v26 = vld [vmem:[%s5284_s4 + $0x38] sm:$0xff] }
 0x775   : > { %v2399_v38 = vmax.f32 %v2394_v32, 0.0  ;;  %2673 = vmatpush.msrb.mxu1 %v2637_v23  ;;  %v2619_v32 = vld [vmem:[%s5284_s4 + $0x30] sm:$0xff] }
 0x776   : > { %2654 = vmatpush.msrb.mxu0 %v2620_v26 }
 0x778   : > { %2655 = vmatpush.msrb.mxu0 %v2619_v32 }
 0x779   : > { %v2381_v33 = vpop.f32.mrf.mxu2 }
 0x77a   : > { %v2382_v35 = vadd.f32 %v2381_v33, %v2354_v47  ;;  %v2395_v36 = vpop.f32.mrf.mxu3  ;;  %v2635_v33 = vld [vmem:[%s5284_s4 + $0xb0] sm:$0xff] }
 0x77b   : > { %v2396_v12 = vadd.f32 %v2395_v36, %v2354_v47  ;;  %v2636_v47 = vld [vmem:[%s5284_s4 + $0xb8] sm:$0xff]  ;;  %v2634_v36 = vld [vmem:[%s5284_s4 + $0xa8] sm:$0xff] }
 0x77c   : > { %v2400_v41 = vmax.f32 %v2382_v35, 0.0  ;;  %2674 = vmatpush.msrb.mxu1 %v2636_v47  ;;  %v2618_v35 = vld [vmem:[%s5284_s4 + $0x28] sm:$0xff] }
 0x77d   : > { %v2401_v39 = vmax.f32 %v2396_v12, 0.0  ;;  %2656 = vmatpush.msrb.mxu0 %v2618_v35  ;;  %v2617_v12 = vld [vmem:[%s5284_s4 + $0x20] sm:$0xff] }
 0x77e   : > { %v3416_v34 = vpack.i.bf16 %v2400_v41, %v2398_v63  ;;  %v2440_v52 = vpack.c.bf16 %v2400_v41, %v2398_v63  ;;  %2675 = vmatpush.msrb.mxu1 %v2635_v33  ;;  %v2633_v63 = vld [vmem:[%s5284_s4 + $0xa0] sm:$0xff]  ;;  %v2616_v41 = vld [vmem:[%s5284_s4 + $0x18] sm:$0xff] }
 0x77f   : > { %v3163_v1 = vpack.c.bf16 %v2401_v39, %v2399_v38  ;;  %v3411_v43 = vpack.i.bf16 %v2401_v39, %v2399_v38  ;;  %2657 = vmatpush.msrb.mxu0 %v2617_v12  ;;  %v2632_v38 = vld [vmem:[%s5284_s4 + $0x98] sm:$0xff]  ;;  %v2615_v39 = vld [vmem:[%s5284_s4 + $0x10] sm:$0xff] }
 0x780   : > { %3417 = vrot.lane.b32.xlu0 %v3416_v34, %s3662_s6  ;;  %3407 = vrot.lane.b32.xlu1 %v3416_v34, %s3661_s8  ;;  %v2631_v34 = vld [vmem:[%s5284_s4 + $0x90] sm:$0xff] }
 0x781   : > { %3412 = vrot.lane.b32.xlu2 %v3411_v43, %s3661_s8  ;;  %2676 = vmatpush.msrb.mxu1 %v2634_v36 }
 0x782   : > { %2658 = vmatpush.msrb.mxu0 %v2616_v41 }
 0x783   : > { %2677 = vmatpush.msrb.mxu1 %v2633_v63 }
 0x784   : > { %2659 = vmatpush.msrb.mxu0 %v2615_v39 }
 0x785   : > { %2678 = vmatpush.msrb.mxu1 %v2632_v38  ;;  %v2645_v38 = vld [vmem:[%s5285_s9] sm:$0x1] }
 0x787   : > { %2679 = vmatpush.msrb.mxu1 %v2631_v34 }
 0x788   : > { %2455 = vperm.xlu0 %3348, %v2447_v45   ;;  %3422 = vrot.lane.b32.xlu1 %v3411_v43, %s3662_s6  ;;  %v2614_v43 = vld [vmem:[%s5284_s4 + $0x8] sm:$0xff] }
 0x789   : > { %2450 = vperm.xlu2 %3359, %v2446_v48   ;;  %v2630_v45 = vld [vmem:[%s5284_s4 + $0x88] sm:$0xff]  ;;  %2660 = vmatpush.msrb.mxu0 %v2614_v43 }
 0x78a   : > { %2680 = vmatpush.msrb.mxu1 %v2630_v45 }
 0x790   : > { %2574 = vperm.xlu0 %3348, %v2570_v50   ;;  %2558 = vperm.xlu1 %3370, %v2554_v54   ;;  %v2613_v50 = vld [vmem:[%s5284_s4] sm:$0xff] }
 0x791   : > { %2563 = vperm.xlu2 %3359, %v2555_v58   ;;  %v2629_v54 = vld [vmem:[%s5284_s4 + $0x80] sm:$0xff]  ;;  %2661 = vmatpush.msrb.mxu0 %v2613_v50 }
 0x792   : > { %2681 = vmatpush.msrb.mxu1 %v2629_v54 }
 0x798   : > { %2579 = vperm.xlu1 %3370, %v2571_v2  }
 0x7db   : > { %v3413_v51 = vpop.permute.xlu2 %3412 }
 0x7dc   : > { %v3415_v13 = vunpack.i.h.bf16 %v3413_v51  ;;  %v3414_v14 = vunpack.i.l.bf16 %v3413_v51 }
 0x7e3   : > { %v2451_v48 = vpop.permute.xlu2 %2450 }
 0x7f2   : > { %v3408_v6 = vpop.permute.xlu1 %3407  ;;  %v3418_v56 = vpop.permute.xlu0 %3417 }
 0x7f3   : > { %v3410_v16 = vunpack.i.h.bf16 %v3408_v6  ;;  %v3409_v20 = vunpack.i.l.bf16 %v3408_v6  ;;  %v3420_v28 = vunpack.i.h.bf16 %v3418_v56  ;;  %v3419_v31 = vunpack.i.l.bf16 %v3418_v56 }
 0x7f5   : > { %v2431_v22 = vsel %vm902_vm1, %v3410_v16, %v3415_v13  ;;  %v2433_v30 = vsel %vm902_vm1, %v3415_v13, %v3410_v16  ;;  %v2430_v25 = vsel %vm902_vm1, %v3409_v20, %v3414_v14  ;;  %v2432_v19 = vsel %vm902_vm1, %v3414_v14, %v3409_v20  ;;  %vm3155_vm1 = vmpackc.low %vm862_vm5, %vm862_vm5 }
 0x7f6   : > { %v2442_v27 = vpack.c.bf16 %v2431_v22, %v2430_v25  ;;  %v3160_v10 = vpack.c.bf16 %v2433_v30, %v2432_v19  ;;  %vm2463_vm5 = vcmask 392192   ;;  %v3666_v16 = vmov 16.0  }
 0x7f7   : > { %3426 = vrcp.f32 %v3666_v16 }
 0x7f8   : > { %2472 = vmatpush.bf16.msra.mxu2 %v2442_v27  ;;  %3161 = vmatpush.bf16.msk.msra.mxu3 %vm3159_vm3, %v3160_v10 }
 0x7fa   : > { %v3423_v57 = vpop.permute.xlu1 %3422  ;;  %v2456_v9 = vpop.permute.xlu0 %2455 }
 0x7fb   : > { %v3425_v60 = vunpack.i.h.bf16 %v3423_v57  ;;  %v3424_v29 = vunpack.i.l.bf16 %v3423_v57 }
 0x7fc   : > { %2473 = vmatpush.bf16.msra.mxu2 %v2440_v52  ;;  %3164 = vmatpush.bf16.msk.msra.mxu3 %vm3162_vm4, %v3163_v1  ;;  %v2521_v52 = vpop.f32.mrf.mxu0  ;;  %v2544_v1 = vpop.f32.mrf.mxu1 }
 0x7fd   : > { %v2411_v5 = vsel %vm853_vm0, %v3420_v28, %v3425_v60  ;;  %v2413_v37 = vsel %vm853_vm0, %v3425_v60, %v3420_v28  ;;  %v2410_v0 = vsel %vm853_vm0, %v3419_v31, %v3424_v29  ;;  %v2412_v40 = vsel %vm853_vm0, %v3424_v29, %v3419_v31  ;;  %v3427_v57 = vpop.eup %3426  ;;  %v2564_v60 = vpop.permute.xlu2 %2563 }
 0x7fe   : > { %v3156_v62 = vpack.c.bf16 %v2413_v37, %v2412_v40  ;;  %v3166_v24 = vpack.c.bf16 %v2411_v5, %v2410_v0  ;;  %vm2609_vm0 = vweird.f32 %v3427_v57 }
 0x800   : > { %3157 = vmatpush.bf16.msk.msra.mxu2 %vm3155_vm1, %v3156_v62  ;;  %3167 = vmatpush.bf16.msk.msra.mxu3 %vm3165_vm7, %v3166_v24  ;;  %v2605_v24 = vmul.f32 16.0, %v3427_v57 }
 0x802   : > { %v2559_v6 = vpop.permute.xlu1 %2558  ;;  %v2575_v29 = vpop.permute.xlu0 %2574  ;;  %v2606_v53 = vsub.f32 1.0, %v2605_v24 }
 0x803   : > { %3158 = vmatmul.msk.bf16.vlgmr.msra.gmra.mxu2 %vm2463_vm5, %v3241_v42  ;;  %3168 = vmatmul.msk.bf16.vlgmr.msra.gmra.mxu3 %vm2463_vm5, %v3241_v42 }
 0x804   : > { %v2524_v20 = vpop.f32.mrf.mxu0  ;;  %v2547_v22 = vpop.f32.mrf.mxu1  ;;  %v2607_v7 = vmul.f32 %v3427_v57, %v2606_v53 }
 0x806   : > { %v2608_v23 = vadd.f32 %v3427_v57, %v2607_v7 }
 0x808   : > { %v2610_v35 = vsel %vm2609_vm0, %v3427_v57, %v2608_v23 }
 0x80a   : > { %v2580_v62 = vpop.permute.xlu1 %2579 }
 0x886   : > { %v2476_v58 = vpop.f32.mrf.mxu2  ;;  %v2490_v2 = vpop.f32.mrf.mxu3 }
 0x887   : > { %v2477_v4 = vadd.f32 %v2476_v58, %v2451_v48  ;;  %v2491_v51 = vadd.f32 %v2490_v2, %v2451_v48 }
 0x889   : > { %v2550_v13 = vadd.f32 %v2521_v52, %v2477_v4  ;;  %v2551_v14 = vadd.f32 %v2544_v1, %v2491_v51 }
 0x88b   : > { %v2566_v19 = vmul.f32 %v2559_v6, %v2550_v13  ;;  %v2567_v27 = vmul.f32 %v2559_v6, %v2551_v14 }
 0x88d   : > { %v2582_v5 = vadd.f32 %v2575_v29, %v2566_v19  ;;  %v2583_v37 = vadd.f32 %v2575_v29, %v2567_v27 }
 0x88e   : > { %v2478_v30 = vpop.f32.mrf.mxu2  ;;  %v2492_v25 = vpop.f32.mrf.mxu3 }
 0x88f   : > { %v2479_v10 = vadd.f32 %v2478_v30, %v2456_v9  ;;  %v2493_v56 = vadd.f32 %v2492_v25, %v2456_v9  ;;  %v2586_v17 = vmax.f32 %v2582_v5, 0.0  ;;  %v2587_v44 = vmax.f32 %v2583_v37, 0.0 }
 0x891   : > { %v2552_v28 = vadd.f32 %v2524_v20, %v2479_v10  ;;  %v2553_v31 = vadd.f32 %v2547_v22, %v2493_v56 }
 0x893   : > { %v2568_v0 = vmul.f32 %v2564_v60, %v2552_v28  ;;  %v2569_v40 = vmul.f32 %v2564_v60, %v2553_v31 }
 0x895   : > { %v2584_v42 = vadd.f32 %v2580_v62, %v2568_v0  ;;  %v2585_v8 = vadd.f32 %v2580_v62, %v2569_v40 }
 0x897   : > { %v2588_v46 = vmax.f32 %v2584_v42, 0.0  ;;  %v2589_v49 = vmax.f32 %v2585_v8, 0.0 }
 0x899   : > { %v2590_v55 = vadd.f32 %v2588_v46, %v2586_v17  ;;  %v2597_v61 = vadd.f32 %v2589_v49, %v2587_v44 }
 0x89b   : > { %v2591_v3 = vrot.slane %v2590_v55, 4  ;;  %v2598_v59 = vrot.slane %v2597_v61, 4 }
 0x89d   : > { %v2592_v11 = vadd.f32 %v2591_v3, %v2590_v55  ;;  %v2599_v15 = vadd.f32 %v2598_v59, %v2597_v61 }
 0x89f   : > { %v2593_v18 = vrot.slane %v2592_v11, 2  ;;  %v2600_v21 = vrot.slane %v2599_v15, 2 }
 0x8a1   : > { %v2594_v26 = vadd.f32 %v2593_v18, %v2592_v11  ;;  %v2601_v47 = vadd.f32 %v2600_v21, %v2599_v15 }
 0x8a3   : > { %v2595_v32 = vrot.slane %v2594_v26, 1  ;;  %v2602_v33 = vrot.slane %v2601_v47, 1 }
 0x8a5   : > { %v2596_v36 = vadd.f32 %v2595_v32, %v2594_v26  ;;  %v2603_v12 = vadd.f32 %v2602_v33, %v2601_v47 }
 0x8a7   : > { %v2611_v63 = vmul.f32 %v2610_v35, %v2596_v36  ;;  %v2612_v41 = vmul.f32 %v2610_v35, %v2603_v12 }
 0x8a9   : > { %2662 = vmatmul.f32.vlgmr.msrb.gmra.mxu0 %v2611_v63  ;;  %2682 = vmatmul.f32.vlgmr.msrb.gmra.mxu1 %v2612_v41 }
 0x926   : > { %v2663_v39 = vpop.f32.mrf.mxu0  ;;  %v2683_v52 = vpop.f32.mrf.mxu1 }
 0x927   : > { %v2664_v34 = vadd.f32 %v2663_v39, %v2645_v38 }
 0x929   : > { %v2684_v1 = vadd.f32 %v2683_v52, %v2664_v34 }
 0x92b   : > { %v2686_v43 = vmul.f32 %v2684_v1, %v2684_v1 }
 0x92d   : > { %v2688_v45 = vsel %vm2687_vm9, %v2686_v43, 0.0 }
 0x92e   : > { %2689 = vadd.xlane.f32.xlu2 %v2688_v45 }
 0x9a1   : > { %v2690_v48 = vpop.xlane.xlu2 %2689 }
 0x9a2   : > { %v2691_v50 = vmax.f32 %v2690_v48, 1e-24 }
 0x9a4   : > { %3428 = vrsqrt.f32 %v2691_v50  ;;  %vm2698_vm11 = vweird.f32 %v2691_v50 }
 0x9aa   : > { %v3429_v54 = vpop.eup %3428 }
 0x9ab   : > { %v2693_v58 = vmul.f32 %v3429_v54, %v2691_v50  ;;  %vm2699_vm10 = vweird.f32 %v3429_v54 }
 0x9ac   : > { %vm2700_vm12 = vmor %vm2698_vm11, %vm2699_vm10 }
 0x9ad   : > { %v2694_v2 = vmul.f32 %v3429_v54, %v2693_v58 }
 0x9af   : > { %v2695_v4 = vmul.f32 0.5, %v2694_v2 }
 0x9b1   : > { %v2696_v51 = vsub.f32 1.5, %v2695_v4 }
 0x9b3   : > { %v2697_v9 = vmul.f32 %v3429_v54, %v2696_v51 }
 0x9b5   : > { %v2701_v6 = vsel %vm2700_vm12, %v3429_v54, %v2697_v9 }
 0x9b6   : > { %v2702_v13 = vmul.f32 %v2701_v6, %v2684_v1 }
 0x9b8   : > { %2703 = vst.msk [vmem:[%s829_s3] sm:$0x1] %vm2687_vm9, %v2702_v13 }
 0x9b9   : > { %3607 = shalt.err (!%p3604_p8)
}
 0x9ba   : > { %3262 = dma.vmem_to_hbm [thread:$0]  (%p3835_p5), %s2716_s27, 16, %s2718_s29, %s2705_s1  }
 0x9bb PF: > { %s5289_s28 = sld [smem:[#allocation19_spill]] }
 0x9bc   : > { %s5290_s8 = sld [smem:[#allocation16_spill]] }
 0x9c1   : > { %p3294_p9 = scmp.ge.s32.totalorder %s5289_s28, 2 }
 0x9c2   : > { %s2729_s25 = sand.u32 1, %s5290_s8  }
 0x9c3   : > { %p3281_p10 = pnand %p3294_p9, %p3839_p6  ;;  %s2730_s3 = scalar_lea.sflag [#allocation4], %s2729_s25 }
 0x9c5   : > { %p3282_p11 = pneg %p3281_p10 }
 0x9c7   : > { %3637 = dma.done.wait (%p3282_p11), %s2730_s3, 16  }
 0x9c8   : > { %3639 = vsyncadd (%p3282_p11), %s2730_s3, 4294967280  ;;  %s5292_s30 = sld [smem:[#allocation20_spill]] }
 0x9c9   : > { %s5293_s29 = sld [smem:[#allocation17_spill]] }
 0x9ca   : > { %s5294_s2 = sld [smem:[#allocation18_spill]] }
 0x9cb   : > { %s5295_s6 = sld [smem:[#allocation21_spill]] }
 0x9ce   : > { %p38_p12 = scmp.ge.s32.totalorder %s5292_s30, 4  }
 0x9d0   :  { %40 = sbr.rel (!%p38_p12) target bundleno = 20 (0x14), region = 176 }
 0x9d5   :  { %2735 = vsyncpa [#allocation3], 1 }
 0x9d6   :  { %2737 = vsyncpa [#allocation3 + $0x1], 1 }
 0x9d7   :  { %2738 = vsyncpa [#allocation6], 1 }
 0x9d8   :  { %2739 = vsyncpa [#allocation9], 1 }
 0x9d9   :  { %2740 = vsyncpa [#allocation4], 1 }
 0x9da   :  { %2742 = vsyncpa [#allocation4 + $0x1], 1 }

</bundles_post_ra>
